<compile_context>
chip_gen: v6e
topology: v6e:2x2x1
jax: 0.10.0
libtpu: 0.0.40
codegen_flags: <defaults>
</compile_context>

<pallas_src>
import functools

import jax
import jax.numpy as jnp
from jax.experimental import pallas as pl
from jax.experimental.pallas import tpu as pltpu


# ----------------------------------------------------------------------------
# In-kernel building blocks (pure value-level ops on VMEM-resident data)
# ----------------------------------------------------------------------------
def _conv3x3_bn_relu(x, w, scale, shift):
    """3x3 'same' conv + folded BN + ReLU for one image.

    x:     (H, W, Cin)   bf16 activations
    w:     (9*Cin, Cout) bf16 weights, taps flattened row-major (ky, kx, cin)
    scale: (1, Cout)     f32 folded BN scale
    shift: (1, Cout)     f32 folded BN shift (includes conv bias)
    returns (H, W, Cout) f32
    """
    H, W, Cin = x.shape
    Cout = w.shape[-1]

    # In-kernel zero halo padding: (H, W, Cin) -> (H+2, W+2, Cin).
    zrow = jnp.zeros((1, W, Cin), x.dtype)
    xp = jnp.concatenate([zrow, x, zrow], axis=0)
    zcol = jnp.zeros((H + 2, 1, Cin), x.dtype)
    xp = jnp.concatenate([zcol, xp, zcol], axis=1)

    # im2col: 9 shifted windows concatenated on the channel (lane) axis, then a
    # single large-K MXU matmul with f32 accumulation.
    taps = [xp[ky:ky + H, kx:kx + W, :] for ky in range(3) for kx in range(3)]
    patches = jnp.concatenate(taps, axis=-1).reshape(H * W, 9 * Cin)
    acc = jnp.dot(patches, w, preferred_element_type=jnp.float32)

    # Folded BN (eval mode) + ReLU in f32 on the VPU.
    y = jnp.maximum(acc * scale + shift, 0.0)
    return y.reshape(H, W, Cout)


def _maxpool2x2(x):
    """2x2 max pool, stride 2.  x: (H, W, C) -> (H//2, W//2, C)."""
    H, W, C = x.shape
    return jnp.max(x.reshape(H // 2, 2, W // 2, 2, C), axis=(1, 3))


# ----------------------------------------------------------------------------
# Fused stem kernel: conv1 -> conv2 -> maxpool -> conv3 -> conv4 (one batch elt)
# ----------------------------------------------------------------------------
def _input_cnn_fused_kernel(x_ref,
                            w1_ref, s1_ref, b1_ref,
                            w2_ref, s2_ref, b2_ref,
                            w3_ref, s3_ref, b3_ref,
                            w4_ref, s4_ref, b4_ref,
                            o_ref):
    bf16 = jnp.bfloat16

    a = _conv3x3_bn_relu(x_ref[0], w1_ref[...], s1_ref[...], b1_ref[...])          # (H, W, 32)
    a = _conv3x3_bn_relu(a.astype(bf16), w2_ref[...], s2_ref[...], b2_ref[...])    # (H, W, 64)
    a = _maxpool2x2(a)                                                             # (H/2, W/2, 64)
    a = _conv3x3_bn_relu(a.astype(bf16), w3_ref[...], s3_ref[...], b3_ref[...])    # (H/2, W/2, 128)
    a = _conv3x3_bn_relu(a.astype(bf16), w4_ref[...], s4_ref[...], b4_ref[...])    # (H/2, W/2, 128)

    o_ref[...] = a.reshape(o_ref.shape).astype(o_ref.dtype)


# ----------------------------------------------------------------------------
# Wrapper: one pallas_call over the batch, NCHW in / NCHW out
# ----------------------------------------------------------------------------
@jax.jit
def input_cnn_forward(x_nchw, params):
    """PyTorch-equivalent forward.  Input/output are NCHW; compute is NHWC."""
    x = jnp.transpose(x_nchw, (0, 2, 3, 1)).astype(jnp.bfloat16)     # NCHW -> NHWC, bf16 for MXU
    N, H, W, Cin = x.shape
    Ho, Wo = H // 2, W // 2
    Cout_final = params[-1][0].shape[-1]

    flat_inputs = [x]
    in_specs = [pl.BlockSpec((1, H, W, Cin), lambda n: (n, 0, 0, 0))]
    for (w, scale, shift) in params:
        kh, kw, ci, co = w.shape
        w2 = w.reshape(kh * kw * ci, co).astype(jnp.bfloat16)        # (9*Cin, Cout) bf16
        flat_inputs += [w2, scale.reshape(1, co).astype(jnp.float32),
                        shift.reshape(1, co).astype(jnp.float32)]
        in_specs += [
            pl.BlockSpec((kh * kw * ci, co), lambda n: (0, 0)),
            pl.BlockSpec((1, co), lambda n: (0, 0)),
            pl.BlockSpec((1, co), lambda n: (0, 0)),
        ]

    out = pl.pallas_call(
        _input_cnn_fused_kernel,
        out_shape=jax.ShapeDtypeStruct((N, Ho, Wo, Cout_final), jnp.float32),
        grid=(N,),
        in_specs=in_specs,
        out_specs=pl.BlockSpec((1, Ho, Wo, Cout_final), lambda n: (n, 0, 0, 0)),
        compiler_params=pltpu.CompilerParams(
            dimension_semantics=("parallel",),
            # Modest explicit limit: safe on v5e (16 MiB default) through
            # v7x (64 MiB physical), and far more than this tiny stem needs.
            vmem_limit_bytes=32 * 1024 * 1024,
        ),
    )(*flat_inputs)

    return jnp.transpose(out, (0, 3, 1, 2))                          # NHWC -> NCHW


# ----------------------------------------------------------------------------
# Parameters (deterministic synthetic init, BN folded to scale/shift)
# ----------------------------------------------------------------------------
def init_params(key, in_channels, mid_channels=32, out_channels=64):
    # layers: inc.conv1 (Cin->32), inc.conv2 (32->64), down1.conv1 (64->128), down1.conv2 (128->128)
    layer_io = [
        (in_channels, mid_channels),
        (mid_channels, out_channels),
        (out_channels, 128),
        (128, 128),
    ]
    params = []
    for i, (cin, cout) in enumerate(layer_io):
        k = jax.random.fold_in(key, i)
        kw, kb, kg, kbe, km, kv = jax.random.split(k, 6)
        fan_in = cin * 9
        w = jax.random.normal(kw, (3, 3, cin, cout), jnp.float32) / jnp.sqrt(fan_in)
        conv_b = 0.1 * jax.random.normal(kb, (cout,), jnp.float32)
        gamma = 1.0 + 0.1 * jax.random.normal(kg, (cout,), jnp.float32)
        beta = 0.1 * jax.random.normal(kbe, (cout,), jnp.float32)
        mean = 0.05 * jax.random.normal(km, (cout,), jnp.float32)
        var = 1.0 + 0.1 * jnp.abs(jax.random.normal(kv, (cout,), jnp.float32))
        scale = gamma / jnp.sqrt(var + 1e-5)             # BN folded (eval mode)
        shift = beta + scale * (conv_b - mean)
        params.append((w, scale, shift))
    return params


# ----------------------------------------------------------------------------
# Pure-JAX reference (same bf16-input / f32-accumulate numerics)
# ----------------------------------------------------------------------------
def _ref_conv(x, w, scale, shift):
    y = jax.lax.conv_general_dilated(
        x.astype(jnp.bfloat16), w.astype(jnp.bfloat16),
        window_strides=(1, 1), padding="SAME",
        dimension_numbers=("NHWC", "HWIO", "NHWC"),
        preferred_element_type=jnp.float32)
    return jnp.maximum(y * scale + shift, 0.0)


def _ref_pool(x):
    return jax.lax.reduce_window(
        x, -jnp.inf, jax.lax.max, (1, 2, 2, 1), (1, 2, 2, 1), "VALID")


def input_cnn_reference(x_nchw, params):
    x = jnp.transpose(x_nchw, (0, 2, 3, 1)).astype(jnp.float32)
    x = _ref_conv(x, *params[0])
    x = _ref_conv(x, *params[1])
    x = _ref_pool(x)
    x = _ref_conv(x, *params[2])
    x = _ref_conv(x, *params[3])
    return jnp.transpose(x, (0, 3, 1, 2))


# ----------------------------------------------------------------------------
if __name__ == "__main__":
    key = jax.random.PRNGKey(0)
    kx, kp = jax.random.split(key)

    N, Cin, H, W = 2, 4, 16, 16
    x = jax.random.normal(kx, (N, Cin, H, W), jnp.float32)
    params = init_params(kp, Cin)

    out = jax.block_until_ready(input_cnn_forward(x, params))
    assert out.shape == (N, 128, H // 2, W // 2), out.shape

    ref = input_cnn_reference(x, params)
    max_err = float(jnp.max(jnp.abs(out - ref)))
    assert jnp.allclose(out, ref, atol=5e-2, rtol=5e-2), max_err

    print("KERNEL_OK")
</pallas_src>

<mosaic_0001>
module attributes {stable_mosaic.version = 11 : i64} {
  func.func @_input_cnn_fused_kernel(%arg0: i32, %arg1: memref<1x16x16x4xbf16, #tpu.memory_space<vmem>>, %arg2: memref<36x32xbf16, #tpu.memory_space<vmem>>, %arg3: memref<1x32xf32, #tpu.memory_space<vmem>>, %arg4: memref<1x32xf32, #tpu.memory_space<vmem>>, %arg5: memref<288x64xbf16, #tpu.memory_space<vmem>>, %arg6: memref<1x64xf32, #tpu.memory_space<vmem>>, %arg7: memref<1x64xf32, #tpu.memory_space<vmem>>, %arg8: memref<576x128xbf16, #tpu.memory_space<vmem>>, %arg9: memref<1x128xf32, #tpu.memory_space<vmem>>, %arg10: memref<1x128xf32, #tpu.memory_space<vmem>>, %arg11: memref<1152x128xbf16, #tpu.memory_space<vmem>>, %arg12: memref<1x128xf32, #tpu.memory_space<vmem>>, %arg13: memref<1x128xf32, #tpu.memory_space<vmem>>, %arg14: memref<1x8x8x128xf32, #tpu.memory_space<vmem>>) attributes {dimension_semantics = [#tpu.dimension_semantics<parallel>], iteration_bounds = array<i64: 2>, scalar_prefetch = 0 : i64, scratch_operands = 0 : i64, tpu.core_type = #tpu.core_type<tc>, window_params = [{transform_indices = @transform_0, window_bounds = array<i64: 1, 16, 16, 4>}, {pipeline_mode = #tpu.pipeline_mode<synchronous>, transform_indices = @transform_1, window_bounds = array<i64: 36, 32>}, {pipeline_mode = #tpu.pipeline_mode<synchronous>, transform_indices = @transform_2, window_bounds = array<i64: 1, 32>}, {pipeline_mode = #tpu.pipeline_mode<synchronous>, transform_indices = @transform_3, window_bounds = array<i64: 1, 32>}, {pipeline_mode = #tpu.pipeline_mode<synchronous>, transform_indices = @transform_4, window_bounds = array<i64: 288, 64>}, {pipeline_mode = #tpu.pipeline_mode<synchronous>, transform_indices = @transform_5, window_bounds = array<i64: 1, 64>}, {pipeline_mode = #tpu.pipeline_mode<synchronous>, transform_indices = @transform_6, window_bounds = array<i64: 1, 64>}, {pipeline_mode = #tpu.pipeline_mode<synchronous>, transform_indices = @transform_7, window_bounds = array<i64: 576, 128>}, {pipeline_mode = #tpu.pipeline_mode<synchronous>, transform_indices = @transform_8, window_bounds = array<i64: 1, 128>}, {pipeline_mode = #tpu.pipeline_mode<synchronous>, transform_indices = @transform_9, window_bounds = array<i64: 1, 128>}, {pipeline_mode = #tpu.pipeline_mode<synchronous>, transform_indices = @transform_10, window_bounds = array<i64: 1152, 128>}, {pipeline_mode = #tpu.pipeline_mode<synchronous>, transform_indices = @transform_11, window_bounds = array<i64: 1, 128>}, {pipeline_mode = #tpu.pipeline_mode<synchronous>, transform_indices = @transform_12, window_bounds = array<i64: 1, 128>}, {transform_indices = @transform_13, window_bounds = array<i64: 1, 8, 8, 128>}]} {
    %c0 = arith.constant 0 : index
    %c0_0 = arith.constant 0 : index
    %c0_1 = arith.constant 0 : index
    %c0_2 = arith.constant 0 : index
    %0 = vector.load %arg1[%c0, %c0_0, %c0_1, %c0_2] : memref<1x16x16x4xbf16, #tpu.memory_space<vmem>>, vector<1x16x16x4xbf16>
    %1 = vector.shape_cast %0 : vector<1x16x16x4xbf16> to vector<16x16x4xbf16>
    %c0_3 = arith.constant 0 : index
    %c0_4 = arith.constant 0 : index
    %2 = vector.load %arg2[%c0_3, %c0_4] : memref<36x32xbf16, #tpu.memory_space<vmem>>, vector<36x32xbf16>
    %c0_5 = arith.constant 0 : index
    %c0_6 = arith.constant 0 : index
    %3 = vector.load %arg3[%c0_5, %c0_6] : memref<1x32xf32, #tpu.memory_space<vmem>>, vector<1x32xf32>
    %c0_7 = arith.constant 0 : index
    %c0_8 = arith.constant 0 : index
    %4 = vector.load %arg4[%c0_7, %c0_8] : memref<1x32xf32, #tpu.memory_space<vmem>>, vector<1x32xf32>
    %cst = arith.constant 0.000000e+00 : bf16
    %5 = vector.broadcast %cst : bf16 to vector<1x16x4xbf16>
    %6 = tpu.concatenate %5, %1, %5 in 0 : vector<1x16x4xbf16>, vector<16x16x4xbf16>, vector<1x16x4xbf16> -> vector<18x16x4xbf16>
    %cst_9 = arith.constant 0.000000e+00 : bf16
    %7 = vector.broadcast %cst_9 : bf16 to vector<18x1x4xbf16>
    %8 = tpu.concatenate %7, %6, %7 in 1 : vector<18x1x4xbf16>, vector<18x16x4xbf16>, vector<18x1x4xbf16> -> vector<18x18x4xbf16>
    %9 = vector.extract_strided_slice %8 {offsets = [0, 0, 0], sizes = [16, 16, 4], strides = [1, 1, 1]} : vector<18x18x4xbf16> to vector<16x16x4xbf16>
    %10 = vector.extract_strided_slice %8 {offsets = [0, 1, 0], sizes = [16, 16, 4], strides = [1, 1, 1]} : vector<18x18x4xbf16> to vector<16x16x4xbf16>
    %11 = vector.extract_strided_slice %8 {offsets = [0, 2, 0], sizes = [16, 16, 4], strides = [1, 1, 1]} : vector<18x18x4xbf16> to vector<16x16x4xbf16>
    %12 = vector.extract_strided_slice %8 {offsets = [1, 0, 0], sizes = [16, 16, 4], strides = [1, 1, 1]} : vector<18x18x4xbf16> to vector<16x16x4xbf16>
    %13 = vector.extract_strided_slice %8 {offsets = [1, 1, 0], sizes = [16, 16, 4], strides = [1, 1, 1]} : vector<18x18x4xbf16> to vector<16x16x4xbf16>
    %14 = vector.extract_strided_slice %8 {offsets = [1, 2, 0], sizes = [16, 16, 4], strides = [1, 1, 1]} : vector<18x18x4xbf16> to vector<16x16x4xbf16>
    %15 = vector.extract_strided_slice %8 {offsets = [2, 0, 0], sizes = [16, 16, 4], strides = [1, 1, 1]} : vector<18x18x4xbf16> to vector<16x16x4xbf16>
    %16 = vector.extract_strided_slice %8 {offsets = [2, 1, 0], sizes = [16, 16, 4], strides = [1, 1, 1]} : vector<18x18x4xbf16> to vector<16x16x4xbf16>
    %17 = vector.extract_strided_slice %8 {offsets = [2, 2, 0], sizes = [16, 16, 4], strides = [1, 1, 1]} : vector<18x18x4xbf16> to vector<16x16x4xbf16>
    %18 = tpu.concatenate %9, %10, %11, %12, %13, %14, %15, %16, %17 in 2 : vector<16x16x4xbf16>, vector<16x16x4xbf16>, vector<16x16x4xbf16>, vector<16x16x4xbf16>, vector<16x16x4xbf16>, vector<16x16x4xbf16>, vector<16x16x4xbf16>, vector<16x16x4xbf16>, vector<16x16x4xbf16> -> vector<16x16x36xbf16>
    %19 = vector.shape_cast %18 : vector<16x16x36xbf16> to vector<256x36xbf16>
    %cst_10 = arith.constant dense<0.000000e+00> : vector<256x32xf32>
    %20 = tpu.matmul %19, %2, %cst_10 {dimension_numbers = #tpu.dot_dimension_numbers<[1], [0], [0], [1], [0, 0, 1, 1], [], []>} : vector<256x36xbf16>, vector<36x32xbf16>, vector<256x32xf32> -> vector<256x32xf32>
    %21 = vector.broadcast %3 : vector<1x32xf32> to vector<256x32xf32>
    %22 = arith.mulf %20, %21 : vector<256x32xf32>
    %23 = vector.broadcast %4 : vector<1x32xf32> to vector<256x32xf32>
    %24 = arith.addf %22, %23 : vector<256x32xf32>
    %cst_11 = arith.constant 0.000000e+00 : f32
    %25 = vector.broadcast %cst_11 : f32 to vector<256x32xf32>
    %26 = arith.maximumf %24, %25 : vector<256x32xf32>
    %27 = vector.shape_cast %26 : vector<256x32xf32> to vector<16x16x32xf32>
    %28 = arith.truncf %27 : vector<16x16x32xf32> to vector<16x16x32xbf16>
    %c0_12 = arith.constant 0 : index
    %c0_13 = arith.constant 0 : index
    %29 = vector.load %arg5[%c0_12, %c0_13] : memref<288x64xbf16, #tpu.memory_space<vmem>>, vector<288x64xbf16>
    %c0_14 = arith.constant 0 : index
    %c0_15 = arith.constant 0 : index
    %30 = vector.load %arg6[%c0_14, %c0_15] : memref<1x64xf32, #tpu.memory_space<vmem>>, vector<1x64xf32>
    %c0_16 = arith.constant 0 : index
    %c0_17 = arith.constant 0 : index
    %31 = vector.load %arg7[%c0_16, %c0_17] : memref<1x64xf32, #tpu.memory_space<vmem>>, vector<1x64xf32>
    %cst_18 = arith.constant 0.000000e+00 : bf16
    %32 = vector.broadcast %cst_18 : bf16 to vector<1x16x32xbf16>
    %33 = tpu.concatenate %32, %28, %32 in 0 : vector<1x16x32xbf16>, vector<16x16x32xbf16>, vector<1x16x32xbf16> -> vector<18x16x32xbf16>
    %cst_19 = arith.constant 0.000000e+00 : bf16
    %34 = vector.broadcast %cst_19 : bf16 to vector<18x1x32xbf16>
    %35 = tpu.concatenate %34, %33, %34 in 1 : vector<18x1x32xbf16>, vector<18x16x32xbf16>, vector<18x1x32xbf16> -> vector<18x18x32xbf16>
    %36 = vector.extract_strided_slice %35 {offsets = [0, 0, 0], sizes = [16, 16, 32], strides = [1, 1, 1]} : vector<18x18x32xbf16> to vector<16x16x32xbf16>
    %37 = vector.extract_strided_slice %35 {offsets = [0, 1, 0], sizes = [16, 16, 32], strides = [1, 1, 1]} : vector<18x18x32xbf16> to vector<16x16x32xbf16>
    %38 = vector.extract_strided_slice %35 {offsets = [0, 2, 0], sizes = [16, 16, 32], strides = [1, 1, 1]} : vector<18x18x32xbf16> to vector<16x16x32xbf16>
    %39 = vector.extract_strided_slice %35 {offsets = [1, 0, 0], sizes = [16, 16, 32], strides = [1, 1, 1]} : vector<18x18x32xbf16> to vector<16x16x32xbf16>
    %40 = vector.extract_strided_slice %35 {offsets = [1, 1, 0], sizes = [16, 16, 32], strides = [1, 1, 1]} : vector<18x18x32xbf16> to vector<16x16x32xbf16>
    %41 = vector.extract_strided_slice %35 {offsets = [1, 2, 0], sizes = [16, 16, 32], strides = [1, 1, 1]} : vector<18x18x32xbf16> to vector<16x16x32xbf16>
    %42 = vector.extract_strided_slice %35 {offsets = [2, 0, 0], sizes = [16, 16, 32], strides = [1, 1, 1]} : vector<18x18x32xbf16> to vector<16x16x32xbf16>
    %43 = vector.extract_strided_slice %35 {offsets = [2, 1, 0], sizes = [16, 16, 32], strides = [1, 1, 1]} : vector<18x18x32xbf16> to vector<16x16x32xbf16>
    %44 = vector.extract_strided_slice %35 {offsets = [2, 2, 0], sizes = [16, 16, 32], strides = [1, 1, 1]} : vector<18x18x32xbf16> to vector<16x16x32xbf16>
    %45 = tpu.concatenate %36, %37, %38, %39, %40, %41, %42, %43, %44 in 2 : vector<16x16x32xbf16>, vector<16x16x32xbf16>, vector<16x16x32xbf16>, vector<16x16x32xbf16>, vector<16x16x32xbf16>, vector<16x16x32xbf16>, vector<16x16x32xbf16>, vector<16x16x32xbf16>, vector<16x16x32xbf16> -> vector<16x16x288xbf16>
    %46 = vector.shape_cast %45 : vector<16x16x288xbf16> to vector<256x288xbf16>
    %cst_20 = arith.constant dense<0.000000e+00> : vector<256x64xf32>
    %47 = tpu.matmul %46, %29, %cst_20 {dimension_numbers = #tpu.dot_dimension_numbers<[1], [0], [0], [1], [0, 0, 1, 1], [], []>} : vector<256x288xbf16>, vector<288x64xbf16>, vector<256x64xf32> -> vector<256x64xf32>
    %48 = vector.broadcast %30 : vector<1x64xf32> to vector<256x64xf32>
    %49 = arith.mulf %47, %48 : vector<256x64xf32>
    %50 = vector.broadcast %31 : vector<1x64xf32> to vector<256x64xf32>
    %51 = arith.addf %49, %50 : vector<256x64xf32>
    %cst_21 = arith.constant 0.000000e+00 : f32
    %52 = vector.broadcast %cst_21 : f32 to vector<256x64xf32>
    %53 = arith.maximumf %51, %52 : vector<256x64xf32>
    %54 = vector.shape_cast %53 : vector<256x64xf32> to vector<16x16x64xf32>
    %55 = vector.shape_cast %54 : vector<16x16x64xf32> to vector<8x2x8x2x64xf32>
    %cst_22 = arith.constant dense<0xFF800000> : vector<8x8x64xf32>
    %56 = vector.multi_reduction <maximumf>, %55, %cst_22 [1, 3] : vector<8x2x8x2x64xf32> to vector<8x8x64xf32>
    %57 = arith.truncf %56 : vector<8x8x64xf32> to vector<8x8x64xbf16>
    %c0_23 = arith.constant 0 : index
    %c0_24 = arith.constant 0 : index
    %58 = vector.load %arg8[%c0_23, %c0_24] : memref<576x128xbf16, #tpu.memory_space<vmem>>, vector<576x128xbf16>
    %c0_25 = arith.constant 0 : index
    %c0_26 = arith.constant 0 : index
    %59 = vector.load %arg9[%c0_25, %c0_26] : memref<1x128xf32, #tpu.memory_space<vmem>>, vector<1x128xf32>
    %c0_27 = arith.constant 0 : index
    %c0_28 = arith.constant 0 : index
    %60 = vector.load %arg10[%c0_27, %c0_28] : memref<1x128xf32, #tpu.memory_space<vmem>>, vector<1x128xf32>
    %cst_29 = arith.constant 0.000000e+00 : bf16
    %61 = vector.broadcast %cst_29 : bf16 to vector<1x8x64xbf16>
    %62 = tpu.concatenate %61, %57, %61 in 0 : vector<1x8x64xbf16>, vector<8x8x64xbf16>, vector<1x8x64xbf16> -> vector<10x8x64xbf16>
    %cst_30 = arith.constant 0.000000e+00 : bf16
    %63 = vector.broadcast %cst_30 : bf16 to vector<10x1x64xbf16>
    %64 = tpu.concatenate %63, %62, %63 in 1 : vector<10x1x64xbf16>, vector<10x8x64xbf16>, vector<10x1x64xbf16> -> vector<10x10x64xbf16>
    %65 = vector.extract_strided_slice %64 {offsets = [0, 0, 0], sizes = [8, 8, 64], strides = [1, 1, 1]} : vector<10x10x64xbf16> to vector<8x8x64xbf16>
    %66 = vector.extract_strided_slice %64 {offsets = [0, 1, 0], sizes = [8, 8, 64], strides = [1, 1, 1]} : vector<10x10x64xbf16> to vector<8x8x64xbf16>
    %67 = vector.extract_strided_slice %64 {offsets = [0, 2, 0], sizes = [8, 8, 64], strides = [1, 1, 1]} : vector<10x10x64xbf16> to vector<8x8x64xbf16>
    %68 = vector.extract_strided_slice %64 {offsets = [1, 0, 0], sizes = [8, 8, 64], strides = [1, 1, 1]} : vector<10x10x64xbf16> to vector<8x8x64xbf16>
    %69 = vector.extract_strided_slice %64 {offsets = [1, 1, 0], sizes = [8, 8, 64], strides = [1, 1, 1]} : vector<10x10x64xbf16> to vector<8x8x64xbf16>
    %70 = vector.extract_strided_slice %64 {offsets = [1, 2, 0], sizes = [8, 8, 64], strides = [1, 1, 1]} : vector<10x10x64xbf16> to vector<8x8x64xbf16>
    %71 = vector.extract_strided_slice %64 {offsets = [2, 0, 0], sizes = [8, 8, 64], strides = [1, 1, 1]} : vector<10x10x64xbf16> to vector<8x8x64xbf16>
    %72 = vector.extract_strided_slice %64 {offsets = [2, 1, 0], sizes = [8, 8, 64], strides = [1, 1, 1]} : vector<10x10x64xbf16> to vector<8x8x64xbf16>
    %73 = vector.extract_strided_slice %64 {offsets = [2, 2, 0], sizes = [8, 8, 64], strides = [1, 1, 1]} : vector<10x10x64xbf16> to vector<8x8x64xbf16>
    %74 = tpu.concatenate %65, %66, %67, %68, %69, %70, %71, %72, %73 in 2 : vector<8x8x64xbf16>, vector<8x8x64xbf16>, vector<8x8x64xbf16>, vector<8x8x64xbf16>, vector<8x8x64xbf16>, vector<8x8x64xbf16>, vector<8x8x64xbf16>, vector<8x8x64xbf16>, vector<8x8x64xbf16> -> vector<8x8x576xbf16>
    %75 = vector.shape_cast %74 : vector<8x8x576xbf16> to vector<64x576xbf16>
    %cst_31 = arith.constant dense<0.000000e+00> : vector<64x128xf32>
    %76 = tpu.matmul %75, %58, %cst_31 {dimension_numbers = #tpu.dot_dimension_numbers<[1], [0], [0], [1], [0, 0, 1, 1], [], []>} : vector<64x576xbf16>, vector<576x128xbf16>, vector<64x128xf32> -> vector<64x128xf32>
    %77 = vector.broadcast %59 : vector<1x128xf32> to vector<64x128xf32>
    %78 = arith.mulf %76, %77 : vector<64x128xf32>
    %79 = vector.broadcast %60 : vector<1x128xf32> to vector<64x128xf32>
    %80 = arith.addf %78, %79 : vector<64x128xf32>
    %cst_32 = arith.constant 0.000000e+00 : f32
    %81 = vector.broadcast %cst_32 : f32 to vector<64x128xf32>
    %82 = arith.maximumf %80, %81 : vector<64x128xf32>
    %83 = vector.shape_cast %82 : vector<64x128xf32> to vector<8x8x128xf32>
    %84 = arith.truncf %83 : vector<8x8x128xf32> to vector<8x8x128xbf16>
    %c0_33 = arith.constant 0 : index
    %c0_34 = arith.constant 0 : index
    %85 = vector.load %arg11[%c0_33, %c0_34] : memref<1152x128xbf16, #tpu.memory_space<vmem>>, vector<1152x128xbf16>
    %c0_35 = arith.constant 0 : index
    %c0_36 = arith.constant 0 : index
    %86 = vector.load %arg12[%c0_35, %c0_36] : memref<1x128xf32, #tpu.memory_space<vmem>>, vector<1x128xf32>
    %c0_37 = arith.constant 0 : index
    %c0_38 = arith.constant 0 : index
    %87 = vector.load %arg13[%c0_37, %c0_38] : memref<1x128xf32, #tpu.memory_space<vmem>>, vector<1x128xf32>
    %cst_39 = arith.constant 0.000000e+00 : bf16
    %88 = vector.broadcast %cst_39 : bf16 to vector<1x8x128xbf16>
    %89 = tpu.concatenate %88, %84, %88 in 0 : vector<1x8x128xbf16>, vector<8x8x128xbf16>, vector<1x8x128xbf16> -> vector<10x8x128xbf16>
    %cst_40 = arith.constant 0.000000e+00 : bf16
    %90 = vector.broadcast %cst_40 : bf16 to vector<10x1x128xbf16>
    %91 = tpu.concatenate %90, %89, %90 in 1 : vector<10x1x128xbf16>, vector<10x8x128xbf16>, vector<10x1x128xbf16> -> vector<10x10x128xbf16>
    %92 = vector.extract_strided_slice %91 {offsets = [0, 0, 0], sizes = [8, 8, 128], strides = [1, 1, 1]} : vector<10x10x128xbf16> to vector<8x8x128xbf16>
    %93 = vector.extract_strided_slice %91 {offsets = [0, 1, 0], sizes = [8, 8, 128], strides = [1, 1, 1]} : vector<10x10x128xbf16> to vector<8x8x128xbf16>
    %94 = vector.extract_strided_slice %91 {offsets = [0, 2, 0], sizes = [8, 8, 128], strides = [1, 1, 1]} : vector<10x10x128xbf16> to vector<8x8x128xbf16>
    %95 = vector.extract_strided_slice %91 {offsets = [1, 0, 0], sizes = [8, 8, 128], strides = [1, 1, 1]} : vector<10x10x128xbf16> to vector<8x8x128xbf16>
    %96 = vector.extract_strided_slice %91 {offsets = [1, 1, 0], sizes = [8, 8, 128], strides = [1, 1, 1]} : vector<10x10x128xbf16> to vector<8x8x128xbf16>
    %97 = vector.extract_strided_slice %91 {offsets = [1, 2, 0], sizes = [8, 8, 128], strides = [1, 1, 1]} : vector<10x10x128xbf16> to vector<8x8x128xbf16>
    %98 = vector.extract_strided_slice %91 {offsets = [2, 0, 0], sizes = [8, 8, 128], strides = [1, 1, 1]} : vector<10x10x128xbf16> to vector<8x8x128xbf16>
    %99 = vector.extract_strided_slice %91 {offsets = [2, 1, 0], sizes = [8, 8, 128], strides = [1, 1, 1]} : vector<10x10x128xbf16> to vector<8x8x128xbf16>
    %100 = vector.extract_strided_slice %91 {offsets = [2, 2, 0], sizes = [8, 8, 128], strides = [1, 1, 1]} : vector<10x10x128xbf16> to vector<8x8x128xbf16>
    %101 = tpu.concatenate %92, %93, %94, %95, %96, %97, %98, %99, %100 in 2 : vector<8x8x128xbf16>, vector<8x8x128xbf16>, vector<8x8x128xbf16>, vector<8x8x128xbf16>, vector<8x8x128xbf16>, vector<8x8x128xbf16>, vector<8x8x128xbf16>, vector<8x8x128xbf16>, vector<8x8x128xbf16> -> vector<8x8x1152xbf16>
    %102 = vector.shape_cast %101 : vector<8x8x1152xbf16> to vector<64x1152xbf16>
    %cst_41 = arith.constant dense<0.000000e+00> : vector<64x128xf32>
    %103 = tpu.matmul %102, %85, %cst_41 {dimension_numbers = #tpu.dot_dimension_numbers<[1], [0], [0], [1], [0, 0, 1, 1], [], []>} : vector<64x1152xbf16>, vector<1152x128xbf16>, vector<64x128xf32> -> vector<64x128xf32>
    %104 = vector.broadcast %86 : vector<1x128xf32> to vector<64x128xf32>
    %105 = arith.mulf %103, %104 : vector<64x128xf32>
    %106 = vector.broadcast %87 : vector<1x128xf32> to vector<64x128xf32>
    %107 = arith.addf %105, %106 : vector<64x128xf32>
    %cst_42 = arith.constant 0.000000e+00 : f32
    %108 = vector.broadcast %cst_42 : f32 to vector<64x128xf32>
    %109 = arith.maximumf %107, %108 : vector<64x128xf32>
    %110 = vector.shape_cast %109 : vector<64x128xf32> to vector<8x8x128xf32>
    %111 = vector.shape_cast %110 : vector<8x8x128xf32> to vector<1x8x8x128xf32>
    %c0_43 = arith.constant 0 : index
    %c0_44 = arith.constant 0 : index
    %c0_45 = arith.constant 0 : index
    %c0_46 = arith.constant 0 : index
    %112 = vector.load %arg14[%c0_43, %c0_44, %c0_45, %c0_46] : memref<1x8x8x128xf32, #tpu.memory_space<vmem>>, vector<1x8x8x128xf32>
    tpu.vector_store %arg14[%c0_43, %c0_44, %c0_45, %c0_46], %111 {strides = array<i32>} : memref<1x8x8x128xf32, #tpu.memory_space<vmem>>, vector<1x8x8x128xf32>,
    return
  }
  func.func @transform_0(%arg0: i32) -> (i32, i32, i32, i32) {
    %c0_i32 = arith.constant 0 : i32
    %c0_i32_0 = arith.constant 0 : i32
    %c0_i32_1 = arith.constant 0 : i32
    %c0_i32_2 = arith.constant 0 : i32
    return %arg0, %c0_i32, %c0_i32_0, %c0_i32_1 : i32, i32, i32, i32
  }
  func.func @transform_1(%arg0: i32) -> (i32, i32) {
    %c0_i32 = arith.constant 0 : i32
    %c0_i32_0 = arith.constant 0 : i32
    %c0_i32_1 = arith.constant 0 : i32
    return %c0_i32, %c0_i32_0 : i32, i32
  }
  func.func @transform_2(%arg0: i32) -> (i32, i32) {
    %c0_i32 = arith.constant 0 : i32
    %c0_i32_0 = arith.constant 0 : i32
    %c0_i32_1 = arith.constant 0 : i32
    return %c0_i32, %c0_i32_0 : i32, i32
  }
  func.func @transform_3(%arg0: i32) -> (i32, i32) {
    %c0_i32 = arith.constant 0 : i32
    %c0_i32_0 = arith.constant 0 : i32
    %c0_i32_1 = arith.constant 0 : i32
    return %c0_i32, %c0_i32_0 : i32, i32
  }
  func.func @transform_4(%arg0: i32) -> (i32, i32) {
    %c0_i32 = arith.constant 0 : i32
    %c0_i32_0 = arith.constant 0 : i32
    %c0_i32_1 = arith.constant 0 : i32
    return %c0_i32, %c0_i32_0 : i32, i32
  }
  func.func @transform_5(%arg0: i32) -> (i32, i32) {
    %c0_i32 = arith.constant 0 : i32
    %c0_i32_0 = arith.constant 0 : i32
    %c0_i32_1 = arith.constant 0 : i32
    return %c0_i32, %c0_i32_0 : i32, i32
  }
  func.func @transform_6(%arg0: i32) -> (i32, i32) {
    %c0_i32 = arith.constant 0 : i32
    %c0_i32_0 = arith.constant 0 : i32
    %c0_i32_1 = arith.constant 0 : i32
    return %c0_i32, %c0_i32_0 : i32, i32
  }
  func.func @transform_7(%arg0: i32) -> (i32, i32) {
    %c0_i32 = arith.constant 0 : i32
    %c0_i32_0 = arith.constant 0 : i32
    %c0_i32_1 = arith.constant 0 : i32
    return %c0_i32, %c0_i32_0 : i32, i32
  }
  func.func @transform_8(%arg0: i32) -> (i32, i32) {
    %c0_i32 = arith.constant 0 : i32
    %c0_i32_0 = arith.constant 0 : i32
    %c0_i32_1 = arith.constant 0 : i32
    return %c0_i32, %c0_i32_0 : i32, i32
  }
  func.func @transform_9(%arg0: i32) -> (i32, i32) {
    %c0_i32 = arith.constant 0 : i32
    %c0_i32_0 = arith.constant 0 : i32
    %c0_i32_1 = arith.constant 0 : i32
    return %c0_i32, %c0_i32_0 : i32, i32
  }
  func.func @transform_10(%arg0: i32) -> (i32, i32) {
    %c0_i32 = arith.constant 0 : i32
    %c0_i32_0 = arith.constant 0 : i32
    %c0_i32_1 = arith.constant 0 : i32
    return %c0_i32, %c0_i32_0 : i32, i32
  }
  func.func @transform_11(%arg0: i32) -> (i32, i32) {
    %c0_i32 = arith.constant 0 : i32
    %c0_i32_0 = arith.constant 0 : i32
    %c0_i32_1 = arith.constant 0 : i32
    return %c0_i32, %c0_i32_0 : i32, i32
  }
  func.func @transform_12(%arg0: i32) -> (i32, i32) {
    %c0_i32 = arith.constant 0 : i32
    %c0_i32_0 = arith.constant 0 : i32
    %c0_i32_1 = arith.constant 0 : i32
    return %c0_i32, %c0_i32_0 : i32, i32
  }
  func.func @transform_13(%arg0: i32) -> (i32, i32, i32, i32) {
    %c0_i32 = arith.constant 0 : i32
    %c0_i32_0 = arith.constant 0 : i32
    %c0_i32_1 = arith.constant 0 : i32
    %c0_i32_2 = arith.constant 0 : i32
    return %arg0, %c0_i32, %c0_i32_0, %c0_i32_1 : i32, i32, i32, i32
  }
}

</mosaic_0001>

<bundles_post_ra>
// kernel: input_cnn_forward.1
= control target key start
LH: loop header
LB: loop body
LE: loop exit
PB: predicated region body
PF: predicated region fallthrough
CT: control target
= control target key end

     0   :  { %s11187_s0 = inlined_call_operand.vmem [shape: bf16[2,16,16,4], index: 0, kind: input, shape index: {}]   ;;  %s11188_s1 = inlined_call_operand.vmem [shape: bf16[36,32], index: 1, kind: input, shape index: {}]   ;;  %s11189_s2 = inlined_call_operand.vmem [shape: f32[1,32], index: 2, kind: input, shape index: {}]   ;;  %s11190_s3 = inlined_call_operand.vmem [shape: f32[1,32], index: 3, kind: input, shape index: {}]   ;;  %s11191_s4 = inlined_call_operand.vmem [shape: bf16[288,64], index: 4, kind: input, shape index: {}]   ;;  %s11192_s5 = inlined_call_operand.vmem [shape: f32[1,64], index: 5, kind: input, shape index: {}]   ;;  %s11193_s6 = inlined_call_operand.vmem [shape: f32[1,64], index: 6, kind: input, shape index: {}]   ;;  %s11194_s7 = inlined_call_operand.vmem [shape: bf16[576,128], index: 7, kind: input, shape index: {}]   ;;  %s11195_s8 = inlined_call_operand.vmem [shape: f32[1,128], index: 8, kind: input, shape index: {}]   ;;  %s11196_s9 = inlined_call_operand.vmem [shape: f32[1,128], index: 9, kind: input, shape index: {}]   ;;  %s11197_s10 = inlined_call_operand.vmem [shape: bf16[1152,128], index: 10, kind: input, shape index: {}]   ;;  %s11198_s11 = inlined_call_operand.vmem [shape: f32[1,128], index: 11, kind: input, shape index: {}]   ;;  %s11199_s12 = inlined_call_operand.vmem [shape: f32[1,128], index: 12, kind: input, shape index: {}]   ;;  %s11200_s13 = inlined_call_operand.hbm [shape: f32[2,8,8,128], index: 13, kind: output, shape index: {}]  }
   0x1   :  { %11221 = sst [smem:[#allocation14_spill]] %s11187_s0 }
   0x2   :  { %11222 = sst [smem:[#allocation15_spill]] %s11188_s1 }
   0x3   :  { %11223 = sst [smem:[#allocation16_spill]] %s11189_s2 }
   0x4   :  { %11224 = sst [smem:[#allocation17_spill]] %s11190_s3 }
   0x5   :  { %18 = vsyncpa [#allocation3], 0 }
   0x6   :  { %20 = vsyncpa [#allocation3 + $0x1], 0  ;;  %s8232_s25 = smov 0   ;;  %s8234_s26 = smov 0  }
   0x7   :  { %s8236_s27 = smov 0   ;;  %s8238_s28 = smov 0  }
   0x8 LB: > { %s8253_s29 = sadd.s32 4294967295, %s8146_s28   ;;  %s7112_s30 = sadd.s32 4294967294, %s8146_s28   ;;  %s8146_s28 = sphi %s8238_s28, %s11272_s28   ;;  %s8142_s27 = sphi %s8236_s27, %s11271_s27   ;;  %s8138_s26 = sphi %s8234_s26, %s11270_s26   ;;  %s8134_s25 = sphi %s8232_s25, %s11269_s25  }
   0x9   : > { %s8257_s14 = sadd.s32 1, %s8146_s28   ;;  %s311_s15 = sadd.s32 1, %s8142_s27 }
   0xa   : > { %s308_s16 = ssub.s32 %s8146_s28, %s8257_s14  ;;  %p321_p0 = scmp.ne.s32.totalorder %s8142_s27, %s8138_s26 }
   0xb   : > { %p309_p1 = scmp.eq.s32.totalorder %s308_s16, 0  ;;  %p322_p2 = scmp.eq.s32.totalorder %s8253_s29, 1 }
   0xc   : > { %p327_p3 = scmp.ne.s32.totalorder %s8138_s26, %s8134_s25  ;;  %p328_p4 = scmp.eq.s32.totalorder %s7112_s30, 1 }
   0xd   : > { %s8268_s17 = scalar_select %p309_p1, %s8142_s27, %s311_s15  }
   0xe   : > { %p8270_p5 = por %p322_p2, %p321_p0  ;;  %p8274_p6 = por %p328_p4, %p327_p3 }
   0xf   : > { %p7115_p7 = scmp.ge.s32.totalorder %s8146_s28, 1  ;;  %p390_p8 = scmp.lt.s32.totalorder %s8146_s28, 3 }
  0x11   : > { %p391_p9 = pnand %p7115_p7, %p390_p8 }
  0x13   : > { %394 = sbr.rel (%p391_p9) target bundleno = 1731 (0x6c3), region = 72 }
  0x18   : > { %vm712_vm0 = vcmask 1040384   ;;  %vm713_vm1 = vsmask.f32 256  ;;  %v8148_v0 = vmov 0   ;;  %p434_p10 = scmp.lt.s32.totalorder %s8253_s29, 1  ;;  %vm1006_vm3 = vcmask 1046528  }
  0x19   : > { %v562_v1 = vrot.slane %v8148_v0, 7  ;;  %vm8280_vm2 = vmand %vm712_vm0, %vm713_vm1  ;;  %vm749_vm4 = vsmask.f32 7424  ;;  %s11229_s0 = sld [smem:[#allocation14_spill]]  ;;  %s11211_s30 = smov 8   ;;  %vm1608_vm5 = vcmask 1041408  }
  0x1a   : > { %s435_s20 = scalar_select %p434_p10, %s8253_s29, 1  ;;  %vm1296_vm6 = vcmask 31744   ;;  %vm1329_vm7 = vcmask 64512   ;;  %vm1362_vm8 = vcmask 97280   ;;  %vm1395_vm9 = vcmask 130048  }
  0x1b   : > { %v8287_v3 = vsel %vm8280_vm2, 0, %v562_v1  ;;  %v732_v4 = vsel %vm8280_vm2, %v562_v1, 0  ;;  %s8150_s15 = smov 4   ;;  %s11209_s16 = smov 12   ;;  %vm1428_vm10 = vcmask 162816   ;;  %vm1461_vm11 = vcmask 195584  }
  0x1c   : > { %v1007_v5 = vrot.slane %v8287_v3, 1  ;;  %v1008_v6 = vrot.slane %v732_v4, 1  ;;  %v751_v7 = vshrl.u32 %v8287_v3, 16  ;;  %v753_v8 = vshll.u32 %v8287_v3, 16  ;;  %s7357_s21 = sshll.u32 %s435_s20, 7  ;;  %s11201_s20 = smov 24  }
  0x1d   : > { %v758_v9 = vshll.u32 %v732_v4, 16  ;;  %s11205_s22 = smov 16   ;;  %s11207_s23 = smov 28   ;;  %vm1494_vm12 = vcmask 228352   ;;  %vm1527_vm13 = vcmask 261120   ;;  %vm1575_vm14 = vcmask 293888  }
  0x1e   : > { %v8296_v10 = vsel %vm1006_vm3, %v1007_v5, %v1008_v6  ;;  %v755_v11 = vrot.slane %v753_v8, 1  ;;  %s11230_s1 = sld [smem:[#allocation15_spill]]  ;;  %vm2607_vm15 = vcmask 523264   ;;  %vm2640_vm0 = vcmask 785408  }
  0x1f   : > { %s8301_s24 = scalar_lea.vmem %s11229_s0, %s7357_s21  ;;  %1055 = vrot.lane.b32.xlu1 %v8296_v10, %s11211_s30  ;;  %v760_v12 = vrot.slane %v758_v9, 1  ;;  %s11203_s21 = smov 20   ;;  %vm4107_vm1 = vcmask 517120  }
  0x20   : > { %v7935_v13 = vld [vmem:[%s8301_s24 + $0x8] sm:$0xff]   ;;  %v756_v14 = vor.u32 %v755_v11, %v751_v7  ;;  %v7936_v15 = vld [vmem:[%s8301_s24] sm:$0xff]   ;;  %v7937_v21 = vld [vmem:[%s8301_s24 + $0x10] sm:$0xff]   ;;  %s11236_s0 = smov 8   ;;  %s11237_s2 = sld [smem:[#allocation16_spill]] }
  0x21   : > { %v574_v16 = vshrl.u32 %v7935_v13, 16  ;;  %v577_v17 = vshll.u32 %v7935_v13, 16  ;;  %v567_v19 = vshrl.u32 %v7936_v15, 16  ;;  %v570_v20 = vshll.u32 %v7936_v15, 16  ;;  %v7938_v52 = vld [vmem:[%s8301_s24 + $0x18] sm:$0xff]   ;;  %v7939_v5 = vld [vmem:[%s8301_s24 + $0x20] sm:$0xff]  }
  0x22   : > { %v8308_v18 = vsel %vm749_vm4, %v756_v14, %v760_v12  ;;  %v581_v24 = vshrl.u32 %v7937_v21, 16  ;;  %v584_v25 = vshll.u32 %v7937_v21, 16  ;;  %v588_v60 = vshrl.u32 %v7938_v52, 16  ;;  %s11238_s3 = sld [smem:[#allocation17_spill]] }
  0x23   : > { %942 = vrot.lane.b32.xlu0 %v8308_v18, %s8150_s15  ;;  %v576_v22 = vrot.slane %v574_v16, 7  ;;  %v569_v23 = vrot.slane %v567_v19, 7  ;;  %v591_v1 = vshll.u32 %v7938_v52, 16  ;;  %v595_v7 = vshrl.u32 %v7939_v5, 16 }
  0x24   : > { %v583_v28 = vrot.slane %v581_v24, 7  ;;  %v590_v0 = vrot.slane %v588_v60, 7  ;;  %v7944_v12 = vld [vmem:[%s11230_s1 + $0x10] ss:$0 sps:$4 sm:$0x33]   ;;  %v7946_v19 = vld [vmem:[%s11230_s1 + $0x8] sm:$0xff]  }
  0x25   : > { %v579_v26 = vor.u32 %v577_v17, %v576_v22  ;;  %v572_v27 = vor.u32 %v570_v20, %v569_v23  ;;  %v733_v29 = vsel %vm8280_vm2, %v569_v23, 0  ;;  %v734_v35 = vsel %vm8280_vm2, %v576_v22, 0  ;;  %7882 = vmatprep.subr.msk.bf16.mxu0 %vm1608_vm5, %v7944_v12 }
  0x26   : > { %v586_v32 = vor.u32 %v584_v25, %v583_v28  ;;  %v1011_v34 = vrot.slane %v733_v29, 1  ;;  %v770_v39 = vshll.u32 %v733_v29, 16  ;;  %v1014_v43 = vrot.slane %v734_v35, 1  ;;  %v7947_v25 = vld [vmem:[%s11230_s1] sm:$0xff]   ;;  %s431_s1 = sand.u32 1, %s8138_s26  }
  0x27   : > { %v8317_v30 = vsel %vm8280_vm2, 0, %v579_v26  ;;  %v8323_v31 = vsel %vm8280_vm2, 0, %v572_v27  ;;  %v782_v44 = vshll.u32 %v734_v35, 16  ;;  %v735_v51 = vsel %vm8280_vm2, %v583_v28, 0 }
  0x28   : > { %1090 = vrot.lane.b32.xlu1 %v8317_v30, %s11209_s16  ;;  %1088 = vrot.lane.b32.xlu0 %v8323_v31, %s11209_s16  ;;  %v1010_v33 = vrot.slane %v8323_v31, 1  ;;  %v765_v36 = vshll.u32 %v8323_v31, 16  ;;  %v8333_v37 = vsel %vm8280_vm2, 0, %v586_v32  ;;  %v763_v38 = vshrl.u32 %v8323_v31, 16  ;;  %s11231_s16 = smov 12  }
  0x29   : > { %v777_v40 = vshll.u32 %v8317_v30, 16  ;;  %v1013_v42 = vrot.slane %v8317_v30, 1  ;;  %v775_v46 = vshrl.u32 %v8317_v30, 16  ;;  %v789_v48 = vshll.u32 %v8333_v37, 16 }
  0x2a   : > { %v767_v41 = vrot.slane %v765_v36, 1  ;;  %v1012_v45 = vsel %vm1006_vm3, %v1010_v33, %v1011_v34  ;;  %v772_v50 = vrot.slane %v770_v39, 1  ;;  %v784_v54 = vrot.slane %v782_v44, 1  ;;  %v7940_v36 = vld [vmem:[%s8301_s24 + $0x28] sm:$0xff]  }
  0x2b   : > { %v779_v47 = vrot.slane %v777_v40, 1  ;;  %v1015_v53 = vsel %vm1006_vm3, %v1013_v42, %v1014_v43  ;;  %v787_v56 = vshrl.u32 %v8333_v37, 16  ;;  %v791_v57 = vrot.slane %v789_v48, 1  ;;  %v7941_v43 = vld [vmem:[%s8301_s24 + $0x30] sm:$0xff]  }
  0x2c   : > { %1202 = vrot.lane.b32.xlu1 %v8333_v37, %s11201_s20  ;;  %1200 = vrot.lane.b32.xlu0 %v8317_v30, %s11201_s20  ;;  %v768_v49 = vor.u32 %v767_v41, %v763_v38  ;;  %v794_v58 = vshll.u32 %v735_v51, 16  ;;  %v593_v6 = vor.u32 %v591_v1, %v590_v0  ;;  %v1016_v8 = vrot.slane %v8333_v37, 1  ;;  %s11233_s20 = smov 20  }
  0x2d   : > { %v780_v55 = vor.u32 %v779_v47, %v775_v46  ;;  %v792_v62 = vor.u32 %v791_v57, %v787_v56  ;;  %v1017_v9 = vrot.slane %v735_v51, 1  ;;  %v736_v13 = vsel %vm8280_vm2, %v590_v0, 0  ;;  %v7942_v46 = vld [vmem:[%s8301_s24 + $0x38] sm:$0xff]  }
  0x2e   : > { %v773_v59 = vsel %vm749_vm4, %v768_v49, %v772_v50  ;;  %v796_v63 = vrot.slane %v794_v58, 1  ;;  %v8365_v11 = vsel %vm8280_vm2, 0, %v593_v6  ;;  %v597_v15 = vrot.slane %v595_v7, 7 }
  0x2f   : > { %v785_v61 = vsel %vm749_vm4, %v780_v55, %v784_v54  ;;  %v801_v14 = vshll.u32 %v8365_v11, 16  ;;  %v1018_v16 = vsel %vm1006_vm3, %v1016_v8, %v1017_v9  ;;  %v598_v17 = vshll.u32 %v7939_v5, 16 }
  0x30   : > { %1057 = vrot.lane.b32.xlu1 %v1012_v45, %s11211_s30  ;;  %1168 = vrot.lane.b32.xlu0 %v1012_v45, %s11203_s21  ;;  %v797_v4 = vsel %vm749_vm4, %v792_v62, %v796_v63  ;;  %v806_v20 = vshll.u32 %v736_v13, 16  ;;  %v1610_v21 = vsel %vm1608_vm5, %v7944_v12, 0  ;;  %v799_v22 = vshrl.u32 %v8365_v11, 16 }
  0x31   : > { %v803_v23 = vrot.slane %v801_v14, 1  ;;  %7769 = vmatpush3.bf16.msra.mxu0 %v1610_v21  ;;  %v600_v24 = vor.u32 %v598_v17, %v597_v15  ;;  %v1020_v29 = vrot.slane %v736_v13, 1  ;;  %v1019_v33 = vrot.slane %v8365_v11, 1  ;;  %v7943_v17 = vld [vmem:[%s8301_s24 + $0x40] sm:$0xff]  }
  0x32   : > { %7770 = vmatprep.subr.bf16.mxu0 %v7946_v19  ;;  %v808_v27 = vrot.slane %v806_v20, 1  ;;  %v737_v35 = vsel %vm8280_vm2, %v597_v15, 0  ;;  %v602_v42 = vshrl.u32 %v7940_v36, 16  ;;  %v605_v48 = vshll.u32 %v7940_v36, 16 }
  0x33   : > { %v804_v26 = vor.u32 %v803_v23, %v799_v22  ;;  %v8389_v28 = vsel %vm8280_vm2, 0, %v600_v24  ;;  %v1021_v38 = vsel %vm1006_vm3, %v1019_v33, %v1020_v29  ;;  %v818_v41 = vshll.u32 %v737_v35, 16  ;;  %v7945_v29 = vld [vmem:[%s8301_s24 + $0x48] sm:$0xff]  }
  0x34   : > { %1170 = vrot.lane.b32.xlu1 %v1015_v53, %s11203_s21  ;;  %944 = vrot.lane.b32.xlu0 %v773_v59, %s8150_s15  ;;  %v813_v34 = vshll.u32 %v8389_v28, 16  ;;  %v811_v39 = vshrl.u32 %v8389_v28, 16  ;;  %v604_v47 = vrot.slane %v602_v42, 7  ;;  %s11234_s21 = smov 24   ;;  %v1022_v49 = vrot.slane %v8389_v28, 1 }
  0x35   : > { %7771 = vmatpush3.bf16.msra.mxu0 %v7946_v19  ;;  %v809_v32 = vsel %vm749_vm4, %v804_v26, %v808_v27  ;;  %v820_v45 = vrot.slane %v818_v41, 1  ;;  %v1023_v50 = vrot.slane %v737_v35, 1  ;;  %v609_v52 = vshrl.u32 %v7941_v43, 16 }
  0x36   : > { %7772 = vmatprep.subr.bf16.mxu0 %v7947_v25  ;;  %v815_v40 = vrot.slane %v813_v34, 1  ;;  %v738_v51 = vsel %vm8280_vm2, %v604_v47, 0  ;;  %v607_v54 = vor.u32 %v605_v48, %v604_v47  ;;  %v612_v55 = vshll.u32 %v7941_v43, 16 }
  0x37   : > { %v616_v56 = vshrl.u32 %v7942_v46, 16  ;;  %v1024_v57 = vsel %vm1006_vm3, %v1022_v49, %v1023_v50  ;;  %v619_v63 = vshll.u32 %v7942_v46, 16  ;;  %v1026_v12 = vrot.slane %v738_v51, 1 }
  0x38   : > { %1134 = vrot.lane.b32.xlu1 %v785_v61, %s11205_s22  ;;  %1132 = vrot.lane.b32.xlu0 %v773_v59, %s11205_s22  ;;  %s11213_s22 = smov 32   ;;  %v816_v44 = vor.u32 %v815_v40, %v811_v39  ;;  %v8422_v58 = vsel %vm8280_vm2, 0, %v607_v54  ;;  %v830_v59 = vshll.u32 %v738_v51, 16  ;;  %v626_v40 = vshll.u32 %v7943_v17, 16 }
  0x39   : > { %7773 = vmatpush3.bf16.msra.mxu0 %v7947_v25  ;;  %v825_v60 = vshll.u32 %v8422_v58, 16  ;;  %v618_v62 = vrot.slane %v616_v56, 7  ;;  %v823_v0 = vshrl.u32 %v8422_v58, 16  ;;  %v1025_v14 = vrot.slane %v8422_v58, 1 }
  0x3a   : > { %v832_v6 = vrot.slane %v830_v59, 1  ;;  %v623_v25 = vshrl.u32 %v7943_v17, 16  ;;  %v630_v43 = vshrl.u32 %v7945_v29, 16  ;;  %v633_v47 = vshll.u32 %v7945_v29, 16 }
  0x3b   : > { %v827_v1 = vrot.slane %v825_v60, 1  ;;  %v621_v9 = vor.u32 %v619_v63, %v618_v62  ;;  %v8452_v20 = vsel %vm8280_vm2, %v618_v62, 0  ;;  %v1027_v21 = vsel %vm1006_vm3, %v1025_v14, %v1026_v12 }
  0x3c   : > { %1234 = vrot.lane.b32.xlu1 %v797_v4, %s11207_s23  ;;  %1232 = vrot.lane.b32.xlu0 %v785_v61, %s11207_s23  ;;  %s11232_s23 = smov 16   ;;  %v854_v24 = vshll.u32 %v8452_v20, 16  ;;  %v625_v39 = vrot.slane %v623_v25, 7  ;;  %v1032_v42 = vrot.slane %v8452_v20, 1  ;;  %v632_v49 = vrot.slane %v630_v43, 7 }
  0x3d   : > { %v828_v5 = vor.u32 %v827_v1, %v823_v0  ;;  %v8448_v19 = vsel %vm8280_vm2, 0, %v621_v9 }
  0x3e   : > { %v847_v34 = vshrl.u32 %v8448_v19, 16  ;;  %v849_v35 = vshll.u32 %v8448_v19, 16  ;;  %v856_v36 = vrot.slane %v854_v24, 1  ;;  %v741_v46 = vsel %vm8280_vm2, %v625_v39, 0 }
  0x3f   : > { %v833_v13 = vsel %vm749_vm4, %v828_v5, %v832_v6  ;;  %v866_v51 = vshll.u32 %v741_v46, 16  ;;  %v635_v54 = vor.u32 %v633_v47, %v632_v49 }
  0x40   : > { %946 = vrot.lane.b32.xlu1 %v785_v61, %s8150_s15  ;;  %1264 = vrot.lane.b32.xlu0 %v1015_v53, %s11213_s22  ;;  %v611_v61 = vrot.slane %v609_v52, 7  ;;  %v851_v50 = vrot.slane %v849_v35, 1  ;;  %v7948_v52 = vld [vmem:[%s8301_s24 + $0x50] sm:$0xff]  }
  0x41   : > { %v8495_v59 = vsel %vm8280_vm2, 0, %v635_v54  ;;  %v868_v63 = vrot.slane %v866_v51, 1  ;;  %v640_v14 = vshll.u32 %v7948_v52, 16  ;;  %v7949_v54 = vld [vmem:[%s8301_s24 + $0x58] sm:$0xff]  }
  0x42   : > { %v739_v8 = vsel %vm8280_vm2, %v611_v61, 0  ;;  %v852_v56 = vor.u32 %v851_v50, %v847_v34  ;;  %v873_v5 = vshll.u32 %v8495_v59, 16 }
  0x43   : > { %v1029_v33 = vrot.slane %v739_v8, 1 }
  0x44   : > { %948 = vrot.lane.b32.xlu1 %v797_v4, %s8150_s15  ;;  %1266 = vrot.lane.b32.xlu0 %v1018_v16, %s11213_s22  ;;  %v857_v6 = vsel %vm749_vm4, %v852_v56, %v856_v36 }
  0x48   : > { %1061 = vrot.lane.b32.xlu1 %v1018_v16, %s11211_s30  ;;  %1059 = vrot.lane.b32.xlu0 %v1015_v53, %s11211_s30  ;;  %v821_v53 = vsel %vm749_vm4, %v816_v44, %v820_v45  ;;  %s11235_s30 = smov 28   ;;  %v628_v45 = vor.u32 %v626_v40, %v625_v39 }
  0x4a   : > { %v8481_v48 = vsel %vm8280_vm2, 0, %v628_v45  ;;  %v1037_v45 = vrot.slane %v8495_v59, 1 }
  0x4b   : > { %v859_v62 = vshrl.u32 %v8481_v48, 16  ;;  %v1034_v1 = vrot.slane %v8481_v48, 1 }
  0x4c   : > { %1094 = vrot.lane.b32.xlu1 %v8365_v11, %s11231_s16  ;;  %1092 = vrot.lane.b32.xlu0 %v8333_v37, %s11231_s16 }
  0x50   : > { %1138 = vrot.lane.b32.xlu1 %v809_v32, %s11232_s23  ;;  %1136 = vrot.lane.b32.xlu0 %v797_v4, %s11232_s23  ;;  %v614_v4 = vor.u32 %v612_v55, %v611_v61  ;;  %v8489_v55 = vsel %vm8280_vm2, %v632_v49, 0  ;;  %v637_v61 = vshrl.u32 %v7948_v52, 16 }
  0x51   : > { %v878_v60 = vshll.u32 %v8489_v55, 16 }
  0x52   : > { %v8434_v7 = vsel %vm8280_vm2, 0, %v614_v4  ;;  %v871_v4 = vshrl.u32 %v8495_v59, 16  ;;  %v639_v9 = vrot.slane %v637_v61, 7 }
  0x53   : > { %v837_v15 = vshll.u32 %v8434_v7, 16  ;;  %v835_v22 = vshrl.u32 %v8434_v7, 16 }
  0x54   : > { %1174 = vrot.lane.b32.xlu1 %v1021_v38, %s11233_s20  ;;  %1172 = vrot.lane.b32.xlu0 %v1018_v16, %s11233_s20  ;;  %v842_v16 = vshll.u32 %v739_v8, 16  ;;  %v880_v8 = vrot.slane %v878_v60, 1 }
  0x55   : > { %v839_v23 = vrot.slane %v837_v15, 1 }
  0x56   : > { %v844_v27 = vrot.slane %v842_v16, 1 }
  0x57   : > { %v840_v26 = vor.u32 %v839_v23, %v835_v22 }
  0x58   : > { %1206 = vrot.lane.b32.xlu1 %v8389_v28, %s11234_s21  ;;  %1204 = vrot.lane.b32.xlu0 %v8365_v11, %s11234_s21 }
  0x59   : > { %v845_v41 = vsel %vm749_vm4, %v840_v26, %v844_v27 }
  0x5c   : > { %1238 = vrot.lane.b32.xlu1 %v821_v53, %s11235_s30  ;;  %1236 = vrot.lane.b32.xlu0 %v809_v32, %s11235_s30 }
  0x60   : > { %1270 = vrot.lane.b32.xlu1 %v1024_v57, %s11213_s22  ;;  %1268 = vrot.lane.b32.xlu0 %v1021_v38, %s11213_s22 }
  0x64   : > { %952 = vrot.lane.b32.xlu1 %v821_v53, %s8150_s15  ;;  %950 = vrot.lane.b32.xlu0 %v809_v32, %s8150_s15  ;;  %v1028_v32 = vrot.slane %v8434_v7, 1 }
  0x66   : > { %v1030_v44 = vsel %vm1006_vm3, %v1028_v32, %v1029_v33  ;;  %v642_v32 = vor.u32 %v640_v14, %v639_v9 }
  0x68   : > { %1065 = vrot.lane.b32.xlu1 %v1024_v57, %s11236_s0  ;;  %1063 = vrot.lane.b32.xlu0 %v1021_v38, %s11236_s0  ;;  %v1031_v38 = vrot.slane %v8448_v19, 1 }
  0x6a   : > { %v1033_v12 = vsel %vm1006_vm3, %v1031_v38, %v1032_v42 }
  0x6c   : > { %1098 = vrot.lane.b32.xlu1 %v8422_v58, %s11231_s16  ;;  %1096 = vrot.lane.b32.xlu0 %v8389_v28, %s11231_s16 }
  0x70   : > { %1142 = vrot.lane.b32.xlu1 %v833_v13, %s11232_s23  ;;  %1140 = vrot.lane.b32.xlu0 %v821_v53, %s11232_s23  ;;  %v861_v53 = vshll.u32 %v8481_v48, 16 }
  0x72   : > { %v863_v0 = vrot.slane %v861_v53, 1  ;;  %v743_v53 = vsel %vm8280_vm2, %v639_v9, 0 }
  0x74   : > { %1178 = vrot.lane.b32.xlu1 %v1027_v21, %s11233_s20  ;;  %1176 = vrot.lane.b32.xlu0 %v1024_v57, %s11233_s20  ;;  %v1035_v57 = vrot.slane %v741_v46, 1  ;;  %v864_v17 = vor.u32 %v863_v0, %v859_v62  ;;  %v1038_v46 = vrot.slane %v8489_v55, 1 }
  0x76   : > { %v869_v20 = vsel %vm749_vm4, %v864_v17, %v868_v63  ;;  %v1036_v23 = vsel %vm1006_vm3, %v1034_v1, %v1035_v57  ;;  %v1039_v57 = vsel %vm1006_vm3, %v1037_v45, %v1038_v46  ;;  %v890_v63 = vshll.u32 %v743_v53, 16 }
  0x77   : > { %v644_v1 = vshrl.u32 %v7949_v54, 16 }
  0x78   : > { %1210 = vrot.lane.b32.xlu1 %v8434_v7, %s11234_s21  ;;  %1208 = vrot.lane.b32.xlu0 %v8422_v58, %s11234_s21 }
  0x79   : > { %v646_v14 = vrot.slane %v644_v1, 7 }
  0x7c   : > { %1242 = vrot.lane.b32.xlu1 %v845_v41, %s11235_s30  ;;  %1240 = vrot.lane.b32.xlu0 %v833_v13, %s11235_s30 }
  0x80   : > { %1274 = vrot.lane.b32.xlu1 %v1030_v44, %s11213_s22  ;;  %1272 = vrot.lane.b32.xlu0 %v1027_v21, %s11213_s22 }
  0x84   : > { %956 = vrot.lane.b32.xlu1 %v845_v41, %s8150_s15  ;;  %954 = vrot.lane.b32.xlu0 %v833_v13, %s8150_s15  ;;  %v875_v13 = vrot.slane %v873_v5, 1 }
  0x86   : > { %v876_v38 = vor.u32 %v875_v13, %v871_v4 }
  0x88   : > { %1069 = vrot.lane.b32.xlu1 %v1030_v44, %s11236_s0  ;;  %1067 = vrot.lane.b32.xlu0 %v1027_v21, %s11236_s0  ;;  %v881_v49 = vsel %vm749_vm4, %v876_v38, %v880_v8 }
  0x8c   : > { %1102 = vrot.lane.b32.xlu1 %v8448_v19, %s11231_s16  ;;  %1100 = vrot.lane.b32.xlu0 %v8434_v7, %s11231_s16 }
  0x90   : > { %1146 = vrot.lane.b32.xlu1 %v857_v6, %s11232_s23  ;;  %1144 = vrot.lane.b32.xlu0 %v845_v41, %s11232_s23  ;;  %v8534_v41 = vsel %vm8280_vm2, 0, %v642_v32 }
  0x91   : > { %v1056_v15 = vpop.permute.xlu1 %1055  ;;  %v885_v50 = vshll.u32 %v8534_v41, 16  ;;  %v883_v61 = vshrl.u32 %v8534_v41, 16 }
  0x93   : > { %v887_v62 = vrot.slane %v885_v50, 1 }
  0x94   : > { %1182 = vrot.lane.b32.xlu1 %v1033_v12, %s11233_s20  ;;  %1180 = vrot.lane.b32.xlu0 %v1030_v44, %s11233_s20 }
  0x95   : > { %v943_v16 = vpop.permute.xlu0 %942  ;;  %v888_v9 = vor.u32 %v887_v62, %v883_v61 }
  0x96   : > { %v1298_v33 = vsel %vm1296_vm6, %v8287_v3, %v943_v16 }
  0x97   : > { %v1331_v39 = vsel %vm1329_vm7, %v1298_v33, %v1056_v15  ;;  %v647_v15 = vshll.u32 %v7949_v54, 16 }
  0x98   : > { %1214 = vrot.lane.b32.xlu1 %v8481_v48, %s11234_s21  ;;  %1212 = vrot.lane.b32.xlu0 %v8448_v19, %s11234_s21 }
  0x9a   : > { %v1091_v21 = vpop.permute.xlu1 %1090  ;;  %v1089_v22 = vpop.permute.xlu0 %1088 }
  0x9b   : > { %v1364_v42 = vsel %vm1362_vm8, %v1331_v39, %v1089_v22  ;;  %v1040_v22 = vrot.slane %v8534_v41, 1  ;;  %v744_v39 = vsel %vm8280_vm2, %v646_v14, 0 }
  0x9c   : > { %1246 = vrot.lane.b32.xlu1 %v869_v20, %s11235_s30  ;;  %1244 = vrot.lane.b32.xlu0 %v857_v6, %s11235_s30  ;;  %v902_v45 = vshll.u32 %v744_v39, 16 }
  0x9e   : > { %v1203_v24 = vpop.permute.xlu1 %1202  ;;  %v1201_v25 = vpop.permute.xlu0 %1200 }
  0xa0   : > { %1278 = vrot.lane.b32.xlu1 %v1036_v23, %s11213_s22  ;;  %1276 = vrot.lane.b32.xlu0 %v1033_v12, %s11213_s22 }
  0xa2   : > { %v1058_v26 = vpop.permute.xlu1 %1057  ;;  %v1169_v27 = vpop.permute.xlu0 %1168 }
  0xa4   : > { %960 = vrot.lane.b32.xlu1 %v869_v20, %s8150_s15  ;;  %958 = vrot.lane.b32.xlu0 %v857_v6, %s8150_s15 }
  0xa6   : > { %v1171_v29 = vpop.permute.xlu1 %1170  ;;  %v945_v34 = vpop.permute.xlu0 %944 }
  0xa7   : > { %v1300_v35 = vsel %vm1296_vm6, %v8323_v31, %v945_v34 }
  0xa8   : > { %1073 = vrot.lane.b32.xlu1 %v1036_v23, %s11236_s0  ;;  %v1333_v36 = vsel %vm1329_vm7, %v1300_v35, %v1058_v26  ;;  %1071 = vrot.lane.b32.xlu0 %v1033_v12, %s11236_s0  ;;  %v892_v12 = vrot.slane %v890_v63, 1  ;;  %v7950_v26 = vld [vmem:[%s8301_s24 + $0x60] sm:$0xff]  }
  0xa9   : > { %v1366_v31 = vsel %vm1362_vm8, %v1333_v36, %v1091_v21  ;;  %v651_v34 = vshrl.u32 %v7950_v26, 16 }
  0xaa   : > { %v1135_v40 = vpop.permute.xlu1 %1134  ;;  %v1133_v43 = vpop.permute.xlu0 %1132  ;;  %v893_v21 = vsel %vm749_vm4, %v888_v9, %v892_v12 }
  0xab   : > { %v1397_v44 = vsel %vm1395_vm9, %v1364_v42, %v1133_v43  ;;  %v1399_v51 = vsel %vm1395_vm9, %v1366_v31, %v1135_v40  ;;  %v653_v40 = vrot.slane %v651_v34, 7  ;;  %v654_v42 = vshll.u32 %v7950_v26, 16 }
  0xac   : > { %1106 = vrot.lane.b32.xlu1 %v8495_v59, %s11231_s16  ;;  %v1430_v47 = vsel %vm1428_vm10, %v1397_v44, %v1169_v27  ;;  %1104 = vrot.lane.b32.xlu0 %v8481_v48, %s11231_s16  ;;  %v1432_v60 = vsel %vm1428_vm10, %v1399_v51, %v1171_v29 }
  0xad   : > { %v1463_v55 = vsel %vm1461_vm11, %v1430_v47, %v1201_v25  ;;  %v1465_v6 = vsel %vm1461_vm11, %v1432_v60, %v1203_v24  ;;  %v649_v25 = vor.u32 %v647_v15, %v646_v14  ;;  %v656_v47 = vor.u32 %v654_v42, %v653_v40 }
  0xae   : > { %v1235_v52 = vpop.permute.xlu1 %1234  ;;  %v1233_v56 = vpop.permute.xlu0 %1232  ;;  %v1044_v60 = vrot.slane %v744_v39, 1 }
  0xaf   : > { %v1496_v4 = vsel %vm1494_vm12, %v1463_v55, %v1233_v56  ;;  %v1498_v16 = vsel %vm1494_vm12, %v1465_v6, %v1235_v52  ;;  %v8583_v33 = vsel %vm8280_vm2, 0, %v649_v25  ;;  %v904_v52 = vrot.slane %v902_v45, 1  ;;  %v7951_v6 = vld [vmem:[%s8301_s24 + $0x68] sm:$0xff]  }
  0xb0   : > { %1150 = vrot.lane.b32.xlu1 %v881_v49, %s11232_s23  ;;  %1148 = vrot.lane.b32.xlu0 %v869_v20, %s11232_s23  ;;  %v897_v36 = vshll.u32 %v8583_v33, 16  ;;  %v895_v43 = vshrl.u32 %v8583_v33, 16  ;;  %v8599_v54 = vsel %vm8280_vm2, 0, %v656_v47  ;;  %v1043_v55 = vrot.slane %v8583_v33, 1 }
  0xb1   : > { %v909_v63 = vshll.u32 %v8599_v54, 16  ;;  %v907_v14 = vshrl.u32 %v8599_v54, 16  ;;  %v658_v25 = vshrl.u32 %v7951_v6, 16  ;;  %v661_v39 = vshll.u32 %v7951_v6, 16 }
  0xb2   : > { %v8558_v0 = vpop.permute.xlu1 %946  ;;  %v1265_v5 = vpop.permute.xlu0 %1264  ;;  %v899_v44 = vrot.slane %v897_v36, 1 }
  0xb3   : > { %v1529_v8 = vsel %vm1527_vm13, %v1496_v4, %v1265_v5  ;;  %v745_v5 = vsel %vm8280_vm2, %v653_v40, 0 }
  0xb4   : > { %1186 = vrot.lane.b32.xlu1 %v1039_v57, %s11233_s20  ;;  %1184 = vrot.lane.b32.xlu0 %v1036_v23, %s11233_s20  ;;  %v1041_v23 = vrot.slane %v743_v53, 1  ;;  %v900_v51 = vor.u32 %v899_v44, %v895_v43  ;;  %v7952_v43 = vld [vmem:[%s8301_s24 + $0x70] sm:$0xff]  }
  0xb5   : > { %7774 = vmatprep.mubr.msk.bf16.mxu0 %vm1575_vm14, %v1529_v8 }
  0xb6   : > { %v949_v13 = vpop.permute.xlu1 %948  ;;  %v1267_v17 = vpop.permute.xlu0 %1266  ;;  %v8579_v29 = vsel %vm1006_vm3, %v1040_v22, %v1041_v23  ;;  %v905_v62 = vsel %vm749_vm4, %v900_v51, %v904_v52 }
  0xb7   : > { %v1531_v20 = vsel %vm1527_vm13, %v1498_v16, %v1267_v17  ;;  %v1304_v56 = vsel %vm1296_vm6, %v8333_v37, %v949_v13  ;;  %v1045_v13 = vsel %vm1006_vm3, %v1043_v55, %v1044_v60  ;;  %v911_v17 = vrot.slane %v909_v63, 1 }
  0xb8   : > { %1218 = vrot.lane.b32.xlu1 %v8534_v41, %s11234_s21  ;;  %1216 = vrot.lane.b32.xlu0 %v8495_v59, %s11234_s21  ;;  %v668_v55 = vshll.u32 %v7952_v43, 16 }
  0xb9   : > { %7775 = vmatmul.mubr.msk.bf16.vlgmr.msra.gmra.mxu0 %vm1575_vm14, %v1531_v20  ;;  %v914_v20 = vshll.u32 %v745_v5, 16 }
  0xba   : > { %v1062_v24 = vpop.permute.xlu1 %1061  ;;  %v1060_v27 = vpop.permute.xlu0 %1059 }
  0xbb   : > { %v1337_v61 = vsel %vm1329_vm7, %v1304_v56, %v1062_v24 }
  0xbc   : > { %1250 = vrot.lane.b32.xlu1 %v893_v21, %s11235_s30  ;;  %1248 = vrot.lane.b32.xlu0 %v881_v49, %s11235_s30 }
  0xbe   : > { %v1095_v32 = vpop.permute.xlu1 %1094  ;;  %v1093_v35 = vpop.permute.xlu0 %1092 }
  0xbf   : > { %v1370_v1 = vsel %vm1362_vm8, %v1337_v61, %v1095_v32 }
  0xc0   : > { %1282 = vrot.lane.b32.xlu1 %v8579_v29, %s11213_s22  ;;  %1280 = vrot.lane.b32.xlu0 %v1039_v57, %s11213_s22 }
  0xc2   : > { %v1139_v38 = vpop.permute.xlu1 %1138  ;;  %v1137_v31 = vpop.permute.xlu0 %1136 }
  0xc4   : > { %964 = vrot.lane.b32.xlu1 %v893_v21, %s8150_s15  ;;  %962 = vrot.lane.b32.xlu0 %v881_v49, %s8150_s15 }
  0xc6   : > { %v1175_v46 = vpop.permute.xlu1 %1174  ;;  %v1173_v50 = vpop.permute.xlu0 %1172 }
  0xc8   : > { %1077 = vrot.lane.b32.xlu1 %v8579_v29, %s11236_s0  ;;  %1075 = vrot.lane.b32.xlu0 %v1039_v57, %s11236_s0  ;;  %v1302_v57 = vsel %vm1296_vm6, %v8317_v30, %v8558_v0  ;;  %v1403_v0 = vsel %vm1395_vm9, %v1370_v1, %v1139_v38  ;;  %v660_v38 = vrot.slane %v658_v25, 7 }
  0xc9   : > { %v1335_v37 = vsel %vm1329_vm7, %v1302_v57, %v1060_v27  ;;  %v1436_v12 = vsel %vm1428_vm10, %v1403_v0, %v1175_v46 }
  0xca   : > { %v1207_v53 = vpop.permute.xlu1 %1206  ;;  %v1205_v49 = vpop.permute.xlu0 %1204  ;;  %v1368_v30 = vsel %vm1362_vm8, %v1335_v37, %v1093_v35  ;;  %v916_v35 = vrot.slane %v914_v20, 1  ;;  %v663_v45 = vor.u32 %v661_v39, %v660_v38  ;;  %v746_v57 = vsel %vm8280_vm2, %v660_v38, 0 }
  0xcb   : > { %v1401_v9 = vsel %vm1395_vm9, %v1368_v30, %v1137_v31  ;;  %v1469_v16 = vsel %vm1461_vm11, %v1436_v12, %v1207_v53  ;;  %v1047_v31 = vrot.slane %v745_v5, 1  ;;  %v926_v1 = vshll.u32 %v746_v57, 16 }
  0xcc   : > { %1110 = vrot.lane.b32.xlu1 %v8583_v33, %s11231_s16  ;;  %1108 = vrot.lane.b32.xlu0 %v8534_v41, %s11231_s16  ;;  %v1434_v15 = vsel %vm1428_vm10, %v1401_v9, %v1173_v50  ;;  %v665_v50 = vshrl.u32 %v7952_v43, 16  ;;  %v8656_v52 = vsel %vm8280_vm2, 0, %v663_v45 }
  0xcd   : > { %v1467_v22 = vsel %vm1461_vm11, %v1434_v15, %v1205_v49  ;;  %v921_v49 = vshll.u32 %v8656_v52, 16  ;;  %v919_v63 = vshrl.u32 %v8656_v52, 16  ;;  %v928_v0 = vrot.slane %v926_v1, 1 }
  0xce   : > { %v1239_v4 = vpop.permute.xlu1 %1238  ;;  %v1237_v8 = vpop.permute.xlu0 %1236  ;;  %v667_v56 = vrot.slane %v665_v50, 7  ;;  %v1049_v12 = vrot.slane %v8656_v52, 1 }
  0xcf   : > { %v1502_v23 = vsel %vm1494_vm12, %v1469_v16, %v1239_v4  ;;  %v1500_v26 = vsel %vm1494_vm12, %v1467_v22, %v1237_v8  ;;  %v923_v37 = vrot.slane %v921_v49, 1  ;;  %v7953_v22 = vld [vmem:[%s8301_s24 + $0x78] sm:$0xff]   ;;  %s7358_s24 = sshll.u32 %s8253_s29, 10  ;;  %s11146_s29 = scalar_lea.sflag [#allocation3], %s431_s1 }
  0xd0   : > { %1154 = vrot.lane.b32.xlu1 %v905_v62, %s11232_s23  ;;  %1152 = vrot.lane.b32.xlu0 %v893_v21, %s11232_s23  ;;  %v912_v21 = vor.u32 %v911_v17, %v907_v14  ;;  %v670_v4 = vor.u32 %v668_v55, %v667_v56  ;;  %v1050_v14 = vrot.slane %v746_v57, 1  ;;  %v747_v25 = vsel %vm8280_vm2, %v667_v56, 0 }
  0xd1   : > { %v924_v30 = vor.u32 %v923_v37, %v919_v63  ;;  %v675_v56 = vshll.u32 %v7953_v22, 16 }
  0xd2   : > { %v1271_v24 = vpop.permute.xlu1 %1270  ;;  %v1269_v32 = vpop.permute.xlu0 %1268  ;;  %v8644_v42 = vsel %vm749_vm4, %v912_v21, %v916_v35  ;;  %v8673_v8 = vsel %vm8280_vm2, 0, %v670_v4 }
  0xd3   : > { %v1535_v27 = vsel %vm1527_vm13, %v1502_v23, %v1271_v24  ;;  %v1533_v34 = vsel %vm1527_vm13, %v1500_v26, %v1269_v32  ;;  %v933_v16 = vshll.u32 %v8673_v8, 16  ;;  %v929_v20 = vsel %vm749_vm4, %v924_v30, %v928_v0 }
  0xd4   : > { %1190 = vrot.lane.b32.xlu1 %v1045_v13, %s11233_s20  ;;  %1188 = vrot.lane.b32.xlu0 %v8579_v29, %s11233_s20  ;;  %v1046_v29 = vrot.slane %v8599_v54, 1  ;;  %v1051_v32 = vsel %vm1006_vm3, %v1049_v12, %v1050_v14  ;;  %v931_v35 = vshrl.u32 %v8673_v8, 16 }
  0xd5   : > { %7778 = vmatprep.mubr.msk.bf16.mxu0 %vm1575_vm14, %v1533_v34 }
  0xd6   : > { %7779 = vmatmul.mubr.msk.bf16.gmra.mxu0 %vm1575_vm14, %v1535_v27  ;;  %v953_v36 = vpop.permute.xlu1 %952  ;;  %v951_v40 = vpop.permute.xlu0 %950  ;;  %v8652_v47 = vsel %vm1006_vm3, %v1046_v29, %v1047_v31  ;;  %v672_v29 = vshrl.u32 %v7953_v22, 16 }
  0xd7   : > { %v1308_v15 = vsel %vm1296_vm6, %v8389_v28, %v953_v36  ;;  %v935_v36 = vrot.slane %v933_v16, 1 }
  0xd8   : > { %1222 = vrot.lane.b32.xlu1 %v8599_v54, %s11234_s21  ;;  %1220 = vrot.lane.b32.xlu0 %v8583_v33, %s11234_s21  ;;  %v674_v49 = vrot.slane %v672_v29, 7 }
  0xda   : > { %v1066_v44 = vpop.permute.xlu1 %1065  ;;  %v1064_v46 = vpop.permute.xlu0 %1063  ;;  %v677_v63 = vor.u32 %v675_v56, %v674_v49 }
  0xdb   : > { %v1341_v17 = vsel %vm1329_vm7, %v1308_v15, %v1066_v44 }
  0xdc   : > { %1254 = vrot.lane.b32.xlu1 %v8644_v42, %s11235_s30  ;;  %1252 = vrot.lane.b32.xlu0 %v905_v62, %s11235_s30 }
  0xde   : > { %v1099_v51 = vpop.permute.xlu1 %1098  ;;  %v1097_v53 = vpop.permute.xlu0 %1096 }
  0xdf   : > { %v1374_v28 = vsel %vm1362_vm8, %v1341_v17, %v1099_v51 }
  0xe0   : > { %1286 = vrot.lane.b32.xlu1 %v8652_v47, %s11213_s22  ;;  %1284 = vrot.lane.b32.xlu0 %v1045_v13, %s11213_s22 }
  0xe2   : > { %v1143_v60 = vpop.permute.xlu1 %1142  ;;  %v1141_v61 = vpop.permute.xlu0 %1140 }
  0xe4   : > { %968 = vrot.lane.b32.xlu1 %v8644_v42, %s8150_s15  ;;  %966 = vrot.lane.b32.xlu0 %v905_v62, %s8150_s15 }
  0xe6   : > { %v1179_v5 = vpop.permute.xlu1 %1178  ;;  %v1177_v6 = vpop.permute.xlu0 %1176 }
  0xe8   : > { %1081 = vrot.lane.b32.xlu1 %v8652_v47, %s11236_s0  ;;  %1079 = vrot.lane.b32.xlu0 %v1045_v13, %s11236_s0  ;;  %v1306_v13 = vsel %vm1296_vm6, %v8365_v11, %v951_v40  ;;  %v1407_v11 = vsel %vm1395_vm9, %v1374_v28, %v1143_v60  ;;  %v938_v40 = vshll.u32 %v747_v25, 16 }
  0xe9   : > { %v1339_v23 = vsel %vm1329_vm7, %v1306_v13, %v1064_v46  ;;  %v1440_v21 = vsel %vm1428_vm10, %v1407_v11, %v1179_v5  ;;  %v731_v5 = vsel %vm8280_vm2, 0, %v677_v63 }
  0xea   : > { %v1211_v62 = vpop.permute.xlu1 %1210  ;;  %v1209_v9 = vpop.permute.xlu0 %1208  ;;  %v1372_v26 = vsel %vm1362_vm8, %v1339_v23, %v1097_v53  ;;  %v940_v53 = vrot.slane %v938_v40, 1  ;;  %v1123_v0 = vshll.u32 %v731_v5, 16  ;;  %v1121_v14 = vshrl.u32 %v731_v5, 16 }
  0xeb   : > { %v1405_v34 = vsel %vm1395_vm9, %v1372_v26, %v1141_v61  ;;  %v1473_v39 = vsel %vm1461_vm11, %v1440_v21, %v1211_v62  ;;  %v1053_v61 = vrot.slane %v747_v25, 1  ;;  %v748_v62 = vsel %vm8280_vm2, %v674_v49, 0 }
  0xec   : > { %1114 = vrot.lane.b32.xlu1 %v8656_v52, %s11231_s16  ;;  %1112 = vrot.lane.b32.xlu0 %v8599_v54, %s11231_s16  ;;  %v1438_v38 = vsel %vm1428_vm10, %v1405_v34, %v1177_v6  ;;  %v1125_v15 = vrot.slane %v1123_v0, 1  ;;  %v1128_v16 = vshll.u32 %v748_v62, 16  ;;  %v1166_v34 = vrot.slane %v748_v62, 1 }
  0xed   : > { %v1471_v31 = vsel %vm1461_vm11, %v1438_v38, %v1209_v9 }
  0xee   : > { %v1243_v24 = vpop.permute.xlu1 %1242  ;;  %v1241_v27 = vpop.permute.xlu0 %1240  ;;  %v1126_v22 = vor.u32 %v1125_v15, %v1121_v14  ;;  %v1130_v23 = vrot.slane %v1128_v16, 1 }
  0xef   : > { %v1506_v43 = vsel %vm1494_vm12, %v1473_v39, %v1243_v24  ;;  %v1504_v45 = vsel %vm1494_vm12, %v1471_v31, %v1241_v27  ;;  %v1165_v27 = vrot.slane %v731_v5, 1 }
  0xf0   : > { %1158 = vrot.lane.b32.xlu1 %v929_v20, %s11232_s23  ;;  %1156 = vrot.lane.b32.xlu0 %v8644_v42, %s11232_s23  ;;  %v936_v42 = vor.u32 %v935_v36, %v931_v35  ;;  %v1131_v26 = vsel %vm749_vm4, %v1126_v22, %v1130_v23 }
  0xf1   : > { %v1167_v31 = vsel %vm1006_vm3, %v1165_v27, %v1166_v34 }
  0xf2   : > { %v1275_v44 = vpop.permute.xlu1 %1274  ;;  %v1273_v50 = vpop.permute.xlu0 %1272  ;;  %v941_v57 = vsel %vm749_vm4, %v936_v42, %v940_v53 }
  0xf3   : > { %v1539_v46 = vsel %vm1527_vm13, %v1506_v43, %v1275_v44  ;;  %v1537_v51 = vsel %vm1527_vm13, %v1504_v45, %v1273_v50 }
  0xf4   : > { %1194 = vrot.lane.b32.xlu1 %v1051_v32, %s11233_s20  ;;  %1192 = vrot.lane.b32.xlu0 %v8652_v47, %s11233_s20  ;;  %v1052_v47 = vrot.slane %v8673_v8, 1 }
  0xf5   : > { %7782 = vmatprep.mubr.msk.bf16.mxu0 %vm1575_vm14, %v1537_v51 }
  0xf6   : > { %7783 = vmatmul.mubr.msk.bf16.gmra.mxu0 %vm1575_vm14, %v1539_v46  ;;  %v957_v55 = vpop.permute.xlu1 %956  ;;  %v955_v60 = vpop.permute.xlu0 %954  ;;  %v1054_v4 = vsel %vm1006_vm3, %v1052_v47, %v1053_v61 }
  0xf7   : > { %v1312_v25 = vsel %vm1296_vm6, %v8434_v7, %v957_v55 }
  0xf8   : > { %1226 = vrot.lane.b32.xlu1 %v8673_v8, %s11234_s21  ;;  %1224 = vrot.lane.b32.xlu0 %v8656_v52, %s11234_s21 }
  0xfa   : > { %v1070_v37 = vpop.permute.xlu1 %1069  ;;  %v1068_v1 = vpop.permute.xlu0 %1067 }
  0xfb   : > { %v1345_v11 = vsel %vm1329_vm7, %v1312_v25, %v1070_v37  ;;  %v7954_v37 = vld [vmem:[%s11191_s4 + $0x88] sm:$0xff]  }
  0xfc   : > { %1258 = vrot.lane.b32.xlu1 %v941_v57, %s11235_s30  ;;  %1256 = vrot.lane.b32.xlu0 %v929_v20, %s11235_s30 }
  0xfd   : > { %7806 = vmatprep.subr.bf16.mxu0 %v7954_v37 }
  0xfe   : > { %v1103_v6 = vpop.permute.xlu1 %1102  ;;  %v1101_v30 = vpop.permute.xlu0 %1100  ;;  %7807 = vmatpush3.bf16.msra.mxu0 %v7954_v37 }
  0xff   : > { %v1378_v21 = vsel %vm1362_vm8, %v1345_v11, %v1103_v6 }
 0x100   : > { %1290 = vrot.lane.b32.xlu1 %v1054_v4, %s11213_s22  ;;  %1288 = vrot.lane.b32.xlu0 %v1051_v32, %s11213_s22 }
 0x102   : > { %v1147_v9 = vpop.permute.xlu1 %1146  ;;  %v1145_v12 = vpop.permute.xlu0 %1144 }
 0x103   : > { %v1411_v36 = vsel %vm1395_vm9, %v1378_v21, %v1147_v9 }
 0x104   : > { %972 = vrot.lane.b32.xlu1 %v941_v57, %s8150_s15  ;;  %970 = vrot.lane.b32.xlu0 %v929_v20, %s8150_s15  ;;  %v1310_v20 = vsel %vm1296_vm6, %v8422_v58, %v955_v60 }
 0x106   : > { %v1183_v13 = vpop.permute.xlu1 %1182  ;;  %v1181_v17 = vpop.permute.xlu0 %1180 }
 0x107   : > { %v1444_v58 = vsel %vm1428_vm10, %v1411_v36, %v1183_v13 }
 0x108   : > { %1085 = vrot.lane.b32.xlu1 %v1054_v4, %s11236_s0  ;;  %1083 = vrot.lane.b32.xlu0 %v1051_v32, %s11236_s0  ;;  %v1343_v32 = vsel %vm1329_vm7, %v1310_v20, %v1068_v1 }
 0x109   : > { %v1376_v7 = vsel %vm1362_vm8, %v1343_v32, %v1101_v30 }
 0x10a   : > { %v1215_v28 = vpop.permute.xlu1 %1214  ;;  %v1213_v24 = vpop.permute.xlu0 %1212  ;;  %v1409_v39 = vsel %vm1395_vm9, %v1376_v7, %v1145_v12 }
 0x10b   : > { %v1442_v40 = vsel %vm1428_vm10, %v1409_v39, %v1181_v17  ;;  %v1477_v29 = vsel %vm1461_vm11, %v1444_v58, %v1215_v28 }
 0x10c   : > { %1118 = vrot.lane.b32.xlu1 %v731_v5, %s11231_s16  ;;  %1116 = vrot.lane.b32.xlu0 %v8673_v8, %s11231_s16  ;;  %v1475_v43 = vsel %vm1461_vm11, %v1442_v40, %v1213_v24  ;;  %s11215_s16 = smov 64  }
 0x10e   : > { %v1247_v35 = vpop.permute.xlu1 %1246  ;;  %v1245_v38 = vpop.permute.xlu0 %1244 }
 0x10f   : > { %v1510_v44 = vsel %vm1494_vm12, %v1477_v29, %v1247_v35  ;;  %v1508_v46 = vsel %vm1494_vm12, %v1475_v43, %v1245_v38 }
 0x110   : > { %1162 = vrot.lane.b32.xlu1 %v1131_v26, %s11232_s23  ;;  %1160 = vrot.lane.b32.xlu0 %v941_v57, %s11232_s23 }
 0x112   : > { %v1279_v45 = vpop.permute.xlu1 %1278  ;;  %v1277_v51 = vpop.permute.xlu0 %1276 }
 0x113   : > { %v1543_v50 = vsel %vm1527_vm13, %v1510_v44, %v1279_v45  ;;  %v1541_v42 = vsel %vm1527_vm13, %v1508_v46, %v1277_v51 }
 0x114   : > { %1198 = vrot.lane.b32.xlu1 %v1167_v31, %s11233_s20  ;;  %1196 = vrot.lane.b32.xlu0 %v1054_v4, %s11233_s20  ;;  %s8158_s20 = smov 96  }
 0x115   : > { %7786 = vmatprep.mubr.msk.bf16.mxu0 %vm1575_vm14, %v1541_v42 }
 0x116   : > { %7787 = vmatmul.mubr.msk.bf16.gmra.mxu0 %vm1575_vm14, %v1543_v50  ;;  %v961_v53 = vpop.permute.xlu1 %960  ;;  %v959_v49 = vpop.permute.xlu0 %958 }
 0x117   : > { %v1316_v30 = vsel %vm1296_vm6, %v8481_v48, %v961_v53  ;;  %v1314_v0 = vsel %vm1296_vm6, %v8448_v19, %v959_v49 }
 0x118   : > { %1230 = vrot.lane.b32.xlu1 %v8287_v3, %s11234_s21  ;;  %1228 = vrot.lane.b32.xlu0 %v731_v5, %s11234_s21  ;;  %v7955_v5 = vld [vmem:[%s11191_s4 + $0x80] sm:$0xff]   ;;  %s11239_s21 = smov 64  }
 0x119   : > { %7808 = vmatprep.subr.bf16.mxu0 %v7955_v5 }
 0x11a   : > { %v1074_v56 = vpop.permute.xlu1 %1073  ;;  %v1072_v55 = vpop.permute.xlu0 %1071  ;;  %7809 = vmatpush3.bf16.msra.mxu0 %v7955_v5 }
 0x11b   : > { %v1349_v62 = vsel %vm1329_vm7, %v1316_v30, %v1074_v56  ;;  %v1347_v9 = vsel %vm1329_vm7, %v1314_v0, %v1072_v55 }
 0x11c   : > { %1262 = vrot.lane.b32.xlu1 %v8308_v18, %s11235_s30  ;;  %1260 = vrot.lane.b32.xlu0 %v1131_v26, %s11235_s30 }
 0x11e   : > { %v1107_v60 = vpop.permute.xlu1 %1106  ;;  %v1105_v57 = vpop.permute.xlu0 %1104 }
 0x11f   : > { %v1382_v12 = vsel %vm1362_vm8, %v1349_v62, %v1107_v60  ;;  %v1380_v15 = vsel %vm1362_vm8, %v1347_v9, %v1105_v57 }
 0x120   : > { %1294 = vrot.lane.b32.xlu1 %v8296_v10, %s11213_s22  ;;  %1292 = vrot.lane.b32.xlu0 %v1167_v31, %s11213_s22 }
 0x122   : > { %v1151_v47 = vpop.permute.xlu1 %1150  ;;  %v1149_v61 = vpop.permute.xlu0 %1148 }
 0x123   : > { %v1415_v16 = vsel %vm1395_vm9, %v1382_v12, %v1151_v47  ;;  %v1413_v17 = vsel %vm1395_vm9, %v1380_v15, %v1149_v61 }
 0x124   : > { %2291 = vrot.lane.b32.xlu1 %v8308_v18, %s11213_s22  ;;  %s11240_s22 = smov 32  }
 0x126   : > { %v1187_v63 = vpop.permute.xlu1 %1186  ;;  %v1185_v1 = vpop.permute.xlu0 %1184 }
 0x127   : > { %v1448_v48 = vsel %vm1428_vm10, %v1415_v16, %v1187_v63  ;;  %v1446_v22 = vsel %vm1428_vm10, %v1413_v17, %v1185_v1 }
 0x128   : > { %2398 = vrot.lane.b32.xlu1 %v8296_v10, %s11215_s16 }
 0x12a   : > { %v1219_v4 = vpop.permute.xlu1 %1218  ;;  %v1217_v6 = vpop.permute.xlu0 %1216 }
 0x12b   : > { %v1481_v19 = vsel %vm1461_vm11, %v1448_v48, %v1219_v4  ;;  %v1479_v23 = vsel %vm1461_vm11, %v1446_v22, %v1217_v6 }
 0x12e   : > { %v1251_v14 = vpop.permute.xlu1 %1250  ;;  %v1249_v13 = vpop.permute.xlu0 %1248 }
 0x12f   : > { %v1514_v28 = vsel %vm1494_vm12, %v1481_v19, %v1251_v14  ;;  %v1512_v25 = vsel %vm1494_vm12, %v1479_v23, %v1249_v13  ;;  %v7956_v13 = vld [vmem:[%s11191_s4 + $0x78] sm:$0xff]  }
 0x130   : > { %7378 = vmatprep.subr.bf16.mxu1 %v7956_v13 }
 0x132   : > { %v1283_v24 = vpop.permute.xlu1 %1282  ;;  %v1281_v20 = vpop.permute.xlu0 %1280 }
 0x133   : > { %v1547_v26 = vsel %vm1527_vm13, %v1514_v28, %v1283_v24  ;;  %v1545_v11 = vsel %vm1527_vm13, %v1512_v25, %v1281_v20  ;;  %v7957_v24 = vld [vmem:[%s11191_s4 + $0x38] sm:$0xff]  }
 0x134   : > { %7790 = vmatprep.mubr.msk.bf16.mxu0 %vm1575_vm14, %v1545_v11  ;;  %7379 = vmatpush3.bf16.msra.mxu1 %v7957_v24  ;;  %v7958_v11 = vld [vmem:[%s11191_s4 + $0x70] sm:$0xff]  }
 0x135   : > { %7791 = vmatmul.mubr.msk.bf16.gmra.mxu0 %vm1575_vm14, %v1547_v26  ;;  %7380 = vmatprep.subr.bf16.mxu1 %v7958_v11 }
 0x136   : > { %v965_v27 = vpop.permute.xlu1 %964  ;;  %v963_v34 = vpop.permute.xlu0 %962 }
 0x137   : > { %v1320_v31 = vsel %vm1296_vm6, %v8534_v41, %v965_v27  ;;  %v1318_v43 = vsel %vm1296_vm6, %v8495_v59, %v963_v34 }
 0x13a   : > { %v1078_v32 = vpop.permute.xlu1 %1077  ;;  %v1076_v21 = vpop.permute.xlu0 %1075 }
 0x13b   : > { %v1353_v44 = vsel %vm1329_vm7, %v1320_v31, %v1078_v32  ;;  %v1351_v45 = vsel %vm1329_vm7, %v1318_v43, %v1076_v21  ;;  %v7961_v31 = vld [vmem:[%s11191_s4 + $0x28] sm:$0xff]  }
 0x13e   : > { %v1111_v35 = vpop.permute.xlu1 %1110  ;;  %v1109_v7 = vpop.permute.xlu0 %1108 }
 0x13f   : > { %v1386_v46 = vsel %vm1362_vm8, %v1353_v44, %v1111_v35  ;;  %v1384_v51 = vsel %vm1362_vm8, %v1351_v45, %v1109_v7  ;;  %v7959_v7 = vld [vmem:[%s11191_s4 + $0x30] sm:$0xff]   ;;  %v8861_v44 = vld [vmem:[%s11237_s2] ss:$0 sm:$0xff] }
 0x140   : > { %7381 = vmatpush3.bf16.msra.mxu1 %v7959_v7 }
 0x142   : > { %v1155_v36 = vpop.permute.xlu1 %1154  ;;  %v1153_v38 = vpop.permute.xlu0 %1152 }
 0x143   : > { %v1419_v42 = vsel %vm1395_vm9, %v1386_v46, %v1155_v36  ;;  %v1417_v49 = vsel %vm1395_vm9, %v1384_v51, %v1153_v38  ;;  %v7960_v36 = vld [vmem:[%s11191_s4 + $0x68] sm:$0xff]   ;;  %v7962_v46 = vld [vmem:[%s11191_s4 + $0x60] sm:$0xff]  }
 0x144   : > { %7382 = vmatprep.subr.bf16.mxu1 %v7960_v36 }
 0x145   : > { %7383 = vmatpush3.bf16.msra.mxu1 %v7961_v31 }
 0x146   : > { %v1191_v39 = vpop.permute.xlu1 %1190  ;;  %v1189_v58 = vpop.permute.xlu0 %1188  ;;  %7384 = vmatprep.subr.bf16.mxu1 %v7962_v46 }
 0x147   : > { %v1452_v56 = vsel %vm1428_vm10, %v1419_v42, %v1191_v39  ;;  %v1450_v41 = vsel %vm1428_vm10, %v1417_v49, %v1189_v58  ;;  %v7963_v42 = vld [vmem:[%s11191_s4 + $0x20] sm:$0xff]  }
 0x149   : > { %7385 = vmatpush3.bf16.msra.mxu1 %v7963_v42 }
 0x14a   : > { %v1223_v40 = vpop.permute.xlu1 %1222  ;;  %v1221_v29 = vpop.permute.xlu0 %1220 }
 0x14b   : > { %v1485_v59 = vsel %vm1461_vm11, %v1452_v56, %v1223_v40  ;;  %v1483_v55 = vsel %vm1461_vm11, %v1450_v41, %v1221_v29 }
 0x14e   : > { %v1255_v50 = vpop.permute.xlu1 %1254  ;;  %v1253_v53 = vpop.permute.xlu0 %1252 }
 0x14f   : > { %v1518_v60 = vsel %vm1494_vm12, %v1485_v59, %v1255_v50  ;;  %v1516_v47 = vsel %vm1494_vm12, %v1483_v55, %v1253_v53  ;;  %v8873_v53 = vld [vmem:[%s11238_s3] ss:$0 sm:$0xff]  ;;  %v7964_v55 = vld [vmem:[%s11191_s4 + $0x58] sm:$0xff]  }
 0x150   : > { %7386 = vmatprep.subr.bf16.mxu1 %v7964_v55 }
 0x152   : > { %v1287_v57 = vpop.permute.xlu1 %1286  ;;  %v1285_v63 = vpop.permute.xlu0 %1284 }
 0x153   : > { %v1551_v61 = vsel %vm1527_vm13, %v1518_v60, %v1287_v57  ;;  %v1549_v37 = vsel %vm1527_vm13, %v1516_v47, %v1285_v63 }
 0x154   : > { %7794 = vmatprep.mubr.msk.bf16.mxu0 %vm1575_vm14, %v1549_v37 }
 0x155   : > { %7795 = vmatmul.mubr.msk.bf16.gmra.mxu0 %vm1575_vm14, %v1551_v61  ;;  %v7965_v61 = vld [vmem:[%s11191_s4 + $0x18] sm:$0xff]  }
 0x156   : > { %v969_v1 = vpop.permute.xlu1 %968  ;;  %v967_v4 = vpop.permute.xlu0 %966  ;;  %7387 = vmatpush3.bf16.msra.mxu1 %v7965_v61 }
 0x157   : > { %v1324_v17 = vsel %vm1296_vm6, %v8599_v54, %v969_v1  ;;  %v1322_v48 = vsel %vm1296_vm6, %v8583_v33, %v967_v4 }
 0x15a   : > { %v1082_v5 = vpop.permute.xlu1 %1081  ;;  %v1080_v6 = vpop.permute.xlu0 %1079 }
 0x15b   : > { %v1357_v22 = vsel %vm1329_vm7, %v1324_v17, %v1082_v5  ;;  %v1355_v19 = vsel %vm1329_vm7, %v1322_v48, %v1080_v6  ;;  %v7966_v6 = vld [vmem:[%s11191_s4 + $0x50] sm:$0xff]   ;;  %v7968_v17 = vld [vmem:[%s11191_s4 + $0x48] sm:$0xff]  }
 0x15c   : > { %7388 = vmatprep.subr.bf16.mxu1 %v7966_v6 }
 0x15e   : > { %v1115_v30 = vpop.permute.xlu1 %1114  ;;  %v1113_v0 = vpop.permute.xlu0 %1112 }
 0x15f   : > { %v1390_v23 = vsel %vm1362_vm8, %v1357_v22, %v1115_v30  ;;  %v1388_v25 = vsel %vm1362_vm8, %v1355_v19, %v1113_v0 }
 0x162   : > { %v1159_v62 = vpop.permute.xlu1 %1158  ;;  %v1157_v9 = vpop.permute.xlu0 %1156 }
 0x163   : > { %v1423_v26 = vsel %vm1395_vm9, %v1390_v23, %v1159_v62  ;;  %v1421_v20 = vsel %vm1395_vm9, %v1388_v25, %v1157_v9  ;;  %v7969_v23 = vld [vmem:[%s11191_s4 + $0x8] sm:$0xff]  }
 0x166   : > { %v1195_v12 = vpop.permute.xlu1 %1194  ;;  %v1193_v14 = vpop.permute.xlu0 %1192 }
 0x167   : > { %v1456_v33 = vsel %vm1428_vm10, %v1423_v26, %v1195_v12  ;;  %v1454_v27 = vsel %vm1428_vm10, %v1421_v20, %v1193_v14  ;;  %v7967_v12 = vld [vmem:[%s11191_s4 + $0x10] sm:$0xff]  }
 0x168   : > { %7389 = vmatpush3.bf16.msra.mxu1 %v7967_v12 }
 0x169   : > { %7390 = vmatprep.subr.bf16.mxu1 %v7968_v17 }
 0x16a   : > { %v1227_v15 = vpop.permute.xlu1 %1226  ;;  %v1225_v16 = vpop.permute.xlu0 %1224 }
 0x16b   : > { %v1489_v34 = vsel %vm1461_vm11, %v1456_v33, %v1227_v15  ;;  %v1487_v32 = vsel %vm1461_vm11, %v1454_v27, %v1225_v16 }
 0x16c   : > { %7391 = vmatpush3.bf16.msra.mxu1 %v7969_v23 }
 0x16e   : > { %v1259_v28 = vpop.permute.xlu1 %1258  ;;  %v1257_v54 = vpop.permute.xlu0 %1256 }
 0x16f   : > { %v1522_v21 = vsel %vm1494_vm12, %v1489_v34, %v1259_v28  ;;  %v1520_v38 = vsel %vm1494_vm12, %v1487_v32, %v1257_v54  ;;  %v7970_v54 = vld [vmem:[%s11191_s4 + $0x40] sm:$0xff]  }
 0x170   : > { %v7971_v32 = vld [vmem:[%s11191_s4] sm:$0xff]   ;;  %7392 = vmatprep.subr.bf16.mxu1 %v7970_v54 }
 0x171   : > { %7393 = vmatpush3.bf16.msra.mxu1 %v7971_v32 }
 0x172   : > { %v1291_v35 = vpop.permute.xlu1 %1290  ;;  %v1289_v58 = vpop.permute.xlu0 %1288 }
 0x173   : > { %v1555_v39 = vsel %vm1527_vm13, %v1522_v21, %v1291_v35  ;;  %v1553_v40 = vsel %vm1527_vm13, %v1520_v38, %v1289_v58 }
 0x174   : > { %7798 = vmatprep.mubr.msk.bf16.mxu0 %vm1575_vm14, %v1553_v40 }
 0x175   : > { %7799 = vmatmul.mubr.msk.bf16.gmra.mxu0 %vm1575_vm14, %v1555_v39 }
 0x176   : > { %v973_v29 = vpop.permute.xlu1 %972  ;;  %v971_v43 = vpop.permute.xlu0 %970 }
 0x177   : > { %v1328_v35 = vsel %vm1296_vm6, %v8673_v8, %v973_v29  ;;  %v1326_v7 = vsel %vm1296_vm6, %v8656_v52, %v971_v43  ;;  %vm4950_vm6 = vcmask 1041409  }
 0x179   : > { %v7776_v45 = vpop.f32.mrf.mxu0 }
 0x17a   : > { %v1781_v50 = vmul.f32 %v7776_v45, %v8861_v44  ;;  %v1086_v51 = vpop.permute.xlu1 %1085  ;;  %v1084_v56 = vpop.permute.xlu0 %1083 }
 0x17b   : > { %v1646_v49 = vpop.f32.mrf.mxu0  ;;  %v1361_v39 = vsel %vm1329_vm7, %v1328_v35, %v1086_v51  ;;  %v1359_v40 = vsel %vm1329_vm7, %v1326_v7, %v1084_v56  ;;  %vm4952_vm7 = vcmask 1042434  }
 0x17c   : > { %v1779_v41 = vmul.f32 %v8861_v44, %v1646_v49  ;;  %v1819_v60 = vadd.f32 %v8873_v53, %v1781_v50 }
 0x17d   : > { %v7777_v59 = vpop.f32.mrf.mxu0 }
 0x17e   : > { %v1782_v57 = vmul.f32 %v7777_v59, %v8861_v44  ;;  %v1119_v47 = vpop.permute.xlu1 %1118  ;;  %v1117_v37 = vpop.permute.xlu0 %1116  ;;  %v1817_v1 = vadd.f32 %v8873_v53, %v1779_v41  ;;  %v1851_v30 = vmax.f32 %v1819_v60, 0.0 }
 0x17f   : > { %v1649_v63 = vpop.f32.mrf.mxu0  ;;  %v1394_v29 = vsel %vm1362_vm8, %v1361_v39, %v1119_v47  ;;  %v1392_v45 = vsel %vm1362_vm8, %v1359_v40, %v1117_v37  ;;  %vm4954_vm8 = vcmask 1043459  }
 0x180   : > { %v1820_v4 = vadd.f32 %v8873_v53, %v1782_v57  ;;  %v1780_v5 = vmul.f32 %v8861_v44, %v1649_v63  ;;  %v1849_v15 = vmax.f32 %v1817_v1, 0.0 }
 0x182   : > { %v1852_v0 = vmax.f32 %v1820_v4, 0.0  ;;  %v1818_v62 = vadd.f32 %v8873_v53, %v1780_v5  ;;  %v1163_v9 = vpop.permute.xlu1 %1162  ;;  %v1161_v14 = vpop.permute.xlu0 %1160 }
 0x183   : > { %v1427_v46 = vsel %vm1395_vm9, %v1394_v29, %v1163_v9  ;;  %v1425_v49 = vsel %vm1395_vm9, %v1392_v45, %v1161_v14  ;;  %vm4956_vm9 = vcmask 1044484  }
 0x184   : > { %v1882_v16 = vpack.c.bf16 %v1852_v0, %v1851_v30  ;;  %v1850_v13 = vmax.f32 %v1818_v62, 0.0 }
 0x186   : > { %v1943_v48 = vshrl.u32 %v1882_v16, 16  ;;  %v1881_v22 = vpack.c.bf16 %v1850_v13, %v1849_v15  ;;  %v1199_v19 = vpop.permute.xlu1 %1198  ;;  %v1197_v28 = vpop.permute.xlu0 %1196  ;;  %v1946_v25 = vshll.u32 %v1882_v16, 16 }
 0x187   : > { %v1460_v56 = vsel %vm1428_vm10, %v1427_v46, %v1199_v19  ;;  %v1458_v55 = vsel %vm1428_vm10, %v1425_v49, %v1197_v28  ;;  %vm4958_vm10 = vcmask 1045509  }
 0x188   : > { %v1945_v24 = vrot.slane %v1943_v48, 7  ;;  %v1936_v26 = vshrl.u32 %v1881_v22, 16  ;;  %v1939_v11 = vshll.u32 %v1881_v22, 16 }
 0x18a   : > { %v1948_v20 = vor.u32 %v1946_v25, %v1945_v24  ;;  %v1938_v33 = vrot.slane %v1936_v26, 7  ;;  %v1231_v27 = vpop.permute.xlu1 %1230  ;;  %v2096_v34 = vsel %vm8280_vm2, %v1945_v24, 0  ;;  %v1229_v21 = vpop.permute.xlu0 %1228 }
 0x18b   : > { %v2357_v58 = vrot.slane %v2096_v34, 1  ;;  %v1493_v60 = vsel %vm1461_vm11, %v1460_v56, %v1231_v27  ;;  %v1491_v57 = vsel %vm1461_vm11, %v1458_v55, %v1229_v21  ;;  %v2131_v37 = vshll.u32 %v2096_v34, 16 }
 0x18c   : > { %v8914_v36 = vsel %vm8280_vm2, 0, %v1948_v20  ;;  %v1941_v38 = vor.u32 %v1939_v11, %v1938_v33  ;;  %v8934_v42 = vsel %vm8280_vm2, %v1938_v33, 0  ;;  %vm4960_vm11 = vcmask 1046534  }
 0x18d   : > { %2433 = vrot.lane.b32.xlu1 %v8914_v36, %s8158_s20  ;;  %2511 = vrot.lane.b32.xlu0 %v8914_v36, %s11239_s21  ;;  %v2356_v8 = vrot.slane %v8914_v36, 1  ;;  %v2126_v52 = vshll.u32 %v8914_v36, 16  ;;  %v2354_v61 = vrot.slane %v8934_v42, 1  ;;  %v2124_v63 = vshrl.u32 %v8914_v36, 16 }
 0x18e   : > { %v1263_v31 = vpop.permute.xlu1 %1262  ;;  %v8927_v43 = vsel %vm8280_vm2, 0, %v1941_v38  ;;  %v1261_v50 = vpop.permute.xlu0 %1260  ;;  %v2133_v12 = vrot.slane %v2131_v37, 1  ;;  %v2119_v39 = vshll.u32 %v8934_v42, 16 }
 0x18f   : > { %v2358_v51 = vsel %vm1006_vm3, %v2356_v8, %v2357_v58  ;;  %v2353_v41 = vrot.slane %v8927_v43, 1  ;;  %v2128_v59 = vrot.slane %v2126_v52, 1  ;;  %v1526_v1 = vsel %vm1494_vm12, %v1493_v60, %v1263_v31 }
 0x190   : > { %v1524_v4 = vsel %vm1494_vm12, %v1491_v57, %v1261_v50  ;;  %v2114_v27 = vshll.u32 %v8927_v43, 16  ;;  %v2112_v40 = vshrl.u32 %v8927_v43, 16  ;;  %vm4962_vm12 = vcmask 1047559  }
 0x191   : > { %2431 = vrot.lane.b32.xlu1 %v8927_v43, %s8158_s20  ;;  %2481 = vrot.lane.b32.xlu0 %v2358_v51, %s11240_s22  ;;  %v2355_v0 = vsel %vm1006_vm3, %v2353_v41, %v2354_v61  ;;  %v2129_v62 = vor.u32 %v2128_v59, %v2124_v63 }
 0x192   : > { %v1295_v47 = vpop.permute.xlu1 %1294  ;;  %v1293_v5 = vpop.permute.xlu0 %1292  ;;  %v2116_v38 = vrot.slane %v2114_v27, 1 }
 0x193   : > { %v1559_v6 = vsel %vm1527_vm13, %v1526_v1, %v1295_v47  ;;  %v1557_v30 = vsel %vm1527_vm13, %v1524_v4, %v1293_v5  ;;  %v8959_v16 = vsel %vm749_vm4, %v2129_v62, %v2133_v12 }
 0x194   : > { %7802 = vmatprep.mubr.msk.bf16.mxu0 %vm1575_vm14, %v1557_v30  ;;  %v2117_v46 = vor.u32 %v2116_v38, %v2112_v40 }
 0x195   : > { %2402 = vrot.lane.b32.xlu1 %v2358_v51, %s11239_s21  ;;  %2479 = vrot.lane.b32.xlu0 %v2355_v0, %s11240_s22 }
 0x196   : > { %v7780_v9 = vpop.f32.mrf.mxu0  ;;  %7803 = vmatmul.mubr.msk.bf16.gmra.mxu0 %vm1575_vm14, %v1559_v6 }
 0x197   : > { %v1785_v14 = vmul.f32 %v7780_v9, %v8861_v44  ;;  %7810 = vmatprep.mubr.msk.bf16.mxu0 %vm1527_vm13, %v2358_v51  ;;  %v2121_v51 = vrot.slane %v2119_v39, 1 }
 0x198   : > { %v1662_v15 = vpop.f32.mrf.mxu0 }
 0x199   : > { %v1783_v13 = vmul.f32 %v8861_v44, %v1662_v15  ;;  %2400 = vrot.lane.b32.xlu1 %v2355_v0, %s11239_s21  ;;  %2543 = vrot.lane.b32.xlu0 %v8959_v16, %s8158_s20  ;;  %v1823_v48 = vadd.f32 %v8873_v53, %v1785_v14  ;;  %v8998_v59 = vsel %vm749_vm4, %v2117_v46, %v2121_v51 }
 0x19a   : > { %v7781_v17 = vpop.f32.mrf.mxu0 }
 0x19b   : > { %v1786_v22 = vmul.f32 %v7781_v17, %v8861_v44  ;;  %v1821_v23 = vadd.f32 %v8873_v53, %v1783_v13  ;;  %v1855_v25 = vmax.f32 %v1823_v48, 0.0 }
 0x19c   : > { %v1665_v19 = vpop.f32.mrf.mxu0 }
 0x19d   : > { %v1824_v28 = vadd.f32 %v8873_v53, %v1786_v22  ;;  %v1784_v24 = vmul.f32 %v8861_v44, %v1665_v19  ;;  %2295 = vrot.lane.b32.xlu1 %v8959_v16, %s11240_s22  ;;  %v1853_v20 = vmax.f32 %v1821_v23, 0.0 }
 0x19f   : > { %v1856_v26 = vmax.f32 %v1824_v28, 0.0  ;;  %v1822_v54 = vadd.f32 %v8873_v53, %v1784_v24 }
 0x1a1   : > { %v1884_v33 = vpack.c.bf16 %v1856_v26, %v1855_v25  ;;  %v1854_v11 = vmax.f32 %v1822_v54, 0.0 }
 0x1a3   : > { %v1957_v34 = vshrl.u32 %v1884_v33, 16  ;;  %v1883_v32 = vpack.c.bf16 %v1854_v11, %v1853_v20  ;;  %v1960_v35 = vshll.u32 %v1884_v33, 16 }
 0x1a5   : > { %v1959_v21 = vrot.slane %v1957_v34, 7  ;;  %v1950_v7 = vshrl.u32 %v1883_v32, 16  ;;  %v1953_v52 = vshll.u32 %v1883_v32, 16 }
 0x1a7   : > { %v1962_v8 = vor.u32 %v1960_v35, %v1959_v21  ;;  %v1952_v58 = vrot.slane %v1950_v7, 7  ;;  %v2098_v50 = vsel %vm8280_vm2, %v1959_v21, 0 }
 0x1a8   : > { %v2363_v55 = vrot.slane %v2098_v50, 1  ;;  %v2155_v37 = vshll.u32 %v2098_v50, 16 }
 0x1a9   : > { %v1955_v29 = vor.u32 %v1953_v52, %v1952_v58  ;;  %v8978_v31 = vsel %vm8280_vm2, %v1952_v58, 0  ;;  %v8982_v45 = vsel %vm8280_vm2, 0, %v1962_v8 }
 0x1aa   : > { %2437 = vrot.lane.b32.xlu1 %v8982_v45, %s8158_s20  ;;  %2515 = vrot.lane.b32.xlu0 %v8982_v45, %s11239_s21  ;;  %v2362_v49 = vrot.slane %v8982_v45, 1  ;;  %v2360_v56 = vrot.slane %v8978_v31, 1  ;;  %v2150_v60 = vshll.u32 %v8982_v45, 16  ;;  %v2148_v63 = vshrl.u32 %v8982_v45, 16 }
 0x1ab   : > { %v8992_v42 = vsel %vm8280_vm2, 0, %v1955_v29  ;;  %v2157_v6 = vrot.slane %v2155_v37, 1  ;;  %v2143_v32 = vshll.u32 %v8978_v31, 16 }
 0x1ac   : > { %v2359_v41 = vrot.slane %v8992_v42, 1  ;;  %v2364_v47 = vsel %vm1006_vm3, %v2362_v49, %v2363_v55  ;;  %v2152_v61 = vrot.slane %v2150_v60, 1  ;;  %v2138_v26 = vshll.u32 %v8992_v42, 16 }
 0x1ad   : > { %v2136_v38 = vshrl.u32 %v8992_v42, 16  ;;  %v2145_v31 = vrot.slane %v2143_v32, 1 }
 0x1ae   : > { %2293 = vrot.lane.b32.xlu1 %v8998_v59, %s11240_s22  ;;  %2513 = vrot.lane.b32.xlu0 %v8992_v42, %s11239_s21  ;;  %v2361_v57 = vsel %vm1006_vm3, %v2359_v41, %v2360_v56  ;;  %v2153_v1 = vor.u32 %v2152_v61, %v2148_v63  ;;  %v2140_v34 = vrot.slane %v2138_v26, 1 }
 0x1af   : > { %7811 = vmatmul.mubr.msk.bf16.vlgmr.msra.gmra.mxu0 %vm1527_vm13, %v2361_v57 }
 0x1b0   : > { %7814 = vmatprep.mubr.msk.bf16.mxu0 %vm1527_vm13, %v2364_v47  ;;  %v9018_v62 = vsel %vm749_vm4, %v2153_v1, %v2157_v6  ;;  %v2141_v58 = vor.u32 %v2140_v34, %v2136_v38 }
 0x1b2   : > { %2435 = vrot.lane.b32.xlu1 %v8992_v42, %s8158_s20  ;;  %2485 = vrot.lane.b32.xlu0 %v2364_v47, %s11240_s22  ;;  %v9056_v49 = vsel %vm749_vm4, %v2141_v58, %v2145_v31 }
 0x1b6   : > { %2406 = vrot.lane.b32.xlu1 %v2364_v47, %s11239_s21  ;;  %2483 = vrot.lane.b32.xlu0 %v2361_v57, %s11240_s22  ;;  %v7784_v4 = vpop.f32.mrf.mxu0 }
 0x1b7   : > { %v1789_v5 = vmul.f32 %v7784_v4, %v8861_v44 }
 0x1b8   : > { %v1678_v30 = vpop.f32.mrf.mxu0 }
 0x1b9   : > { %v1787_v0 = vmul.f32 %v8861_v44, %v1678_v30  ;;  %v1827_v12 = vadd.f32 %v8873_v53, %v1789_v5 }
 0x1ba   : > { %2404 = vrot.lane.b32.xlu1 %v2361_v57, %s11239_s21  ;;  %v7785_v9 = vpop.f32.mrf.mxu0  ;;  %2547 = vrot.lane.b32.xlu0 %v9018_v62, %s8158_s20 }
 0x1bb   : > { %v1790_v14 = vmul.f32 %v7785_v9, %v8861_v44  ;;  %v1825_v13 = vadd.f32 %v8873_v53, %v1787_v0  ;;  %v1859_v22 = vmax.f32 %v1827_v12, 0.0 }
 0x1bc   : > { %v1681_v15 = vpop.f32.mrf.mxu0 }
 0x1bd   : > { %v1828_v17 = vadd.f32 %v8873_v53, %v1790_v14  ;;  %v1788_v48 = vmul.f32 %v8861_v44, %v1681_v15  ;;  %v1857_v28 = vmax.f32 %v1825_v13, 0.0 }
 0x1be   : > { %2299 = vrot.lane.b32.xlu1 %v9018_v62, %s11240_s22 }
 0x1bf   : > { %v1860_v19 = vmax.f32 %v1828_v17, 0.0  ;;  %v1826_v23 = vadd.f32 %v8873_v53, %v1788_v48 }
 0x1c1   : > { %v1886_v24 = vpack.c.bf16 %v1860_v19, %v1859_v22  ;;  %v1858_v25 = vmax.f32 %v1826_v23, 0.0 }
 0x1c3   : > { %v1971_v54 = vshrl.u32 %v1886_v24, 16  ;;  %v1885_v20 = vpack.c.bf16 %v1858_v25, %v1857_v28  ;;  %v1974_v11 = vshll.u32 %v1886_v24, 16 }
 0x1c5   : > { %v1973_v33 = vrot.slane %v1971_v54, 7  ;;  %v1964_v27 = vshrl.u32 %v1885_v20, 16  ;;  %v1967_v7 = vshll.u32 %v1885_v20, 16 }
 0x1c7   : > { %v1976_v21 = vor.u32 %v1974_v11, %v1973_v33  ;;  %v1966_v35 = vrot.slane %v1964_v27, 7  ;;  %v2100_v40 = vsel %vm8280_vm2, %v1973_v33, 0 }
 0x1c8   : > { %v2369_v56 = vrot.slane %v2100_v40, 1  ;;  %v2179_v37 = vshll.u32 %v2100_v40, 16 }
 0x1c9   : > { %v1969_v39 = vor.u32 %v1967_v7, %v1966_v35  ;;  %v9036_v8 = vsel %vm8280_vm2, 0, %v1976_v21  ;;  %v9040_v52 = vsel %vm8280_vm2, %v1966_v35, 0 }
 0x1ca   : > { %2441 = vrot.lane.b32.xlu1 %v9036_v8, %s8158_s20  ;;  %2519 = vrot.lane.b32.xlu0 %v9036_v8, %s11239_s21  ;;  %v2368_v46 = vrot.slane %v9036_v8, 1  ;;  %v2366_v51 = vrot.slane %v9040_v52, 1  ;;  %v2174_v60 = vshll.u32 %v9036_v8, 16  ;;  %v2172_v63 = vshrl.u32 %v9036_v8, 16 }
 0x1cb   : > { %v9050_v29 = vsel %vm8280_vm2, 0, %v1969_v39  ;;  %v2181_v9 = vrot.slane %v2179_v37, 1  ;;  %v2167_v34 = vshll.u32 %v9040_v52, 16  ;;  %v2292_v37 = vpop.permute.xlu1 %2291 }
 0x1cc   : > { %v2365_v50 = vrot.slane %v9050_v29, 1  ;;  %v2370_v55 = vsel %vm1006_vm3, %v2368_v46, %v2369_v56  ;;  %v2176_v57 = vrot.slane %v2174_v60, 1  ;;  %v2162_v25 = vshll.u32 %v9050_v29, 16 }
 0x1cd   : > { %v2160_v7 = vshrl.u32 %v9050_v29, 16  ;;  %v2169_v46 = vrot.slane %v2167_v34, 1 }
 0x1ce   : > { %2297 = vrot.lane.b32.xlu1 %v9056_v49, %s11240_s22  ;;  %2545 = vrot.lane.b32.xlu0 %v9056_v49, %s8158_s20  ;;  %v2367_v41 = vsel %vm1006_vm3, %v2365_v50, %v2366_v51  ;;  %v2177_v5 = vor.u32 %v2176_v57, %v2172_v63  ;;  %v2164_v27 = vrot.slane %v2162_v25, 1 }
 0x1cf   : > { %7815 = vmatmul.mubr.msk.bf16.gmra.mxu0 %vm1527_vm13, %v2367_v41 }
 0x1d0   : > { %7818 = vmatprep.mubr.msk.bf16.mxu0 %vm1527_vm13, %v2370_v55  ;;  %v9084_v17 = vsel %vm749_vm4, %v2177_v5, %v2181_v9  ;;  %v2165_v58 = vor.u32 %v2164_v27, %v2160_v7 }
 0x1d2   : > { %2439 = vrot.lane.b32.xlu1 %v9050_v29, %s8158_s20  ;;  %2517 = vrot.lane.b32.xlu0 %v9050_v29, %s11239_s21 }
 0x1d6   : > { %2410 = vrot.lane.b32.xlu1 %v2370_v55, %s11239_s21  ;;  %2489 = vrot.lane.b32.xlu0 %v2370_v55, %s11240_s22  ;;  %v7788_v47 = vpop.f32.mrf.mxu0 }
 0x1d7   : > { %v1793_v61 = vmul.f32 %v7788_v47, %v8861_v44 }
 0x1d8   : > { %v1694_v1 = vpop.f32.mrf.mxu0 }
 0x1d9   : > { %v1791_v4 = vmul.f32 %v8861_v44, %v1694_v1  ;;  %v1831_v30 = vadd.f32 %v8873_v53, %v1793_v61 }
 0x1da   : > { %2408 = vrot.lane.b32.xlu1 %v2367_v41, %s11239_s21  ;;  %2487 = vrot.lane.b32.xlu0 %v2367_v41, %s11240_s22  ;;  %v7789_v6 = vpop.f32.mrf.mxu0  ;;  %v9116_v41 = vsel %vm749_vm4, %v2165_v58, %v2169_v46  ;;  %v2576_v46 = vsel %vm1527_vm13, %v8287_v3, %v2292_v37 }
 0x1db   : > { %v1794_v0 = vmul.f32 %v7789_v6, %v8861_v44  ;;  %v1829_v14 = vadd.f32 %v8873_v53, %v1791_v4  ;;  %v1863_v48 = vmax.f32 %v1831_v30, 0.0 }
 0x1dc   : > { %v1697_v12 = vpop.f32.mrf.mxu0 }
 0x1dd   : > { %v1832_v15 = vadd.f32 %v8873_v53, %v1794_v0  ;;  %v1792_v13 = vmul.f32 %v8861_v44, %v1697_v12  ;;  %v1861_v23 = vmax.f32 %v1829_v14, 0.0 }
 0x1de   : > { %2303 = vrot.lane.b32.xlu1 %v9084_v17, %s11240_s22  ;;  %2551 = vrot.lane.b32.xlu0 %v9084_v17, %s8158_s20 }
 0x1df   : > { %v1864_v22 = vmax.f32 %v1832_v15, 0.0  ;;  %v1830_v19 = vadd.f32 %v8873_v53, %v1792_v13  ;;  %v2399_v13 = vpop.permute.xlu1 %2398 }
 0x1e1   : > { %v1888_v28 = vpack.c.bf16 %v1864_v22, %v1863_v48  ;;  %v1862_v24 = vmax.f32 %v1830_v19, 0.0 }
 0x1e3   : > { %v1985_v26 = vshrl.u32 %v1888_v28, 16  ;;  %v1887_v54 = vpack.c.bf16 %v1862_v24, %v1861_v23  ;;  %v1988_v33 = vshll.u32 %v1888_v28, 16 }
 0x1e5   : > { %v1987_v20 = vrot.slane %v1985_v26, 7  ;;  %v1978_v11 = vshrl.u32 %v1887_v54, 16  ;;  %v1981_v35 = vshll.u32 %v1887_v54, 16 }
 0x1e7   : > { %v1990_v32 = vor.u32 %v1988_v33, %v1987_v20  ;;  %v1980_v21 = vrot.slane %v1978_v11, 7  ;;  %v2102_v52 = vsel %vm8280_vm2, %v1987_v20, 0 }
 0x1e8   : > { %v2375_v55 = vrot.slane %v2102_v52, 1  ;;  %v2203_v5 = vshll.u32 %v2102_v52, 16 }
 0x1e9   : > { %v1983_v38 = vor.u32 %v1981_v35, %v1980_v21  ;;  %v9096_v39 = vsel %vm8280_vm2, 0, %v1990_v32  ;;  %v9100_v40 = vsel %vm8280_vm2, %v1980_v21, 0 }
 0x1ea   : > { %2445 = vrot.lane.b32.xlu1 %v9096_v39, %s8158_s20  ;;  %2523 = vrot.lane.b32.xlu0 %v9096_v39, %s11239_s21  ;;  %v2374_v50 = vrot.slane %v9096_v39, 1  ;;  %v2372_v56 = vrot.slane %v9100_v40, 1  ;;  %v2198_v47 = vshll.u32 %v9096_v39, 16  ;;  %v2196_v4 = vshrl.u32 %v9096_v39, 16 }
 0x1eb   : > { %v9110_v31 = vsel %vm8280_vm2, 0, %v1983_v38  ;;  %v2205_v15 = vrot.slane %v2203_v5, 1 }
 0x1ec   : > { %v2371_v51 = vrot.slane %v9110_v31, 1  ;;  %v2376_v57 = vsel %vm1006_vm3, %v2374_v50, %v2375_v55  ;;  %v2200_v61 = vrot.slane %v2198_v47, 1  ;;  %v2186_v27 = vshll.u32 %v9110_v31, 16 }
 0x1ed   : > { %v2191_v50 = vshll.u32 %v9100_v40, 16  ;;  %v2609_v40 = vsel %vm2607_vm15, %v2576_v46, %v2399_v13 }
 0x1ee   : > { %2301 = vrot.lane.b32.xlu1 %v9116_v41, %s11240_s22  ;;  %2549 = vrot.lane.b32.xlu0 %v9116_v41, %s8158_s20  ;;  %v2373_v60 = vsel %vm1006_vm3, %v2371_v51, %v2372_v56  ;;  %v2201_v0 = vor.u32 %v2200_v61, %v2196_v4  ;;  %v2188_v52 = vrot.slane %v2186_v27, 1 }
 0x1ef   : > { %7819 = vmatmul.mubr.msk.bf16.gmra.mxu0 %vm1527_vm13, %v2373_v60 }
 0x1f0   : > { %7822 = vmatprep.mubr.msk.bf16.mxu0 %vm1527_vm13, %v2376_v57  ;;  %v9144_v28 = vsel %vm749_vm4, %v2201_v0, %v2205_v15  ;;  %v2193_v0 = vrot.slane %v2191_v50, 1 }
 0x1f2   : > { %2443 = vrot.lane.b32.xlu1 %v9110_v31, %s8158_s20  ;;  %2521 = vrot.lane.b32.xlu0 %v9110_v31, %s11239_s21 }
 0x1f5   : > { %v7792_v63 = vpop.f32.mrf.mxu0 }
 0x1f6   : > { %2414 = vrot.lane.b32.xlu1 %v2376_v57, %s11239_s21  ;;  %2493 = vrot.lane.b32.xlu0 %v2376_v57, %s11240_s22  ;;  %v1797_v1 = vmul.f32 %v7792_v63, %v8861_v44  ;;  %v2184_v57 = vshrl.u32 %v9110_v31, 16 }
 0x1f7   : > { %v1710_v6 = vpop.f32.mrf.mxu0 }
 0x1f8   : > { %v1795_v30 = vmul.f32 %v8861_v44, %v1710_v6  ;;  %v1835_v12 = vadd.f32 %v8873_v53, %v1797_v1  ;;  %v2189_v4 = vor.u32 %v2188_v52, %v2184_v57 }
 0x1f9   : > { %v7793_v9 = vpop.f32.mrf.mxu0 }
 0x1fa   : > { %2412 = vrot.lane.b32.xlu1 %v2373_v60, %s11239_s21  ;;  %2491 = vrot.lane.b32.xlu0 %v2373_v60, %s11240_s22  ;;  %v1798_v14 = vmul.f32 %v7793_v9, %v8861_v44  ;;  %v1833_v22 = vadd.f32 %v8873_v53, %v1795_v30  ;;  %v1867_v24 = vmax.f32 %v1835_v12, 0.0  ;;  %v9187_v13 = vsel %vm749_vm4, %v2189_v4, %v2193_v0 }
 0x1fb   : > { %v1713_v48 = vpop.f32.mrf.mxu0 }
 0x1fc   : > { %v1836_v19 = vadd.f32 %v8873_v53, %v1798_v14  ;;  %v1796_v23 = vmul.f32 %v8861_v44, %v1713_v48  ;;  %v1865_v20 = vmax.f32 %v1833_v22, 0.0 }
 0x1fe   : > { %2307 = vrot.lane.b32.xlu1 %v9144_v28, %s11240_s22  ;;  %2555 = vrot.lane.b32.xlu0 %v9144_v28, %s8158_s20  ;;  %v1868_v25 = vmax.f32 %v1836_v19, 0.0  ;;  %v1834_v26 = vadd.f32 %v8873_v53, %v1796_v23 }
 0x1ff   : > { %v2512_v54 = vpop.permute.xlu0 %2511  ;;  %v9152_v34 = vpop.permute.xlu1 %2433 }
 0x200   : > { %v1890_v33 = vpack.c.bf16 %v1868_v25, %v1867_v24  ;;  %v1866_v11 = vmax.f32 %v1834_v26, 0.0 }
 0x202   : > { %v1999_v32 = vshrl.u32 %v1890_v33, 16  ;;  %v1889_v21 = vpack.c.bf16 %v1866_v11, %v1865_v20  ;;  %v2002_v38 = vshll.u32 %v1890_v33, 16 }
 0x203   : > { %v9154_v35 = vpop.permute.xlu0 %2481  ;;  %v2432_v47 = vpop.permute.xlu1 %2431 }
 0x204   : > { %v2001_v7 = vrot.slane %v1999_v32, 7  ;;  %v1992_v58 = vshrl.u32 %v1889_v21, 16  ;;  %v1995_v55 = vshll.u32 %v1889_v21, 16  ;;  %v2642_v19 = vsel %vm2640_vm0, %v2609_v40, %v2432_v47 }
 0x206   : > { %v2004_v51 = vor.u32 %v2002_v38, %v2001_v7  ;;  %v1994_v56 = vrot.slane %v1992_v58, 7 }
 0x207   : > { %v2480_v60 = vpop.permute.xlu0 %2479  ;;  %v9189_v22 = vpop.permute.xlu1 %2402 }
 0x208   : > { %v2691_v61 = vsel %vm1527_vm13, %v8998_v59, %v2480_v60  ;;  %v1997_v63 = vor.u32 %v1995_v55, %v1994_v56  ;;  %v9164_v1 = vsel %vm8280_vm2, 0, %v2004_v51  ;;  %v9168_v37 = vsel %vm8280_vm2, %v1994_v56, 0 }
 0x209   : > { %2449 = vrot.lane.b32.xlu1 %v9164_v1, %s8158_s20  ;;  %2527 = vrot.lane.b32.xlu0 %v9164_v1, %s11239_s21  ;;  %v2104_v59 = vsel %vm8280_vm2, %v2001_v7, 0  ;;  %v2738_v30 = vsel %vm2607_vm15, %v2691_v61, %v2512_v54  ;;  %v2380_v9 = vrot.slane %v9164_v1, 1  ;;  %v2378_v15 = vrot.slane %v9168_v37, 1 }
 0x20a   : > { %v9179_v5 = vsel %vm8280_vm2, 0, %v1997_v63  ;;  %v2381_v48 = vrot.slane %v2104_v59, 1  ;;  %v2222_v25 = vshll.u32 %v9164_v1, 16  ;;  %v2220_v11 = vshrl.u32 %v9164_v1, 16 }
 0x20b   : > { %v2544_v6 = vpop.permute.xlu0 %2543  ;;  %v2377_v14 = vrot.slane %v9179_v5, 1  ;;  %v9205_v26 = vpop.permute.xlu1 %2400  ;;  %v2227_v27 = vshll.u32 %v2104_v59, 16  ;;  %v2210_v0 = vshll.u32 %v9179_v5, 16 }
 0x20c   : > { %v2770_v12 = vsel %vm2640_vm0, %v2738_v30, %v2544_v6  ;;  %v2382_v24 = vsel %vm1006_vm3, %v2380_v9, %v2381_v48  ;;  %v2224_v54 = vrot.slane %v2222_v25, 1 }
 0x20d   : > { %3005 = vmatprep.mubr.bf16.mxu1 %v2770_v12  ;;  %2305 = vrot.lane.b32.xlu1 %v9187_v13, %s11240_s22  ;;  %v2379_v23 = vsel %vm1006_vm3, %v2377_v14, %v2378_v15  ;;  %v2229_v50 = vrot.slane %v2227_v27, 1 }
 0x20e   : > { %2553 = vrot.lane.b32.xlu0 %v9187_v13, %s8158_s20  ;;  %3006 = vmatmul.mubr.bf16.vlgmr.msra.gmra.mxu1 %v2642_v19  ;;  %v2225_v7 = vor.u32 %v2224_v54, %v2220_v11  ;;  %v2208_v11 = vshrl.u32 %v9179_v5, 16 }
 0x20f   : > { %7823 = vmatmul.mubr.msk.bf16.gmra.mxu0 %vm1527_vm13, %v2379_v23  ;;  %v9212_v38 = vpop.permute.xlu1 %2295 }
 0x210   : > { %7826 = vmatprep.mubr.msk.bf16.mxu0 %vm1527_vm13, %v2382_v24  ;;  %v9222_v57 = vsel %vm749_vm4, %v2225_v7, %v2229_v50 }
 0x211   : > { %2447 = vrot.lane.b32.xlu1 %v9179_v5, %s8158_s20 }
 0x212   : > { %2525 = vrot.lane.b32.xlu0 %v9179_v5, %s11239_s21 }
 0x215   : > { %2418 = vrot.lane.b32.xlu1 %v2382_v24, %s11239_s21  ;;  %v7796_v20 = vpop.f32.mrf.mxu0 }
 0x216   : > { %2497 = vrot.lane.b32.xlu0 %v2382_v24, %s11240_s22  ;;  %v1801_v33 = vmul.f32 %v7796_v20, %v8861_v44  ;;  %v2215_v24 = vshll.u32 %v9168_v37, 16 }
 0x217   : > { %v1726_v32 = vpop.f32.mrf.mxu0 }
 0x218   : > { %v1799_v21 = vmul.f32 %v8861_v44, %v1726_v32  ;;  %v1839_v52 = vadd.f32 %v8873_v53, %v1801_v33 }
 0x219   : > { %2416 = vrot.lane.b32.xlu1 %v2379_v23, %s11239_s21  ;;  %v7797_v58 = vpop.f32.mrf.mxu0 }
 0x21a   : > { %2495 = vrot.lane.b32.xlu0 %v2379_v23, %s11240_s22  ;;  %v1802_v46 = vmul.f32 %v7797_v58, %v8861_v44  ;;  %v1837_v56 = vadd.f32 %v8873_v53, %v1799_v21  ;;  %v1871_v61 = vmax.f32 %v1839_v52, 0.0  ;;  %v2212_v23 = vrot.slane %v2210_v0, 1 }
 0x21b   : > { %v1729_v51 = vpop.f32.mrf.mxu0 }
 0x21c   : > { %v1840_v55 = vadd.f32 %v8873_v53, %v1802_v46  ;;  %v1800_v60 = vmul.f32 %v8861_v44, %v1729_v51  ;;  %v9224_v47 = vpop.permute.xlu1 %2437  ;;  %v1869_v40 = vmax.f32 %v1837_v56, 0.0  ;;  %v9231_v30 = vpop.permute.xlu0 %2515  ;;  %v2213_v21 = vor.u32 %v2212_v23, %v2208_v11 }
 0x21d   : > { %2311 = vrot.lane.b32.xlu1 %v9222_v57, %s11240_s22  ;;  %v2217_v46 = vrot.slane %v2215_v24, 1 }
 0x21e   : > { %2559 = vrot.lane.b32.xlu0 %v9222_v57, %s8158_s20  ;;  %v1872_v63 = vmax.f32 %v1840_v55, 0.0  ;;  %v1838_v4 = vadd.f32 %v8873_v53, %v1800_v60 }
 0x21f   : > { %v9261_v60 = vsel %vm749_vm4, %v2213_v21, %v2217_v46 }
 0x220   : > { %v1892_v59 = vpack.c.bf16 %v1872_v63, %v1871_v61  ;;  %v1870_v6 = vmax.f32 %v1838_v4, 0.0  ;;  %v2294_v14 = vpop.permute.xlu1 %2293  ;;  %v9235_v33 = vpop.permute.xlu0 %2513 }
 0x222   : > { %v2013_v9 = vshrl.u32 %v1892_v59, 16  ;;  %v1891_v12 = vpack.c.bf16 %v1870_v6, %v1869_v40  ;;  %v2016_v48 = vshll.u32 %v1892_v59, 16 }
 0x224   : > { %v2015_v15 = vrot.slane %v2013_v9, 7  ;;  %v2006_v19 = vshrl.u32 %v1891_v12, 16  ;;  %v2009_v20 = vshll.u32 %v1891_v12, 16  ;;  %v9244_v58 = vpop.permute.xlu1 %2435  ;;  %v9258_v55 = vpop.permute.xlu0 %2485 }
 0x226   : > { %v2018_v25 = vor.u32 %v2016_v48, %v2015_v15  ;;  %v2008_v54 = vrot.slane %v2006_v19, 7  ;;  %v2106_v37 = vsel %vm8280_vm2, %v2015_v15, 0 }
 0x227   : > { %v2387_v61 = vrot.slane %v2106_v37, 1  ;;  %v2251_v23 = vshll.u32 %v2106_v37, 16  ;;  %v2578_v37 = vsel %vm1527_vm13, %v8927_v43, %v2294_v14 }
 0x228   : > { %v2011_v27 = vor.u32 %v2009_v20, %v2008_v54  ;;  %v9240_v32 = vsel %vm8280_vm2, 0, %v2018_v25  ;;  %v2105_v7 = vsel %vm8280_vm2, %v2008_v54, 0  ;;  %v9270_v40 = vpop.permute.xlu1 %2406  ;;  %v2484_v6 = vpop.permute.xlu0 %2483 }
 0x229   : > { %2453 = vrot.lane.b32.xlu1 %v9240_v32, %s8158_s20  ;;  %2531 = vrot.lane.b32.xlu0 %v9240_v32, %s11239_s21  ;;  %v2386_v50 = vrot.slane %v9240_v32, 1  ;;  %v2384_v56 = vrot.slane %v2105_v7, 1  ;;  %v2246_v59 = vshll.u32 %v9240_v32, 16  ;;  %v2244_v19 = vshrl.u32 %v9240_v32, 16 }
 0x22a   : > { %v9254_v52 = vsel %vm8280_vm2, 0, %v2011_v27 }
 0x22b   : > { %v2383_v51 = vrot.slane %v9254_v52, 1  ;;  %v2388_v4 = vsel %vm1006_vm3, %v2386_v50, %v2387_v61  ;;  %v2234_v0 = vshll.u32 %v9254_v52, 16  ;;  %v2248_v9 = vrot.slane %v2246_v59, 1 }
 0x22c   : > { %v9279_v12 = vpop.permute.xlu1 %2404  ;;  %v2548_v54 = vpop.permute.xlu0 %2547  ;;  %v2232_v21 = vshrl.u32 %v9254_v52, 16 }
 0x22d   : > { %2309 = vrot.lane.b32.xlu1 %v9261_v60, %s11240_s22  ;;  %2557 = vrot.lane.b32.xlu0 %v9261_v60, %s8158_s20  ;;  %v2385_v63 = vsel %vm1006_vm3, %v2383_v51, %v2384_v56  ;;  %v2236_v25 = vrot.slane %v2234_v0, 1  ;;  %v2249_v11 = vor.u32 %v2248_v9, %v2244_v19  ;;  %v2253_v51 = vrot.slane %v2251_v23, 1 }
 0x22e   : > { %7827 = vmatmul.mubr.msk.bf16.gmra.mxu0 %vm1527_vm13, %v2385_v63  ;;  %v2239_v56 = vshll.u32 %v2105_v7, 16  ;;  %v2694_v7 = vsel %vm1527_vm13, %v8959_v16, %v9154_v35  ;;  %v2611_v16 = vsel %vm2607_vm15, %v2578_v37, %v9205_v26 }
 0x22f   : > { %7830 = vmatprep.mubr.msk.bf16.mxu0 %vm1527_vm13, %v2388_v4  ;;  %v2237_v59 = vor.u32 %v2236_v25, %v2232_v21  ;;  %v2740_v23 = vsel %vm2607_vm15, %v2694_v7, %v9235_v33 }
 0x230   : > { %v9293_v61 = vpop.permute.xlu1 %2299 }
 0x231   : > { %2451 = vrot.lane.b32.xlu1 %v9254_v52, %s8158_s20  ;;  %2529 = vrot.lane.b32.xlu0 %v9254_v52, %s11239_s21 }
 0x235   : > { %2422 = vrot.lane.b32.xlu1 %v2388_v4, %s11239_s21  ;;  %2501 = vrot.lane.b32.xlu0 %v2388_v4, %s11240_s22  ;;  %v7800_v15 = vpop.f32.mrf.mxu0 }
 0x236   : > { %v1805_v48 = vmul.f32 %v7800_v15, %v8861_v44 }
 0x237   : > { %v1742_v24 = vpop.f32.mrf.mxu0 }
 0x238   : > { %v1803_v20 = vmul.f32 %v8861_v44, %v1742_v24  ;;  %v1843_v46 = vadd.f32 %v8873_v53, %v1805_v48  ;;  %v9301_v48 = vsel %vm749_vm4, %v2249_v11, %v2253_v51  ;;  %v2697_v24 = vsel %vm1527_vm13, %v9056_v49, %v2484_v6 }
 0x239   : > { %2420 = vrot.lane.b32.xlu1 %v2385_v63, %s11239_s21  ;;  %2499 = vrot.lane.b32.xlu0 %v2385_v63, %s11240_s22  ;;  %v7801_v27 = vpop.f32.mrf.mxu0  ;;  %v2645_v49 = vsel %vm2640_vm0, %v2611_v16, %v9152_v34  ;;  %v2742_v26 = vsel %vm2607_vm15, %v2697_v24, %v9231_v30 }
 0x23a   : > { %v1806_v50 = vmul.f32 %v7801_v27, %v8861_v44  ;;  %v1841_v0 = vadd.f32 %v8873_v53, %v1803_v20  ;;  %v1875_v43 = vmax.f32 %v1843_v46, 0.0  ;;  %v2776_v6 = vsel %vm2640_vm0, %v2742_v26, %v2548_v54 }
 0x23b   : > { %v1745_v4 = vpop.f32.mrf.mxu0 }
 0x23c   : > { %v1844_v63 = vadd.f32 %v8873_v53, %v1806_v50  ;;  %v1804_v9 = vmul.f32 %v8861_v44, %v1745_v4  ;;  %v9298_v15 = vpop.permute.xlu0 %2519  ;;  %v2241_v44 = vrot.slane %v2239_v56, 1  ;;  %v9315_v25 = vpop.permute.xlu1 %2441  ;;  %v1873_v35 = vmax.f32 %v1841_v0, 0.0 }
 0x23d   : > { %2315 = vrot.lane.b32.xlu1 %v9301_v48, %s11240_s22  ;;  %2563 = vrot.lane.b32.xlu0 %v9301_v48, %s8158_s20 }
 0x23e   : > { %v1876_v14 = vmax.f32 %v1844_v63, 0.0  ;;  %v1842_v19 = vadd.f32 %v8873_v53, %v1804_v9  ;;  %v9320_v21 = vsel %vm749_vm4, %v2237_v59, %v2241_v44  ;;  %v2580_v59 = vsel %vm1527_vm13, %v8914_v36, %v9212_v38 }
 0x23f   : > { %v2613_v7 = vsel %vm2607_vm15, %v2580_v59, %v9189_v22 }
 0x240   : > { %v1894_v20 = vpack.c.bf16 %v1876_v14, %v1875_v43  ;;  %v1874_v11 = vmax.f32 %v1842_v19, 0.0  ;;  %v2546_v27 = vpop.permute.xlu0 %2545  ;;  %v2298_v37 = vpop.permute.xlu1 %2297  ;;  %v2648_v38 = vsel %vm2640_vm0, %v2613_v7, %v9244_v58 }
 0x241   : > { %2313 = vrot.lane.b32.xlu1 %v9320_v21, %s11240_s22  ;;  %v2773_v53 = vsel %vm2640_vm0, %v2740_v23, %v2546_v27 }
 0x242   : > { %v2027_v33 = vshrl.u32 %v1894_v20, 16  ;;  %v1893_v46 = vpack.c.bf16 %v1874_v11, %v1873_v35  ;;  %3013 = vmatprep.mubr.bf16.mxu1 %v2773_v53  ;;  %v2030_v51 = vshll.u32 %v1894_v20, 16 }
 0x243   : > { %3014 = vmatmul.mubr.bf16.gmra.mxu1 %v2645_v49 }
 0x244   : > { %v2029_v50 = vrot.slane %v2027_v33, 7  ;;  %v2020_v56 = vshrl.u32 %v1893_v46, 16  ;;  %3021 = vmatprep.mubr.bf16.mxu1 %v2776_v6  ;;  %v9330_v4 = vpop.permute.xlu0 %2517  ;;  %v2023_v34 = vshll.u32 %v1893_v46, 16  ;;  %v9354_v19 = vpop.permute.xlu1 %2439 }
 0x246   : > { %v2032_v0 = vor.u32 %v2030_v51, %v2029_v50  ;;  %v2022_v63 = vrot.slane %v2020_v56, 7  ;;  %v2108_v36 = vsel %vm8280_vm2, %v2029_v50, 0 }
 0x247   : > { %v2393_v16 = vrot.slane %v2108_v36, 1  ;;  %v2275_v59 = vshll.u32 %v2108_v36, 16 }
 0x248   : > { %v2025_v9 = vor.u32 %v2023_v34, %v2022_v63  ;;  %v9337_v30 = vsel %vm8280_vm2, 0, %v2032_v0  ;;  %v2107_v54 = vsel %vm8280_vm2, %v2022_v63, 0  ;;  %v9356_v44 = vpop.permute.xlu0 %2489  ;;  %v9370_v49 = vpop.permute.xlu1 %2410  ;;  %v8080_v34 = vld [vmem:[%s11237_s2] ss:$0 sm:$0xff] }
 0x249   : > { %2535 = vrot.lane.b32.xlu0 %v9337_v30, %s11239_s21  ;;  %v2392_v14 = vrot.slane %v9337_v30, 1  ;;  %v2390_v23 = vrot.slane %v2107_v54, 1  ;;  %v2263_v58 = vshll.u32 %v2107_v54, 16  ;;  %v2270_v46 = vshll.u32 %v9337_v30, 16 }
 0x24a   : > { %v9351_v43 = vsel %vm8280_vm2, 0, %v2025_v9  ;;  %v2268_v56 = vshrl.u32 %v9337_v30, 16  ;;  %v2277_v36 = vrot.slane %v2275_v59, 1 }
 0x24b   : > { %3022 = vmatmul.mubr.bf16.gmra.mxu1 %v2648_v38  ;;  %2455 = vrot.lane.b32.xlu1 %v9351_v43, %s8158_s20  ;;  %v2389_v22 = vrot.slane %v9351_v43, 1  ;;  %v2258_v24 = vshll.u32 %v9351_v43, 16  ;;  %v2256_v20 = vshrl.u32 %v9351_v43, 16  ;;  %v2394_v27 = vsel %vm1006_vm3, %v2392_v14, %v2393_v16 }
 0x24c   : > { %v2265_v33 = vrot.slane %v2263_v58, 1  ;;  %v2488_v26 = vpop.permute.xlu0 %2487  ;;  %v2272_v50 = vrot.slane %v2270_v46, 1  ;;  %v9382_v0 = vpop.permute.xlu1 %2408  ;;  %v2582_v14 = vsel %vm1527_vm13, %v8992_v42, %v2298_v37  ;;  %v2700_v46 = vsel %vm1527_vm13, %v9018_v62, %v9258_v55 }
 0x24d   : > { %2561 = vrot.lane.b32.xlu0 %v9320_v21, %s8158_s20  ;;  %v2391_v35 = vsel %vm1006_vm3, %v2389_v22, %v2390_v23  ;;  %v2260_v11 = vrot.slane %v2258_v24, 1  ;;  %v8081_v23 = vld [vmem:[%s11238_s3] ss:$0 sm:$0xff] }
 0x24e   : > { %7831 = vmatmul.mubr.msk.bf16.gmra.mxu0 %vm1527_vm13, %v2391_v35  ;;  %v2273_v7 = vor.u32 %v2272_v50, %v2268_v56  ;;  %v2703_v50 = vsel %vm1527_vm13, %v9116_v41, %v2488_v26 }
 0x24f   : > { %7834 = vmatprep.mubr.msk.bf16.mxu0 %vm1527_vm13, %v2394_v27  ;;  %v2261_v53 = vor.u32 %v2260_v11, %v2256_v20 }
 0x250   : > { %v2552_v63 = vpop.permute.xlu0 %2551  ;;  %v9398_v11 = vsel %vm749_vm4, %v2273_v7, %v2277_v36 }
 0x251   : > { %2533 = vrot.lane.b32.xlu0 %v9351_v43, %s11239_s21  ;;  %v9375_v6 = vsel %vm749_vm4, %v2261_v53, %v2265_v33  ;;  %v2615_v33 = vsel %vm2607_vm15, %v2582_v14, %v9279_v12 }
 0x252   : > { %2317 = vrot.lane.b32.xlu1 %v9375_v6, %s11240_s22  ;;  %v2651_v12 = vsel %vm2640_vm0, %v2615_v33, %v9224_v47  ;;  %v2584_v47 = vsel %vm1527_vm13, %v8982_v45, %v9293_v61 }
 0x255   : > { %2505 = vrot.lane.b32.xlu0 %v2394_v27, %s11240_s22 }
 0x256   : > { %v7804_v51 = vpop.f32.mrf.mxu0  ;;  %2424 = vrot.lane.b32.xlu1 %v2391_v35, %s11239_s21 }
 0x257   : > { %v1809_v9 = vmul.f32 %v8080_v34, %v7804_v51  ;;  %v2744_v51 = vsel %vm2607_vm15, %v2700_v46, %v9330_v4  ;;  %v2746_v4 = vsel %vm2607_vm15, %v2703_v50, %v9298_v15 }
 0x258   : > { %v1758_v54 = vpop.f32.mrf.mxu0  ;;  %v2782_v26 = vsel %vm2640_vm0, %v2746_v4, %v2552_v63 }
 0x259   : > { %v1807_v38 = vmul.f32 %v8080_v34, %v1758_v54  ;;  %2503 = vrot.lane.b32.xlu0 %v2391_v35, %s11240_s22  ;;  %v1847_v24 = vadd.f32 %v8081_v23, %v1809_v9  ;;  %v9400_v35 = vpop.permute.xlu1 %2303 }
 0x25a   : > { %v7805_v22 = vpop.f32.mrf.mxu0  ;;  %2457 = vrot.lane.b32.xlu1 %v9337_v30, %s8158_s20 }
 0x25b   : > { %v1810_v58 = vmul.f32 %v8080_v34, %v7805_v22  ;;  %v1845_v42 = vadd.f32 %v8081_v23, %v1807_v38  ;;  %v1879_v56 = vmax.f32 %v1847_v24, 0.0 }
 0x25c   : > { %v9395_v16 = vpop.permute.xlu0 %2523  ;;  %v1761_v20 = vpop.f32.mrf.mxu0 }
 0x25d   : > { %v1848_v37 = vadd.f32 %v8081_v23, %v1810_v58  ;;  %v1808_v53 = vmul.f32 %v8080_v34, %v1761_v20  ;;  %2567 = vrot.lane.b32.xlu0 %v9398_v11, %s8158_s20  ;;  %v1877_v7 = vmax.f32 %v1845_v42, 0.0  ;;  %v9418_v55 = vpop.permute.xlu1 %2445 }
 0x25e   : > { %2319 = vrot.lane.b32.xlu1 %v9398_v11, %s11240_s22 }
 0x25f   : > { %v1880_v59 = vmax.f32 %v1848_v37, 0.0  ;;  %v1846_v34 = vadd.f32 %v8081_v23, %v1808_v53 }
 0x260   : > { %v2550_v9 = vpop.permute.xlu0 %2549 }
 0x261   : > { %v2779_v54 = vsel %vm2640_vm0, %v2744_v51, %v2550_v9  ;;  %v1896_v62 = vpack.c.bf16 %v1880_v59, %v1879_v56  ;;  %v1878_v41 = vmax.f32 %v1846_v34, 0.0  ;;  %2565 = vrot.lane.b32.xlu0 %v9375_v6, %s8158_s20  ;;  %v2302_v15 = vpop.permute.xlu1 %2301 }
 0x262   : > { %3029 = vmatprep.mubr.bf16.mxu1 %v2779_v54  ;;  %2426 = vrot.lane.b32.xlu1 %v2394_v27, %s11239_s21  ;;  %v2617_v27 = vsel %vm2607_vm15, %v2584_v47, %v9270_v40 }
 0x263   : > { %3030 = vmatmul.mubr.bf16.gmra.mxu1 %v2651_v12  ;;  %v2041_v38 = vshrl.u32 %v1896_v62, 16  ;;  %v1895_v14 = vpack.c.bf16 %v1878_v41, %v1877_v7  ;;  %v2044_v36 = vshll.u32 %v1896_v62, 16  ;;  %v2654_v53 = vsel %vm2640_vm0, %v2617_v27, %v9354_v19 }
 0x264   : > { %3037 = vmatprep.mubr.bf16.mxu1 %v2782_v26  ;;  %v2522_v24 = vpop.permute.xlu0 %2521 }
 0x265   : > { %v2043_v22 = vrot.slane %v2041_v38, 7  ;;  %v2034_v23 = vshrl.u32 %v1895_v14, 16  ;;  %v2037_v42 = vshll.u32 %v1895_v14, 16  ;;  %v2444_v51 = vpop.permute.xlu1 %2443 }
 0x267   : > { %v2046_v58 = vor.u32 %v2044_v36, %v2043_v22  ;;  %v2036_v20 = vrot.slane %v2034_v23, 7  ;;  %v2110_v61 = vsel %vm8280_vm2, %v2043_v22, 0 }
 0x268   : > { %v9439_v33 = vpop.permute.xlu0 %2493  ;;  %v2477_v56 = vrot.slane %v2110_v61, 1 }
 0x269   : > { %v2094_v63 = vsel %vm8280_vm2, 0, %v2046_v58  ;;  %v2039_v37 = vor.u32 %v2037_v42, %v2036_v20  ;;  %v2109_v45 = vsel %vm8280_vm2, %v2036_v20, 0  ;;  %v9456_v26 = vpop.permute.xlu1 %2414  ;;  %v2471_v58 = vshll.u32 %v2110_v61, 16 }
 0x26a   : > { %v2476_v40 = vrot.slane %v2094_v63, 1  ;;  %v2396_v50 = vrot.slane %v2109_v45, 1  ;;  %v2287_v34 = vshll.u32 %v2109_v45, 16  ;;  %v2466_v14 = vshll.u32 %v2094_v63, 16 }
 0x26b   : > { %3038 = vmatmul.mubr.bf16.gmra.mxu1 %v2654_v53  ;;  %v9443_v46 = vsel %vm8280_vm2, 0, %v2039_v37  ;;  %v2464_v23 = vshrl.u32 %v2094_v63, 16  ;;  %v2586_v20 = vsel %vm1527_vm13, %v9050_v29, %v2302_v15  ;;  %v2473_v37 = vrot.slane %v2471_v58, 1 }
 0x26c   : > { %2459 = vrot.lane.b32.xlu1 %v9443_v46, %s8158_s20  ;;  %2537 = vrot.lane.b32.xlu0 %v9443_v46, %s11239_s21  ;;  %v2395_v19 = vrot.slane %v9443_v46, 1  ;;  %v2282_v59 = vshll.u32 %v9443_v46, 16  ;;  %v2478_v54 = vsel %vm1006_vm3, %v2476_v40, %v2477_v56  ;;  %v2280_v12 = vshrl.u32 %v9443_v46, 16  ;;  %v2492_v62 = vpop.permute.xlu0 %2491 }
 0x26d   : > { %v2289_v4 = vrot.slane %v2287_v34, 1  ;;  %v2468_v22 = vrot.slane %v2466_v14, 1  ;;  %v2413_v36 = vpop.permute.xlu1 %2412  ;;  %v2709_v53 = vsel %vm1527_vm13, %v9187_v13, %v2492_v62  ;;  %v2619_v45 = vsel %vm2607_vm15, %v2586_v20, %v9382_v0 }
 0x26e   : > { %v2397_v9 = vsel %vm1006_vm3, %v2395_v19, %v2396_v50  ;;  %v2284_v7 = vrot.slane %v2282_v59, 1  ;;  %v2750_v13 = vsel %vm2607_vm15, %v2709_v53, %v9395_v16  ;;  %vm5093_vm3 = vcmask 1044480  }
 0x26f   : > { %7835 = vmatmul.mubr.msk.bf16.gmra.mxu0 %vm1527_vm13, %v2397_v9  ;;  %v2469_v27 = vor.u32 %v2468_v22, %v2464_v23 }
 0x270   : > { %7838 = vmatprep.mubr.msk.bf16.mxu0 %vm1527_vm13, %v2478_v54  ;;  %v2285_v41 = vor.u32 %v2284_v7, %v2280_v12  ;;  %v2556_v47 = vpop.permute.xlu0 %2555 }
 0x271   : > { %v2308_v29 = vpop.permute.xlu1 %2307  ;;  %v9482_v15 = vsel %vm749_vm4, %v2469_v27, %v2473_v37 }
 0x272   : > { %v9459_v38 = vsel %vm749_vm4, %v2285_v41, %v2289_v4  ;;  %vm5094_vm4 = vsmask.f32 4352 }
 0x273   : > { %2321 = vrot.lane.b32.xlu1 %v9459_v38, %s11240_s22  ;;  %2569 = vrot.lane.b32.xlu0 %v9459_v38, %s8158_s20  ;;  %vm9606_vm5 = vmand %vm5093_vm3, %vm5094_vm4 }
 0x277   : > { %7839 = vmatmul.mubr.msk.bf16.gmra.mxu0 %vm1527_vm13, %v8296_v10  ;;  %2428 = vrot.lane.b32.xlu1 %v2397_v9, %s11239_s21  ;;  %v2706_v10 = vsel %vm1527_vm13, %v9084_v17, %v9356_v44  ;;  %v2657_v17 = vsel %vm2640_vm0, %v2619_v45, %v9315_v25  ;;  %v2788_v44 = vsel %vm2640_vm0, %v2750_v13, %v2556_v47 }
 0x278   : > { %2507 = vrot.lane.b32.xlu0 %v2397_v9, %s11240_s22  ;;  %v2748_v61 = vsel %vm2607_vm15, %v2706_v10, %v2522_v24  ;;  %v2588_v24 = vsel %vm1527_vm13, %v9036_v8, %v9400_v35 }
 0x279   : > { %v2621_v25 = vsel %vm2607_vm15, %v2588_v24, %v9370_v49  ;;  %v2712_v49 = vsel %vm1527_vm13, %v9144_v28, %v9439_v33 }
 0x27a   : > { %v2660_v16 = vsel %vm2640_vm0, %v2621_v25, %v2444_v51 }
 0x27b   : > { %v2528_v42 = vpop.permute.xlu0 %2527  ;;  %2461 = vrot.lane.b32.xlu1 %v2094_v63, %s8158_s20  ;;  %v2450_v0 = vpop.permute.xlu1 %2449 }
 0x27c   : > { %2539 = vrot.lane.b32.xlu0 %v2094_v63, %s11239_s21 }
 0x27f   : > { %v2306_v50 = vpop.permute.xlu1 %2305 }
 0x280   : > { %v2554_v40 = vpop.permute.xlu0 %2553  ;;  %2571 = vrot.lane.b32.xlu0 %v9482_v15, %s8158_s20  ;;  %v2590_v8 = vsel %vm1527_vm13, %v9110_v31, %v2306_v50 }
 0x281   : > { %v2785_v63 = vsel %vm2640_vm0, %v2748_v61, %v2554_v40  ;;  %v2623_v7 = vsel %vm2607_vm15, %v2590_v8, %v2413_v36 }
 0x282   : > { %3045 = vmatprep.mubr.bf16.mxu1 %v2785_v63  ;;  %v2663_v31 = vsel %vm2640_vm0, %v2623_v7, %v9418_v55 }
 0x283   : > { %3046 = vmatmul.mubr.bf16.gmra.mxu1 %v2657_v17  ;;  %v2448_v59 = vpop.permute.xlu1 %2447 }
 0x284   : > { %3053 = vmatprep.mubr.bf16.mxu1 %v2788_v44  ;;  %2509 = vrot.lane.b32.xlu0 %v2478_v54, %s11240_s22  ;;  %v2526_v19 = vpop.permute.xlu0 %2525  ;;  %s7116_s22 = sshll.u32 %s431_s1, 6 }
 0x285   : > { %s11112_s16 = scalar_lea.vmem [#allocation2], %s7116_s22 }
 0x286   : > { %s7050_s15 = sshll.u32 %s11112_s16, 4  ;;  %s11141_s15 = int_to_ptr.vmem [resolvable:$true] %s7050_s15 }
 0x287   : > { %v2419_v9 = vpop.permute.xlu1 %2418  ;;  %s8086_s23 = scalar_lea.vmem %s11141_s15, 1024 }
 0x288   : > { %2541 = vrot.lane.b32.xlu0 %v8287_v3, %s11239_s21  ;;  %v2498_v56 = vpop.permute.xlu0 %2497  ;;  %p8087_p11 = scmp.ne.s32.totalorder %s11141_s15, %s8086_s23 }
 0x28a   : > { %p8088_p12 = pnand %p8087_p11, %p8270_p5 }
 0x28b   : > { %3054 = vmatmul.mubr.bf16.gmra.mxu1 %v2660_v16  ;;  %v2417_v35 = vpop.permute.xlu1 %2416 }
 0x28c   : > { %2573 = vrot.lane.b32.xlu0 %v8308_v18, %s8158_s20  ;;  %v2496_v34 = vpop.permute.xlu0 %2495  ;;  %v2752_v18 = vsel %vm2607_vm15, %v2712_v49, %v2526_v19  ;;  %p8089_p13 = pneg %p8088_p12  ;;  %s8160_s20 = smov [#allocation2]  }
 0x28d   : > { %v2715_v51 = vsel %vm1527_vm13, %v9261_v60, %v2496_v34  ;;  %v2592_v60 = vsel %vm1527_vm13, %v9096_v39, %v2308_v29  ;;  %v2718_v39 = vsel %vm1527_vm13, %v9222_v57, %v2498_v56  ;;  %s8090_s22 = sshll.u32 %s8160_s20, 4  ;;  %s8091_s22 = int_to_ptr.vmem [resolvable:$false] %s8090_s22 }
 0x28e   : > { %v2754_v14 = vsel %vm2607_vm15, %v2715_v51, %v2528_v42  ;;  %v2625_v22 = vsel %vm2607_vm15, %v2592_v60, %v9456_v26  ;;  %p8093_p0 = scmp.lt.s32.totalorder %s11141_s15, %s8091_s22 }
 0x28f   : > { %v2312_v4 = vpop.permute.xlu1 %2311  ;;  %v2666_v36 = vsel %vm2640_vm0, %v2625_v22, %v2448_v59 }
 0x290   : > { %v2560_v54 = vpop.permute.xlu0 %2559 }
 0x291   : > { %v2794_v28 = vsel %vm2640_vm0, %v2754_v14, %v2560_v54 }
 0x29b   : > { %v2532_v12 = vpop.permute.xlu0 %2531  ;;  %v2454_v33 = vpop.permute.xlu1 %2453 }
 0x29f   : > { %v2558_v62 = vpop.permute.xlu0 %2557  ;;  %v2310_v23 = vpop.permute.xlu1 %2309 }
 0x2a0   : > { %v2791_v41 = vsel %vm2640_vm0, %v2752_v18, %v2558_v62  ;;  %v2594_v37 = vsel %vm1527_vm13, %v9179_v5, %v2310_v23  ;;  %v7812_v23 = vpop.f32.mrf.mxu0 }
 0x2a1   : > { %3061 = vmatprep.mubr.bf16.mxu1 %v2791_v41  ;;  %v2627_v45 = vsel %vm2607_vm15, %v2594_v37, %v2417_v35 }
 0x2a2   : > { %3062 = vmatmul.mubr.bf16.gmra.mxu1 %v2663_v31  ;;  %v2669_v63 = vsel %vm2640_vm0, %v2627_v45, %v2450_v0 }
 0x2a3   : > { %3069 = vmatprep.mubr.bf16.mxu1 %v2794_v28  ;;  %v2530_v47 = vpop.permute.xlu0 %2529  ;;  %v2452_v55 = vpop.permute.xlu1 %2451 }
 0x2a4   : > { %v2756_v61 = vsel %vm2607_vm15, %v2718_v39, %v2530_v47 }
 0x2a7   : > { %v2502_v58 = vpop.permute.xlu0 %2501  ;;  %v2423_v42 = vpop.permute.xlu1 %2422 }
 0x2a8   : > { %v2724_v34 = vsel %vm1527_vm13, %v9301_v48, %v2502_v58 }
 0x2aa   : > { %3070 = vmatmul.mubr.bf16.gmra.mxu1 %v2666_v36 }
 0x2ab   : > { %v2500_v20 = vpop.permute.xlu0 %2499  ;;  %v2421_v53 = vpop.permute.xlu1 %2420 }
 0x2ac   : > { %v2721_v26 = vsel %vm1527_vm13, %v9320_v21, %v2500_v20  ;;  %v2596_v21 = vsel %vm1527_vm13, %v9164_v1, %v2312_v4  ;;  %v3168_v20 = vpop.f32.mrf.mxu0 }
 0x2ad   : > { %v2758_v5 = vsel %vm2607_vm15, %v2721_v26, %v2532_v12  ;;  %v2629_v24 = vsel %vm2607_vm15, %v2596_v21, %v2419_v9 }
 0x2ae   : > { %v2672_v25 = vsel %vm2640_vm0, %v2629_v24, %v2452_v55  ;;  %v8159_v24 = vmov 1983009808  }
 0x2af   : > { %v2564_v27 = vpop.permute.xlu0 %2563  ;;  %v2316_v13 = vpop.permute.xlu1 %2315 }
 0x2b0   : > { %v2800_v17 = vsel %vm2640_vm0, %v2758_v5, %v2564_v27  ;;  %v2600_v48 = vsel %vm1527_vm13, %v9240_v32, %v2316_v13 }
 0x2b3   : > { %v2314_v19 = vpop.permute.xlu1 %2313 }
 0x2b4   : > { %v2598_v16 = vsel %vm1527_vm13, %v9254_v52, %v2314_v19  ;;  %v3437_v19 = vunpack.c.l.s4 %v8159_v24 }
 0x2b5   : > { %v2631_v54 = vsel %vm2607_vm15, %v2598_v16, %v2421_v53  ;;  %v7813_v53 = vpop.f32.mrf.mxu0 }
 0x2b6   : > { %v2675_v12 = vsel %vm2640_vm0, %v2631_v54, %v2454_v33 }
 0x2bb   : > { %v2536_v10 = vpop.permute.xlu0 %2535 }
 0x2bd   : > { %v2456_v0 = vpop.permute.xlu1 %2455 }
 0x2bf   : > { %v2562_v29 = vpop.permute.xlu0 %2561 }
 0x2c0   : > { %v2797_v40 = vsel %vm2640_vm0, %v2756_v61, %v2562_v29 }
 0x2c1   : > { %3077 = vmatprep.mubr.bf16.mxu1 %v2797_v40 }
 0x2c2   : > { %3078 = vmatmul.mubr.bf16.gmra.mxu1 %v2669_v63 }
 0x2c3   : > { %3085 = vmatprep.mubr.bf16.mxu1 %v2800_v17  ;;  %v2534_v57 = vpop.permute.xlu0 %2533  ;;  %v3171_v17 = vpop.f32.mrf.mxu0 }
 0x2c4   : > { %v2318_v59 = vpop.permute.xlu1 %2317  ;;  %v2760_v9 = vsel %vm2607_vm15, %v2724_v34, %v2534_v57  ;;  %v3438_v34 = vunpack.c.0.s8 %v3437_v19 }
 0x2c5   : > { %v2602_v14 = vsel %vm1527_vm13, %v9351_v43, %v2318_v59 }
 0x2c7   : > { %v2506_v44 = vpop.permute.xlu0 %2505 }
 0x2c8   : > { %v2425_v51 = vpop.permute.xlu1 %2424  ;;  %v2730_v31 = vsel %vm1527_vm13, %v9398_v11, %v2506_v44  ;;  %v9579_v44 = vld [vmem:[%s11193_s6] ss:$0 sm:$0xff] }
 0x2c9   : > { %v2635_v32 = vsel %vm2607_vm15, %v2602_v14, %v2425_v51 }
 0x2ca   : > { %3086 = vmatmul.mubr.bf16.gmra.mxu1 %v2672_v25 }
 0x2cb   : > { %v2504_v50 = vpop.permute.xlu0 %2503 }
 0x2cc   : > { %v2727_v1 = vsel %vm1527_vm13, %v9375_v6, %v2504_v50  ;;  %v2633_v6 = vsel %vm2607_vm15, %v2600_v48, %v2423_v42  ;;  %v2458_v7 = vpop.permute.xlu1 %2457  ;;  %v3439_v50 = vlaneseq }
 0x2cd   : > { %v2762_v52 = vsel %vm2607_vm15, %v2727_v1, %v2536_v10  ;;  %v2678_v18 = vsel %vm2640_vm0, %v2633_v6, %v2456_v0  ;;  %v2681_v22 = vsel %vm2640_vm0, %v2635_v32, %v2458_v7 }
 0x2ce   : > { %v7394_v4 = vpop.f32.mrf.mxu1 }
 0x2cf   : > { %v2568_v56 = vpop.permute.xlu0 %2567 }
 0x2d0   : > { %v2806_v49 = vsel %vm2640_vm0, %v2762_v52, %v2568_v56  ;;  %v2320_v41 = vpop.permute.xlu1 %2319  ;;  %v7395_v47 = vpop.f32.mrf.mxu1 }
 0x2d1   : > { %v7396_v27 = vadd.f32 %v7395_v47, %v7394_v4  ;;  %v2604_v39 = vsel %vm1527_vm13, %v9337_v30, %v2320_v41 }
 0x2d2   : > { %v7397_v55 = vpop.f32.mrf.mxu1 }
 0x2d3   : > { %v2566_v8 = vpop.permute.xlu0 %2565  ;;  %v3169_v5 = vadd.f32 %v7396_v27, %v3168_v20 }
 0x2d4   : > { %v2803_v35 = vsel %vm2640_vm0, %v2760_v9, %v2566_v8  ;;  %v2427_v36 = vpop.permute.xlu1 %2426  ;;  %v7398_v43 = vpop.f32.mrf.mxu1  ;;  %v3440_v8 = vshrl.u32 %v3439_v50, 7 }
 0x2d5   : > { %3093 = vmatprep.mubr.bf16.mxu1 %v2803_v35  ;;  %v7399_v61 = vadd.f32 %v7398_v43, %v7397_v55  ;;  %v2637_v29 = vsel %vm2607_vm15, %v2604_v39, %v2427_v36 }
 0x2d6   : > { %3094 = vmatmul.mubr.bf16.gmra.mxu1 %v2675_v12 }
 0x2d7   : > { %3101 = vmatprep.mubr.bf16.mxu1 %v2806_v49  ;;  %v3172_v13 = vadd.f32 %v7399_v61, %v3171_v17  ;;  %v9615_v17 = vsel %vm9606_vm5, %v8287_v3, 0 }
 0x2de   : > { %3102 = vmatmul.mubr.bf16.gmra.mxu1 %v2678_v18  ;;  %v2538_v62 = vpop.permute.xlu0 %2537  ;;  %v2460_v11 = vpop.permute.xlu1 %2459 }
 0x2df   : > { %v2764_v28 = vsel %vm2607_vm15, %v2730_v31, %v2538_v62  ;;  %v2684_v63 = vsel %vm2640_vm0, %v2637_v29, %v2460_v11 }
 0x2e5   : > { %v2570_v60 = vpop.permute.xlu0 %2569  ;;  %v2322_v37 = vpop.permute.xlu1 %2321 }
 0x2e6   : > { %v2809_v33 = vsel %vm2640_vm0, %v2764_v28, %v2570_v60  ;;  %v2606_v1 = vsel %vm1527_vm13, %v9443_v46, %v2322_v37 }
 0x2e7   : > { %3109 = vmatprep.mubr.bf16.mxu1 %v2809_v33 }
 0x2e8   : > { %3110 = vmatmul.mubr.bf16.gmra.mxu1 %v2681_v22 }
 0x2e9   : > { %v2429_v57 = vpop.permute.xlu1 %2428 }
 0x2ea   : > { %v2508_v58 = vpop.permute.xlu0 %2507  ;;  %v2639_v12 = vsel %vm2607_vm15, %v2606_v1, %v2429_v57 }
 0x2eb   : > { %v2733_v10 = vsel %vm1527_vm13, %v9459_v38, %v2508_v58  ;;  %v9573_v38 = vld [vmem:[%s11192_s5] ss:$0 sm:$0xff]  ;;  %v9599_v58 = vpop.f32.mrf.mxu0 }
 0x2ec   : > { %v3301_v21 = vmul.f32 %v9573_v38, %v3169_v5  ;;  %v3302_v0 = vmul.f32 %v9573_v38, %v3172_v13 }
 0x2ed   : > { %v2462_v56 = vpop.permute.xlu1 %2461 }
 0x2ee   : > { %v2540_v42 = vpop.permute.xlu0 %2539  ;;  %v3339_v16 = vadd.f32 %v9579_v44, %v3301_v21  ;;  %v3340_v35 = vadd.f32 %v9579_v44, %v3302_v0  ;;  %v2687_v49 = vsel %vm2640_vm0, %v2639_v12, %v2462_v56 }
 0x2ef   : > { %v2766_v26 = vsel %vm2607_vm15, %v2733_v10, %v2540_v42 }
 0x2f0   : > { %v3371_v51 = vmax.f32 %v3339_v16, 0.0  ;;  %v3372_v48 = vmax.f32 %v3340_v35, 0.0 }
 0x2f2   : > { %v2572_v45 = vpop.permute.xlu0 %2571  ;;  %v3435_v46 = vcombine.high %v3371_v51, %v3371_v51  ;;  %v3452_v41 = vcombine.high %v3372_v48, %v3372_v48 }
 0x2f3   : > { %v2812_v40 = vsel %vm2640_vm0, %v2766_v26, %v2572_v45 }
 0x2f4   : > { %3117 = vmatprep.mubr.bf16.mxu1 %v2812_v40 }
 0x2f5   : > { %3118 = vmatmul.mubr.bf16.gmra.mxu1 %v2684_v63 }
 0x2f6   : > { %v2510_v30 = vpop.permute.xlu0 %2509 }
 0x2f7   : > { %v2736_v59 = vsel %vm1527_vm13, %v9482_v15, %v2510_v30  ;;  %v9592_v15 = vsub.s32 %v3438_v34, %v3440_v8 }
 0x2f9   : > { %v3442_v62 = vrot.slane %v3371_v51, %v9592_v15  ;;  %v3449_v14 = vrot.slane %v3435_v46, %v9592_v15  ;;  %v3459_v47 = vrot.slane %v3372_v48, %v9592_v15  ;;  %v3466_v22 = vrot.slane %v3452_v41, %v9592_v15 }
 0x2fa   : > { %v2542_v25 = vpop.permute.xlu0 %2541 }
 0x2fb   : > { %v2768_v54 = vsel %vm2607_vm15, %v2736_v59, %v2542_v25  ;;  %v3450_v33 = vcombine.high %v3442_v62, %v3442_v62  ;;  %v4108_v42 = vsel %vm4107_vm1, %v3442_v62, -inf  ;;  %v4126_v39 = vsel %vm4107_vm1, %v3449_v14, -inf }
 0x2fc   : > { %v3467_v26 = vcombine.high %v3459_v47, %v3459_v47  ;;  %v3468_v45 = vcombine.high %v3466_v22, %v3466_v22  ;;  %v4144_v13 = vsel %vm4107_vm1, %v3459_v47, -inf  ;;  %v4162_v57 = vsel %vm4107_vm1, %v3466_v22, -inf }
 0x2fd   : > { %v4117_v10 = vsel %vm4107_vm1, %v3450_v33, -inf  ;;  %v5108_v59 = vshll.u32 %v9615_v17, 16 }
 0x2fe   : > { %v2574_v9 = vpop.permute.xlu0 %2573  ;;  %v4153_v0 = vsel %vm4107_vm1, %v3467_v26, -inf  ;;  %v4171_v16 = vsel %vm4107_vm1, %v3468_v45, -inf }
 0x2ff   : > { %v2815_v52 = vsel %vm2640_vm0, %v2768_v54, %v2574_v9 }
 0x300   : > { %3125 = vmatprep.mubr.bf16.mxu1 %v2815_v52 }
 0x301   : > { %3126 = vmatmul.mubr.bf16.gmra.mxu1 %v2687_v49 }
 0x303   : > { %v7400_v6 = vpop.f32.mrf.mxu1 }
 0x305   : > { %v7401_v7 = vpop.f32.mrf.mxu1 }
 0x306   : > { %v7402_v18 = vadd.f32 %v7401_v7, %v7400_v6 }
 0x307   : > { %v7403_v4 = vpop.f32.mrf.mxu1 }
 0x308   : > { %v3177_v31 = vadd.f32 %v7812_v23, %v7402_v18  ;;  %v3451_v23 = vcombine.high %v3449_v14, %v3449_v14 }
 0x309   : > { %v7404_v28 = vpop.f32.mrf.mxu1 }
 0x30a   : > { %v3303_v60 = vmul.f32 %v9573_v38, %v3177_v31  ;;  %v7405_v32 = vadd.f32 %v7404_v28, %v7403_v4  ;;  %v4135_v30 = vsel %vm4107_vm1, %v3451_v23, -inf }
 0x30b   : > { %v7406_v36 = vpop.f32.mrf.mxu1 }
 0x30c   : > { %v3341_v55 = vadd.f32 %v9579_v44, %v3303_v60  ;;  %v3180_v11 = vadd.f32 %v7813_v53, %v7405_v32  ;;  %v3184_v53 = vpop.f32.mrf.mxu0 }
 0x30d   : > { %v7407_v20 = vpop.f32.mrf.mxu1 }
 0x30e   : > { %v3373_v43 = vmax.f32 %v3341_v55, 0.0  ;;  %v3304_v27 = vmul.f32 %v9573_v38, %v3180_v11  ;;  %v7408_v37 = vadd.f32 %v7407_v20, %v7406_v36 }
 0x30f   : > { %v7409_v61 = vpop.f32.mrf.mxu1 }
 0x310   : > { %v3469_v40 = vcombine.high %v3373_v43, %v3373_v43  ;;  %v3476_v63 = vrot.slane %v3373_v43, %v9592_v15  ;;  %v3342_v5 = vadd.f32 %v9579_v44, %v3304_v27  ;;  %v3185_v21 = vadd.f32 %v7408_v37, %v3184_v53  ;;  %v9635_v43 = vpop.f32.mrf.mxu0 }
 0x311   : > { %v7410_v3 = vpop.f32.mrf.mxu1 }
 0x312   : > { %v3483_v24 = vrot.slane %v3469_v40, %v9592_v15  ;;  %v3484_v19 = vcombine.high %v3476_v63, %v3476_v63  ;;  %v4109_v25 = vsel %vm4107_vm1, %v3476_v63, -inf  ;;  %v3374_v50 = vmax.f32 %v3342_v5, 0.0 }
 0x313   : > { %v4110_v56 = vmax.f32 %v4108_v42, %v4109_v25  ;;  %v3305_v48 = vmul.f32 %v9573_v38, %v3185_v21  ;;  %v7411_v6 = vadd.f32 %v7410_v3, %v7409_v61 }
 0x314   : > { %v3485_v34 = vcombine.high %v3483_v24, %v3483_v24  ;;  %v4118_v1 = vsel %vm4107_vm1, %v3484_v19, -inf  ;;  %v4127_v54 = vsel %vm4107_vm1, %v3483_v24, -inf  ;;  %v3486_v9 = vcombine.high %v3374_v50, %v3374_v50  ;;  %v3187_v19 = vpop.f32.mrf.mxu0 }
 0x315   : > { %v4111_v8 = vrot.slane %v4110_v56, 4  ;;  %v4119_v35 = vmax.f32 %v4117_v10, %v4118_v1  ;;  %v4128_v12 = vmax.f32 %v4126_v39, %v4127_v54  ;;  %v3493_v52 = vrot.slane %v3374_v50, %v9592_v15 }
 0x316   : > { %v4136_v49 = vsel %vm4107_vm1, %v3485_v34, -inf  ;;  %v3500_v51 = vrot.slane %v3486_v9, %v9592_v15  ;;  %v3188_v1 = vadd.f32 %v7411_v6, %v3187_v19 }
 0x317   : > { %v4112_v46 = vmax.f32 %v4110_v56, %v4111_v8  ;;  %v4120_v7 = vrot.slane %v4119_v35, 4  ;;  %v4129_v18 = vrot.slane %v4128_v12, 4  ;;  %v4137_v62 = vmax.f32 %v4135_v30, %v4136_v49 }
 0x318   : > { %v3501_v41 = vcombine.high %v3493_v52, %v3493_v52  ;;  %v3502_v4 = vcombine.high %v3500_v51, %v3500_v51  ;;  %v4145_v31 = vsel %vm4107_vm1, %v3493_v52, -inf  ;;  %v4163_v14 = vsel %vm4107_vm1, %v3500_v51, -inf }
 0x319   : > { %v4113_v28 = vrot.slane %v4112_v46, 2  ;;  %v4121_v60 = vmax.f32 %v4119_v35, %v4120_v7  ;;  %v4130_v32 = vmax.f32 %v4128_v12, %v4129_v18  ;;  %v4138_v33 = vrot.slane %v4137_v62, 4 }
 0x31a   : > { %v4146_v47 = vmax.f32 %v4144_v13, %v4145_v31  ;;  %v4154_v22 = vsel %vm4107_vm1, %v3501_v41, -inf  ;;  %v4164_v36 = vmax.f32 %v4162_v57, %v4163_v14  ;;  %v4172_v55 = vsel %vm4107_vm1, %v3502_v4, -inf }
 0x31b   : > { %v4114_v11 = vmax.f32 %v4112_v46, %v4113_v28  ;;  %v4122_v23 = vrot.slane %v4121_v60, 2  ;;  %v4131_v20 = vrot.slane %v4130_v32, 2  ;;  %v4139_v42 = vmax.f32 %v4137_v62, %v4138_v33 }
 0x31c   : > { %v4147_v27 = vrot.slane %v4146_v47, 4  ;;  %v4155_v37 = vmax.f32 %v4153_v0, %v4154_v22  ;;  %v4165_v10 = vrot.slane %v4164_v36, 4  ;;  %v4173_v39 = vmax.f32 %v4171_v16, %v4172_v55  ;;  %v9644_v55 = vpop.f32.mrf.mxu0 }
 0x31d   : > { %v4115_v26 = vrot.slane %v4114_v11, 1  ;;  %v4123_v45 = vmax.f32 %v4121_v60, %v4122_v23  ;;  %v4132_v61 = vmax.f32 %v4130_v32, %v4131_v20  ;;  %v4140_v53 = vrot.slane %v4139_v42, 2 }
 0x31e   : > { %v4148_v40 = vmax.f32 %v4146_v47, %v4147_v27  ;;  %v4156_v63 = vrot.slane %v4155_v37, 4  ;;  %v4166_v5 = vmax.f32 %v4164_v36, %v4165_v10  ;;  %v4174_v30 = vrot.slane %v4173_v39, 4 }
 0x31f   : > { %v4116_v13 = vmax.f32 %v4114_v11, %v4115_v26  ;;  %v4124_v57 = vrot.slane %v4123_v45, 1  ;;  %v4133_v21 = vrot.slane %v4132_v61, 1  ;;  %v4141_v24 = vmax.f32 %v4139_v42, %v4140_v53 }
 0x320   : > { %v4149_v25 = vrot.slane %v4148_v40, 2  ;;  %v4157_v50 = vmax.f32 %v4155_v37, %v4156_v63  ;;  %v4167_v56 = vrot.slane %v4166_v5, 2  ;;  %v3343_v0 = vadd.f32 %v9579_v44, %v3305_v48 }
 0x321   : > { %v4125_v3 = vmax.f32 %v4123_v45, %v4124_v57  ;;  %v4134_v16 = vmax.f32 %v4132_v61, %v4133_v21  ;;  %v4142_v34 = vrot.slane %v4141_v24, 1  ;;  %v5106_v35 = vshrl.u32 %v9615_v17, 16  ;;  %v3200_v21 = vpop.f32.mrf.mxu0 }
 0x322   : > { %v4150_v54 = vmax.f32 %v4148_v40, %v4149_v25  ;;  %v4158_v9 = vrot.slane %v4157_v50, 2  ;;  %v5110_v12 = vrot.slane %v5108_v59, 1  ;;  %v4684_v49 = vpack.c.bf16 %v4116_v13, %v4116_v13 }
 0x323   : > { %v7412_v8 = vpop.f32.mrf.mxu1  ;;  %v4143_v52 = vmax.f32 %v4141_v24, %v4142_v34  ;;  %v4685_v51 = vpack.c.bf16 %v4125_v3, %v4125_v3  ;;  %v4175_v46 = vmax.f32 %v4173_v39, %v4174_v30  ;;  %v4168_v62 = vmax.f32 %v4166_v5, %v4167_v56 }
 0x324   : > { %v4151_v7 = vrot.slane %v4150_v54, 1  ;;  %v4159_v18 = vmax.f32 %v4157_v50, %v4158_v9  ;;  %v3375_v41 = vmax.f32 %v3343_v0, 0.0  ;;  %v4686_v48 = vpack.c.bf16 %v4134_v16, %v4134_v16 }
 0x325   : > { %v7413_v4 = vpop.f32.mrf.mxu1  ;;  %v4687_v31 = vpack.c.bf16 %v4143_v52, %v4143_v52  ;;  %v3306_v6 = vmul.f32 %v9573_v38, %v3188_v1  ;;  %v4887_v14 = vunpack.c.l.b16 %v4685_v51  ;;  %v4176_v33 = vrot.slane %v4175_v46, 2 }
 0x326   : > { %v4160_v28 = vrot.slane %v4159_v18, 1  ;;  %v3503_v60 = vcombine.high %v3375_v41, %v3375_v41  ;;  %v3510_v32 = vrot.slane %v3375_v41, %v9592_v15  ;;  %v7414_v22 = vadd.f32 %v7413_v4, %v7412_v8 }
 0x327   : > { %v7415_v59 = vpop.f32.mrf.mxu1  ;;  %v3344_v47 = vadd.f32 %v9579_v44, %v3306_v6  ;;  %v9642_v36 = vor.u32 %v5110_v12, %v5106_v35  ;;  %v4886_v11 = vunpack.c.l.b16 %v4684_v49  ;;  %v9646_v23 = vmax.f32 %v4150_v54, %v4151_v7  ;;  %v9675_v49 = vpop.f32.mrf.mxu0 }
 0x328   : > { %v4169_v20 = vrot.slane %v4168_v62, 1  ;;  %v3517_v42 = vrot.slane %v3503_v60, %v9592_v15  ;;  %v9649_v37 = vmax.f32 %v4159_v18, %v4160_v28  ;;  %v3193_v39 = vadd.f32 %v9599_v58, %v7414_v22 }
 0x329   : > { %11243 = vst [vmem:[#allocation5_spill] sm:$0xff] %v9642_v36  ;;  %v7416_v27 = vpop.f32.mrf.mxu1  ;;  %v3376_v10 = vmax.f32 %v3344_v47, 0.0  ;;  %v9652_v45 = vunpack.c.l.b16 %v4686_v48  ;;  %v9654_v61 = vunpack.c.l.b16 %v4687_v31  ;;  %v9657_v53 = vsel %vm4950_vm6, %v4887_v14, %v4886_v11  ;;  %v3203_v22 = vpop.f32.mrf.mxu0 }
 0x32a   : > { %v7417_v26 = vadd.f32 %v7416_v27, %v7415_v59  ;;  %v3518_v40 = vcombine.high %v3510_v32, %v3510_v32  ;;  %v3519_v5 = vcombine.high %v3517_v42, %v3517_v42  ;;  %v3307_v57 = vmul.f32 %v9573_v38, %v3193_v39 }
 0x32b   : > { %v7418_v63 = vpop.f32.mrf.mxu1  ;;  %v3520_v30 = vcombine.high %v3376_v10, %v3376_v10  ;;  %v3527_v13 = vrot.slane %v3376_v10, %v9592_v15  ;;  %v4688_v58 = vpack.c.bf16 %v9646_v23, %v9646_v23  ;;  %v4180_v24 = vsel %vm4107_vm1, %v3510_v32, -inf }
 0x32c   : > { %v3196_v19 = vadd.f32 %v9635_v43, %v7417_v26  ;;  %v4177_v50 = vmax.f32 %v4175_v46, %v4176_v33  ;;  %v4689_v56 = vpack.c.bf16 %v9649_v37, %v9649_v37  ;;  %v3345_v3 = vadd.f32 %v9579_v44, %v3307_v57 }
 0x32d   : > { %v7419_v25 = vpop.f32.mrf.mxu1  ;;  %v3534_v0 = vrot.slane %v3520_v30, %v9592_v15  ;;  %v9669_v16 = vmax.f32 %v4168_v62, %v4169_v20  ;;  %v3535_v34 = vcombine.high %v3527_v13, %v3527_v13  ;;  %v4189_v35 = vsel %vm4107_vm1, %v3518_v40, -inf }
 0x32e   : > { %v3308_v1 = vmul.f32 %v9573_v38, %v3196_v19  ;;  %v7420_v54 = vadd.f32 %v7419_v25, %v7418_v63  ;;  %v4178_v8 = vrot.slane %v4177_v50, 1  ;;  %v4198_v43 = vsel %vm4107_vm1, %v3517_v42, -inf }
 0x32f   : > { %v7421_v9 = vpop.f32.mrf.mxu1  ;;  %v4207_v12 = vsel %vm4107_vm1, %v3519_v5, -inf  ;;  %v3377_v52 = vmax.f32 %v3345_v3, 0.0  ;;  %v3536_v51 = vcombine.high %v3534_v0, %v3534_v0  ;;  %v4216_v46 = vsel %vm4107_vm1, %v3527_v13, -inf }
 0x330   : > { %v3346_v7 = vadd.f32 %v9579_v44, %v3308_v1  ;;  %v3201_v18 = vadd.f32 %v7420_v54, %v3200_v21  ;;  %v4690_v31 = vpack.c.bf16 %v9669_v16, %v9669_v16  ;;  %v4225_v6 = vsel %vm4107_vm1, %v3535_v34, -inf }
 0x331   : > { %v7422_v62 = vpop.f32.mrf.mxu1  ;;  %v3537_v41 = vcombine.high %v3377_v52, %v3377_v52  ;;  %v3544_v4 = vrot.slane %v3377_v52, %v9592_v15  ;;  %v4234_v14 = vsel %vm4107_vm1, %v3534_v0, -inf  ;;  %v9684_v60 = vmax.f32 %v4177_v50, %v4178_v8 }
 0x332   : > { %v7423_v48 = vadd.f32 %v7422_v62, %v7421_v9  ;;  %v3378_v28 = vmax.f32 %v3346_v7, 0.0  ;;  %v3309_v47 = vmul.f32 %v9573_v38, %v3201_v18  ;;  %v4243_v11 = vsel %vm4107_vm1, %v3536_v51, -inf }
 0x333   : > { %v3551_v32 = vrot.slane %v3537_v41, %v9592_v15  ;;  %v3552_v59 = vcombine.high %v3544_v4, %v3544_v4  ;;  %v4181_v33 = vsel %vm4107_vm1, %v3544_v4, -inf  ;;  %v4691_v23 = vpack.c.bf16 %v9684_v60, %v9684_v60 }
 0x334   : > { %v4182_v20 = vmax.f32 %v4180_v24, %v4181_v33  ;;  %v3554_v42 = vcombine.high %v3378_v28, %v3378_v28  ;;  %v3561_v27 = vrot.slane %v3378_v28, %v9592_v15  ;;  %v3204_v40 = vadd.f32 %v7423_v48, %v3203_v22 }
 0x335   : > { %v3553_v10 = vcombine.high %v3551_v32, %v3551_v32  ;;  %v4190_v39 = vsel %vm4107_vm1, %v3552_v59, -inf  ;;  %v4199_v26 = vsel %vm4107_vm1, %v3551_v32, -inf  ;;  %v3347_v24 = vadd.f32 %v9579_v44, %v3309_v47 }
 0x336   : > { %v4183_v63 = vrot.slane %v4182_v20, 4  ;;  %v4191_v5 = vmax.f32 %v4189_v35, %v4190_v39  ;;  %v4200_v30 = vmax.f32 %v4198_v43, %v4199_v26  ;;  %v3568_v13 = vrot.slane %v3554_v42, %v9592_v15 }
 0x337   : > { %v4208_v57 = vsel %vm4107_vm1, %v3553_v10, -inf  ;;  %v3569_v21 = vcombine.high %v3561_v27, %v3561_v27  ;;  %v4217_v19 = vsel %vm4107_vm1, %v3561_v27, -inf }
 0x338   : > { %v4184_v25 = vmax.f32 %v4182_v20, %v4183_v63  ;;  %v4192_v50 = vrot.slane %v4191_v5, 4  ;;  %v4201_v0 = vrot.slane %v4200_v30, 4  ;;  %v4209_v3 = vmax.f32 %v4207_v12, %v4208_v57 }
 0x339   : > { %v3570_v34 = vcombine.high %v3568_v13, %v3568_v13  ;;  %v4218_v1 = vmax.f32 %v4216_v46, %v4217_v19  ;;  %v4226_v54 = vsel %vm4107_vm1, %v3569_v21, -inf  ;;  %v4235_v9 = vsel %vm4107_vm1, %v3568_v13, -inf }
 0x33a   : > { %v4185_v8 = vrot.slane %v4184_v25, 2  ;;  %v4193_v35 = vmax.f32 %v4191_v5, %v4192_v50  ;;  %v4202_v43 = vmax.f32 %v4200_v30, %v4201_v0  ;;  %v4210_v52 = vrot.slane %v4209_v3, 4 }
 0x33b   : > { %v4219_v51 = vrot.slane %v4218_v1, 4  ;;  %v4227_v7 = vmax.f32 %v4225_v6, %v4226_v54  ;;  %v4236_v18 = vmax.f32 %v4234_v14, %v4235_v9  ;;  %v4244_v62 = vsel %vm4107_vm1, %v3570_v34, -inf }
 0x33c   : > { %v4186_v41 = vmax.f32 %v4184_v25, %v4185_v8  ;;  %v4194_v4 = vrot.slane %v4193_v35, 2  ;;  %v4203_v48 = vrot.slane %v4202_v43, 2  ;;  %v4211_v28 = vmax.f32 %v4209_v3, %v4210_v52 }
 0x33d   : > { %v4220_v12 = vmax.f32 %v4218_v1, %v4219_v51  ;;  %v4228_v32 = vrot.slane %v4227_v7, 4  ;;  %v4237_v46 = vrot.slane %v4236_v18, 4  ;;  %v4245_v59 = vmax.f32 %v4243_v11, %v4244_v62 }
 0x33e   : > { %v4187_v33 = vrot.slane %v4186_v41, 1  ;;  %v4195_v47 = vmax.f32 %v4193_v35, %v4194_v4  ;;  %v4204_v22 = vmax.f32 %v4202_v43, %v4203_v48  ;;  %v4212_v20 = vrot.slane %v4211_v28, 2 }
 0x33f   : > { %v4221_v42 = vrot.slane %v4220_v12, 2  ;;  %v4229_v27 = vmax.f32 %v4227_v7, %v4228_v32  ;;  %v4238_v10 = vmax.f32 %v4236_v18, %v4237_v46  ;;  %v4246_v39 = vrot.slane %v4245_v59, 4 }
 0x340   : > { %v4188_v6 = vmax.f32 %v4186_v41, %v4187_v33  ;;  %v4196_v14 = vrot.slane %v4195_v47, 1  ;;  %v4205_v26 = vrot.slane %v4204_v22, 1  ;;  %v4213_v63 = vmax.f32 %v4211_v28, %v4212_v20 }
 0x341   : > { %v4222_v5 = vmax.f32 %v4220_v12, %v4221_v42  ;;  %v4230_v30 = vrot.slane %v4229_v27, 2  ;;  %v4239_v13 = vrot.slane %v4238_v10, 2  ;;  %v4247_v57 = vmax.f32 %v4245_v59, %v4246_v39 }
 0x342   : > { %v4197_v21 = vmax.f32 %v4195_v47, %v4196_v14  ;;  %v4206_v11 = vmax.f32 %v4204_v22, %v4205_v26  ;;  %v4214_v19 = vrot.slane %v4213_v63, 1  ;;  %v3379_v25 = vmax.f32 %v3347_v24, 0.0  ;;  %v9716_v47 = vpop.f32.mrf.mxu0 }
 0x343   : > { %v7424_v50 = vpop.f32.mrf.mxu1  ;;  %v4223_v0 = vrot.slane %v4222_v5, 1  ;;  %v4231_v3 = vmax.f32 %v4229_v27, %v4230_v30  ;;  %v4240_v34 = vmax.f32 %v4238_v10, %v4239_v13  ;;  %v3310_v1 = vmul.f32 %v9573_v38, %v3204_v40 }
 0x344   : > { %v4215_v54 = vmax.f32 %v4213_v63, %v4214_v19  ;;  %v4692_v9 = vpack.c.bf16 %v4188_v6, %v4188_v6  ;;  %v4693_v8 = vpack.c.bf16 %v4197_v21, %v4197_v21  ;;  %v4248_v35 = vrot.slane %v4247_v57, 2 }
 0x345   : > { %v7425_v43 = vpop.f32.mrf.mxu1  ;;  %v4694_v52 = vpack.c.bf16 %v4206_v11, %v4206_v11  ;;  %v4224_v51 = vmax.f32 %v4222_v5, %v4223_v0  ;;  %v4232_v7 = vrot.slane %v4231_v3, 1  ;;  %v4241_v18 = vrot.slane %v4240_v34, 1 }
 0x346   : > { %v4890_v24 = vunpack.c.l.b16 %v4688_v58  ;;  %v4695_v62 = vpack.c.bf16 %v4215_v54, %v4215_v54  ;;  %v4895_v41 = vunpack.c.l.b16 %v4693_v8  ;;  %v3571_v4 = vcombine.high %v3379_v25, %v3379_v25 }
 0x347   : > { %v7427_v40 = vpop.f32.mrf.mxu1  ;;  %v9704_v48 = vmax.f32 %v4231_v3, %v4232_v7  ;;  %v4696_v28 = vpack.c.bf16 %v4224_v51, %v4224_v51  ;;  %v3578_v12 = vrot.slane %v3379_v25, %v9592_v15  ;;  %v4891_v32 = vunpack.c.l.b16 %v4689_v56 }
 0x348   : > { %v4894_v46 = vunpack.c.l.b16 %v4692_v9  ;;  %v3348_v59 = vadd.f32 %v9579_v44, %v3310_v1  ;;  %v4892_v58 = vunpack.c.l.b16 %v4690_v31  ;;  %v9718_v22 = vunpack.c.l.b16 %v4694_v52 }
 0x349   : > { %v7428_v33 = vpop.f32.mrf.mxu1  ;;  %v9720_v20 = vunpack.c.l.b16 %v4695_v62  ;;  %v9722_v42 = vmax.f32 %v4240_v34, %v4241_v18  ;;  %v4249_v37 = vmax.f32 %v4247_v57, %v4248_v35  ;;  %v4697_v60 = vpack.c.bf16 %v9704_v48, %v9704_v48  ;;  %v3216_v57 = vpop.f32.mrf.mxu0 }
 0x34a   : > { %v9725_v56 = vsel %vm4950_vm6, %v4895_v41, %v4894_v46  ;;  %v3585_v27 = vrot.slane %v3571_v4, %v9592_v15  ;;  %v3380_v16 = vmax.f32 %v3348_v59, 0.0  ;;  %v9730_v10 = vunpack.c.l.b16 %v4696_v28 }
 0x34b   : > { %v7430_v31 = vpop.f32.mrf.mxu1  ;;  %v3586_v39 = vcombine.high %v3578_v12, %v3578_v12  ;;  %v4953_v6 = vsel %vm4952_vm7, %v9652_v45, %v9657_v53  ;;  %v7426_v14 = vadd.f32 %v7425_v43, %v7424_v50  ;;  %v4893_v5 = vunpack.c.l.b16 %v4691_v23  ;;  %v9749_v52 = vpop.f32.mrf.mxu0 }
 0x34c   : > { %v3588_v26 = vcombine.high %v3380_v16, %v3380_v16  ;;  %v3595_v63 = vrot.slane %v3380_v16, %v9592_v15  ;;  %v4955_v30 = vsel %vm4954_vm8, %v9654_v61, %v4953_v6  ;;  %v7429_v19 = vadd.f32 %v7428_v33, %v7427_v40 }
 0x34d   : > { %v7431_v13 = vpop.f32.mrf.mxu1  ;;  %v4957_v21 = vsel %vm4956_vm9, %v4890_v24, %v4955_v30  ;;  %v3209_v11 = vadd.f32 %v9644_v55, %v7426_v14  ;;  %v3587_v0 = vcombine.high %v3585_v27, %v3585_v27  ;;  %v4252_v3 = vsel %vm4107_vm1, %v3578_v12, -inf  ;;  %v3219_v33 = vpop.f32.mrf.mxu0 }
 0x34e   : > { %v7432_v25 = vadd.f32 %v7431_v13, %v7430_v31  ;;  %v3602_v45 = vrot.slane %v3588_v26, %v9592_v15  ;;  %v4959_v53 = vsel %vm4958_vm10, %v4891_v32, %v4957_v21  ;;  %v3212_v1 = vadd.f32 %v9675_v49, %v7429_v19 }
 0x34f   : > { %v7433_v50 = vpop.f32.mrf.mxu1  ;;  %v4961_v34 = vsel %vm4960_vm11, %v4892_v58, %v4959_v53  ;;  %v3311_v61 = vmul.f32 %v9573_v38, %v3209_v11  ;;  %v4261_v9 = vsel %vm4107_vm1, %v3586_v39, -inf  ;;  %v4270_v55 = vsel %vm4107_vm1, %v3585_v27, -inf }
 0x350   : > { %v3217_v54 = vadd.f32 %v7432_v25, %v3216_v57  ;;  %v3603_v8 = vcombine.high %v3595_v63, %v3595_v63  ;;  %v4963_v35 = vsel %vm4962_vm12, %v4893_v5, %v4961_v34  ;;  %v3312_v18 = vmul.f32 %v9573_v38, %v3212_v1 }
 0x351   : > { %v7434_v43 = vpop.f32.mrf.mxu1  ;;  %v5013_v51 = vpack.c.b16 %v4963_v35, %v4963_v35  ;;  %v3349_v7 = vadd.f32 %v9579_v44, %v3311_v61  ;;  %v4279_v49 = vsel %vm4107_vm1, %v3587_v0, -inf  ;;  %v3604_v62 = vcombine.high %v3602_v45, %v3602_v45 }
 0x352   : > { %v3313_v24 = vmul.f32 %v9573_v38, %v3217_v54  ;;  %v7435_v41 = vadd.f32 %v7434_v43, %v7433_v50  ;;  %v4250_v4 = vrot.slane %v4249_v37, 1  ;;  %v4288_v40 = vsel %vm4107_vm1, %v3595_v63, -inf }
 0x353   : > { %v5022_v28 = vshrl.u32 %v5013_v51, 16  ;;  %v3381_v12 = vmax.f32 %v3349_v7, 0.0  ;;  %v3350_v32 = vadd.f32 %v9579_v44, %v3312_v18  ;;  %v4297_v46 = vsel %vm4107_vm1, %v3603_v8, -inf }
 0x354   : > { %v4306_v59 = vsel %vm4107_vm1, %v3602_v45, -inf  ;;  %v5025_v23 = vshll.u32 %v5013_v51, 16  ;;  %v3351_v58 = vadd.f32 %v9579_v44, %v3313_v24  ;;  %v4315_v6 = vsel %vm4107_vm1, %v3604_v62, -inf }
 0x355   : > { %v5024_v27 = vrot.slane %v5022_v28, 7  ;;  %v3605_v16 = vcombine.high %v3381_v12, %v3381_v12  ;;  %v3612_v31 = vrot.slane %v3381_v12, %v9592_v15  ;;  %v3382_v39 = vmax.f32 %v3350_v32, 0.0 }
 0x356   : > { %v9762_v14 = vadd.f32 %v7435_v41, %v3219_v33  ;;  %v9764_v26 = vmax.f32 %v4249_v37, %v4250_v4  ;;  %v4698_v63 = vpack.c.bf16 %v9722_v42, %v9722_v42  ;;  %v9771_v25 = vmax.f32 %v3351_v58, 0.0 }
 0x357   : > { %v5027_v5 = vor.u32 %v5025_v23, %v5024_v27  ;;  %v3619_v30 = vrot.slane %v3605_v16, %v9592_v15  ;;  %v3620_v13 = vcombine.high %v3612_v31, %v3612_v31  ;;  %v4253_v57 = vsel %vm4107_vm1, %v3612_v31, -inf }
 0x358   : > { %v4254_v21 = vmax.f32 %v4252_v3, %v4253_v57  ;;  %v3622_v11 = vcombine.high %v3382_v39, %v3382_v39  ;;  %v3629_v19 = vrot.slane %v3382_v39, %v9592_v15 }
 0x359   : > { %v5085_v0 = vsel %vm8280_vm2, 0, %v5027_v5  ;;  %v3621_v37 = vcombine.high %v3619_v30, %v3619_v30  ;;  %v4262_v45 = vsel %vm4107_vm1, %v3620_v13, -inf  ;;  %v4271_v53 = vsel %vm4107_vm1, %v3619_v30, -inf }
 0x35a   : > { %v9779_v50 = vsel %vm9606_vm5, %v5085_v0, 0  ;;  %v4255_v34 = vrot.slane %v4254_v21, 4  ;;  %v4263_v61 = vmax.f32 %v4261_v9, %v4262_v45  ;;  %v4272_v3 = vmax.f32 %v4270_v55, %v4271_v53 }
 0x35b   : > { %5194 = vrot.lane.b32.xlu0 %v9779_v50, %s11239_s21  ;;  %v4280_v1 = vsel %vm4107_vm1, %v3621_v37, -inf  ;;  %v3636_v54 = vrot.slane %v3622_v11, %v9592_v15  ;;  %v3637_v8 = vcombine.high %v3629_v19, %v3629_v19  ;;  %v4289_v35 = vsel %vm4107_vm1, %v3629_v19, -inf }
 0x35c   : > { %v4256_v43 = vmax.f32 %v4254_v21, %v4255_v34  ;;  %v4264_v51 = vrot.slane %v4263_v61, 4  ;;  %v4273_v7 = vrot.slane %v4272_v3, 4  ;;  %v4281_v18 = vmax.f32 %v4279_v49, %v4280_v1 }
 0x35d   : > { %v3638_v24 = vcombine.high %v3636_v54, %v3636_v54  ;;  %v4290_v62 = vmax.f32 %v4288_v40, %v4289_v35  ;;  %v4298_v41 = vsel %vm4107_vm1, %v3637_v8, -inf  ;;  %v4307_v9 = vsel %vm4107_vm1, %v3636_v54, -inf }
 0x35e   : > { %v4257_v55 = vrot.slane %v4256_v43, 2  ;;  %v4265_v4 = vmax.f32 %v4263_v61, %v4264_v51  ;;  %v4274_v28 = vmax.f32 %v4272_v3, %v4273_v7  ;;  %v4282_v12 = vrot.slane %v4281_v18, 4 }
 0x35f   : > { %v4291_v32 = vrot.slane %v4290_v62, 4  ;;  %v4299_v23 = vmax.f32 %v4297_v46, %v4298_v41  ;;  %v4308_v58 = vmax.f32 %v4306_v59, %v4307_v9  ;;  %v4316_v33 = vsel %vm4107_vm1, %v3638_v24, -inf  ;;  %5161 = vrot.lane.b32.xlu0 %v9642_v36, %s11239_s21 }
 0x360   : > { %v4258_v27 = vmax.f32 %v4256_v43, %v4257_v55  ;;  %v4266_v49 = vrot.slane %v4265_v4, 2  ;;  %v4275_v16 = vrot.slane %v4274_v28, 2  ;;  %v4283_v40 = vmax.f32 %v4281_v18, %v4282_v12 }
 0x361   : > { %v4292_v31 = vmax.f32 %v4290_v62, %v4291_v32  ;;  %v4300_v39 = vrot.slane %v4299_v23, 4  ;;  %v4309_v5 = vrot.slane %v4308_v58, 4  ;;  %v4317_v30 = vmax.f32 %v4315_v6, %v4316_v33 }
 0x362   : > { %v4259_v13 = vrot.slane %v4258_v27, 1  ;;  %v4267_v57 = vmax.f32 %v4265_v4, %v4266_v49  ;;  %v4276_v21 = vmax.f32 %v4274_v28, %v4275_v16  ;;  %v4284_v11 = vrot.slane %v4283_v40, 2  ;;  %v9791_v19 = vpop.f32.mrf.mxu1 }
 0x363   : > { %v4293_v46 = vrot.slane %v4292_v31, 2  ;;  %v4301_v59 = vmax.f32 %v4299_v23, %v4300_v39  ;;  %v4310_v0 = vmax.f32 %v4308_v58, %v4309_v5  ;;  %v4318_v37 = vrot.slane %v4317_v30, 4 }
 0x364   : > { %v4260_v45 = vmax.f32 %v4258_v27, %v4259_v13  ;;  %v4268_v53 = vrot.slane %v4267_v57, 1  ;;  %v4277_v34 = vrot.slane %v4276_v21, 1  ;;  %v4285_v61 = vmax.f32 %v4283_v40, %v4284_v11  ;;  %v7437_v3 = vpop.f32.mrf.mxu1  ;;  %v9814_v11 = vpop.f32.mrf.mxu0 }
 0x365   : > { %v4294_v1 = vmax.f32 %v4292_v31, %v4293_v46  ;;  %v4302_v54 = vrot.slane %v4301_v59, 2  ;;  %v4311_v8 = vrot.slane %v4310_v0, 2  ;;  %v4319_v35 = vmax.f32 %v4317_v30, %v4318_v37 }
 0x366   : > { %v4269_v6 = vmax.f32 %v4267_v57, %v4268_v53  ;;  %v4278_v43 = vmax.f32 %v4276_v21, %v4277_v34  ;;  %v4286_v51 = vrot.slane %v4285_v61, 1  ;;  %v3314_v7 = vmul.f32 %v9573_v38, %v9762_v14  ;;  %v7439_v18 = vpop.f32.mrf.mxu1 }
 0x367   : > { %v4700_v24 = vpack.c.bf16 %v4260_v45, %v4260_v45  ;;  %v4295_v62 = vrot.slane %v4294_v1, 1  ;;  %v4303_v41 = vmax.f32 %v4301_v59, %v4302_v54  ;;  %v4312_v9 = vmax.f32 %v4310_v0, %v4311_v8  ;;  %v3232_v8 = vpop.f32.mrf.mxu0 }
 0x368   : > { %v4287_v55 = vmax.f32 %v4285_v61, %v4286_v51  ;;  %v4701_v4 = vpack.c.bf16 %v4269_v6, %v4269_v6  ;;  %v4702_v28 = vpack.c.bf16 %v4278_v43, %v4278_v43  ;;  %v4320_v12 = vrot.slane %v4319_v35, 2  ;;  %v7440_v32 = vpop.f32.mrf.mxu1  ;;  %v7972_v51 = vld [vmem:[%s11194_s7 + $0x78] sm:$0xff]  }
 0x369   : > { %v4296_v23 = vmax.f32 %v4294_v1, %v4295_v62  ;;  %v4304_v58 = vrot.slane %v4303_v41, 1  ;;  %v4313_v33 = vrot.slane %v4312_v9, 1  ;;  %v3639_v27 = vcombine.high %v9771_v25, %v9771_v25  ;;  %7508 = vmatprep.subr.bf16.mxu0 %v7972_v51 }
 0x36a   : > { %v4703_v49 = vpack.c.bf16 %v4287_v55, %v4287_v55  ;;  %v4903_v16 = vunpack.c.l.b16 %v4701_v4  ;;  %v3646_v38 = vrot.slane %v9771_v25, %v9592_v15  ;;  %v4699_v14 = vpack.c.bf16 %v9764_v26, %v9764_v26  ;;  %v7442_v40 = vpop.f32.mrf.mxu1 }
 0x36b   : > { %v4902_v31 = vunpack.c.l.b16 %v4700_v24  ;;  %v4305_v39 = vmax.f32 %v4303_v41, %v4304_v58  ;;  %v4704_v5 = vpack.c.bf16 %v4296_v23, %v4296_v23  ;;  %v4965_v30 = vsel %vm4952_vm7, %v9718_v22, %v9725_v56  ;;  %v9855_v23 = vpop.f32.mrf.mxu0 }
 0x36c   : > { %v4899_v13 = vunpack.c.l.b16 %v4697_v60  ;;  %v9807_v57 = vunpack.c.l.b16 %v4702_v28  ;;  %v9809_v21 = vmax.f32 %v4319_v35, %v4320_v12  ;;  %v4900_v26 = vunpack.c.l.b16 %v4698_v63  ;;  %v7443_v25 = vpop.f32.mrf.mxu1 }
 0x36d   : > { %v9816_v46 = vunpack.c.l.b16 %v4703_v49  ;;  %v9819_v59 = vsel %vm4950_vm6, %v4903_v16, %v4902_v31  ;;  %v9821_v22 = vmax.f32 %v4312_v9, %v4313_v33  ;;  %v3653_v48 = vrot.slane %v3639_v27, %v9592_v15  ;;  %v7974_v49 = vld [vmem:[%s11194_s7 + $0x70] sm:$0xff]  }
 0x36e   : > { %v3654_v56 = vcombine.high %v3646_v38, %v3646_v38  ;;  %v3352_v60 = vadd.f32 %v9579_v44, %v3314_v7  ;;  %v4901_v0 = vunpack.c.l.b16 %v4699_v14  ;;  %v4966_v42 = vsel %vm4954_vm8, %v9720_v20, %v4965_v30  ;;  %v7445_v34 = vpop.f32.mrf.mxu1  ;;  %v7975_v31 = vld [vmem:[%s11194_s7 + $0x30] sm:$0xff]   ;;  %v9875_v30 = vld [vmem:[%s11193_s6] ss:$0 sm:$0xff] }
 0x36f   : > { %v4705_v63 = vpack.c.bf16 %v4305_v39, %v4305_v39  ;;  %v9827_v37 = vunpack.c.l.b16 %v4704_v5  ;;  %v9830_v45 = vsel %vm4107_vm1, %v3646_v38, -inf  ;;  %v4967_v53 = vsel %vm4956_vm9, %v9730_v10, %v4966_v42 }
 0x370   : > { %v3384_v61 = vmax.f32 %v3352_v60, 0.0  ;;  %v4968_v1 = vsel %vm4958_vm10, %v4899_v13, %v4967_v53  ;;  %v5115_v54 = vshll.u32 %v9779_v50, 16  ;;  %v7438_v44 = vadd.f32 %v7437_v3, %v9791_v19  ;;  %v7973_v19 = vld [vmem:[%s11194_s7 + $0x38] sm:$0xff]   ;;  %v7446_v55 = vpop.f32.mrf.mxu1 }
 0x371   : > { %v3655_v35 = vcombine.high %v3653_v48, %v3653_v48  ;;  %v4969_v20 = vsel %vm4960_vm11, %v4900_v26, %v4968_v1  ;;  %v7441_v6 = vadd.f32 %v7440_v32, %v7439_v18  ;;  %v7444_v43 = vadd.f32 %v7443_v25, %v7442_v40  ;;  %7509 = vmatpush3.bf16.msra.mxu0 %v7973_v19 }
 0x372   : > { %v9842_v10 = vsel %vm4107_vm1, %v3653_v48, -inf  ;;  %v3656_v7 = vcombine.high %v3384_v61, %v3384_v61  ;;  %v3663_v24 = vrot.slane %v3384_v61, %v9592_v15  ;;  %v4970_v62 = vsel %vm4962_vm12, %v4901_v0, %v4969_v20  ;;  %7510 = vmatprep.subr.bf16.mxu0 %v7974_v49  ;;  %v3235_v0 = vpop.f32.mrf.mxu0 }
 0x373   : > { %v5014_v3 = vpack.c.b16 %v4970_v62, %v4970_v62  ;;  %v3225_v18 = vadd.f32 %v9716_v47, %v7438_v44  ;;  %v3228_v41 = vadd.f32 %v9749_v52, %v7441_v6  ;;  %v3233_v9 = vadd.f32 %v7444_v43, %v3232_v8  ;;  %v9860_v47 = vld [vmem:[%s11192_s5] ss:$0 sm:$0xff] }
 0x374   : > { %v9851_v4 = vunpack.c.l.b16 %v4705_v63  ;;  %v4333_v28 = vsel %vm4107_vm1, %v3654_v56, -inf  ;;  %v3670_v12 = vrot.slane %v3656_v7, %v9592_v15  ;;  %v5117_v32 = vrot.slane %v5115_v54, 1 }
 0x375   : > { %v3671_v58 = vcombine.high %v3663_v24, %v3663_v24  ;;  %v5029_v33 = vshrl.u32 %v5014_v3, 16  ;;  %v3315_v52 = vmul.f32 %v9860_v47, %v3225_v18  ;;  %v3316_v27 = vmul.f32 %v9860_v47, %v3228_v41  ;;  %7511 = vmatpush3.bf16.msra.mxu0 %v7975_v31 }
 0x376   : > { %v3672_v16 = vcombine.high %v3670_v12, %v3670_v12  ;;  %v5113_v38 = vshrl.u32 %v9779_v50, 16  ;;  %v3317_v14 = vmul.f32 %v9860_v47, %v3233_v9  ;;  %v7447_v40 = vadd.f32 %v7446_v55, %v7445_v34 }
 0x377   : > { %v5031_v39 = vrot.slane %v5029_v33, 7  ;;  %v5032_v5 = vshll.u32 %v5014_v3, 16  ;;  %v3353_v13 = vadd.f32 %v9875_v30, %v3315_v52  ;;  %v3354_v26 = vadd.f32 %v9875_v30, %v3316_v27 }
 0x378   : > { %v4351_v25 = vsel %vm4107_vm1, %v3655_v35, -inf  ;;  %v4360_v48 = vsel %vm4107_vm1, %v3663_v24, -inf  ;;  %v9881_v56 = vor.u32 %v5117_v32, %v5113_v38  ;;  %v3355_v60 = vadd.f32 %v9875_v30, %v3317_v14 }
 0x379   : > { %v4369_v42 = vsel %vm4107_vm1, %v3671_v58, -inf  ;;  %v5034_v63 = vor.u32 %v5032_v5, %v5031_v39  ;;  %v3385_v53 = vmax.f32 %v3353_v13, 0.0  ;;  %v3386_v34 = vmax.f32 %v3354_v26, 0.0 }
 0x37a   : > { %v4378_v61 = vsel %vm4107_vm1, %v3670_v12, -inf  ;;  %v4387_v1 = vsel %vm4107_vm1, %v3672_v16, -inf  ;;  %v9887_v54 = vmax.f32 %v3355_v60, 0.0  ;;  %v9889_v44 = vadd.f32 %v7447_v40, %v3235_v0 }
 0x37b   : > { %v5086_v8 = vsel %vm8280_vm2, 0, %v5034_v63  ;;  %v3673_v35 = vcombine.high %v3385_v53, %v3385_v53  ;;  %v3680_v20 = vrot.slane %v3385_v53, %v9592_v15  ;;  %v3690_v6 = vcombine.high %v3386_v34, %v3386_v34 }
 0x37c   : > { %v9896_v43 = vsel %vm9606_vm5, %v5086_v8, 0  ;;  %v3697_v51 = vrot.slane %v3386_v34, %v9592_v15  ;;  %v4322_v7 = vrot.slane %v9809_v21, 1  ;;  %v4706_v24 = vpack.c.bf16 %v9821_v22, %v9821_v22 }
 0x37d   : > { %5196 = vrot.lane.b32.xlu1 %v9896_v43, %s11239_s21  ;;  %v3687_v62 = vrot.slane %v3673_v35, %v9592_v15  ;;  %v3688_v19 = vcombine.high %v3680_v20, %v3680_v20  ;;  %v4325_v3 = vsel %vm4107_vm1, %v3680_v20, -inf  ;;  %v3704_v18 = vrot.slane %v3690_v6, %v9592_v15 }
 0x37e   : > { %v4326_v41 = vmax.f32 %v9830_v45, %v4325_v3  ;;  %v3705_v9 = vcombine.high %v3697_v51, %v3697_v51  ;;  %v4361_v55 = vsel %vm4107_vm1, %v3697_v51, -inf  ;;  %v3707_v12 = vcombine.high %v9887_v54, %v9887_v54 }
 0x37f   : > { %v3689_v32 = vcombine.high %v3687_v62, %v3687_v62  ;;  %v4334_v58 = vsel %vm4107_vm1, %v3688_v19, -inf  ;;  %v4343_v33 = vsel %vm4107_vm1, %v3687_v62, -inf  ;;  %v3706_v52 = vcombine.high %v3704_v18, %v3704_v18 }
 0x380   : > { %v4327_v27 = vrot.slane %v4326_v41, 4  ;;  %v4335_v49 = vmax.f32 %v4333_v28, %v4334_v58  ;;  %v4344_v16 = vmax.f32 %v9842_v10, %v4343_v33  ;;  %v4362_v38 = vmax.f32 %v4360_v48, %v4361_v55 }
 0x381   : > { %5163 = vrot.lane.b32.xlu1 %v9881_v56, %s11239_s21  ;;  %v4352_v45 = vsel %vm4107_vm1, %v3689_v32, -inf  ;;  %v4370_v14 = vsel %vm4107_vm1, %v3705_v9, -inf  ;;  %v4379_v40 = vsel %vm4107_vm1, %v3704_v18, -inf  ;;  %v4388_v31 = vsel %vm4107_vm1, %v3706_v52, -inf }
 0x382   : > { %v4328_v39 = vmax.f32 %v4326_v41, %v4327_v27  ;;  %v4336_v5 = vrot.slane %v4335_v49, 4  ;;  %v4345_v13 = vrot.slane %v4344_v16, 4  ;;  %v4353_v26 = vmax.f32 %v4351_v25, %v4352_v45  ;;  %v9920_v60 = vpop.f32.mrf.mxu1  ;;  %v7976_v45 = vld [vmem:[%s11194_s7 + $0x68] sm:$0xff]  }
 0x383   : > { %v4363_v28 = vrot.slane %v4362_v38, 4  ;;  %v4371_v10 = vmax.f32 %v4369_v42, %v4370_v14  ;;  %v4380_v48 = vmax.f32 %v4378_v61, %v4379_v40  ;;  %v4389_v0 = vmax.f32 %v4387_v1, %v4388_v31  ;;  %v7977_v14 = vld [vmem:[%s11194_s7 + $0x28] sm:$0xff]   ;;  %7512 = vmatprep.subr.bf16.mxu0 %v7976_v45 }
 0x384   : > { %v4329_v63 = vrot.slane %v4328_v39, 2  ;;  %v4337_v53 = vmax.f32 %v4335_v49, %v4336_v5  ;;  %v4346_v34 = vmax.f32 %v4344_v16, %v4345_v13  ;;  %v4354_v8 = vrot.slane %v4353_v26, 4  ;;  %v9922_v35 = vpop.f32.mrf.mxu1  ;;  %7513 = vmatpush3.bf16.msra.mxu0 %v7977_v14 }
 0x385   : > { %v4364_v20 = vmax.f32 %v4362_v38, %v4363_v28  ;;  %v4372_v6 = vrot.slane %v4371_v10, 4  ;;  %v4381_v51 = vrot.slane %v4380_v48, 4  ;;  %v4390_v62 = vrot.slane %v4389_v0, 4 }
 0x386   : > { %v4330_v19 = vmax.f32 %v4328_v39, %v4329_v63  ;;  %v4338_v3 = vrot.slane %v4337_v53, 2  ;;  %v4347_v18 = vrot.slane %v4346_v34, 2  ;;  %v4355_v25 = vmax.f32 %v4353_v26, %v4354_v8  ;;  %v9924_v41 = vpop.f32.mrf.mxu1 }
 0x387   : > { %v4365_v9 = vrot.slane %v4364_v20, 2  ;;  %v4373_v42 = vmax.f32 %v4371_v10, %v4372_v6  ;;  %v4382_v61 = vmax.f32 %v4380_v48, %v4381_v51  ;;  %v4391_v1 = vmax.f32 %v4389_v0, %v4390_v62  ;;  %v7978_v62 = vld [vmem:[%s11194_s7 + $0x60] sm:$0xff]  }
 0x388   : > { %v4331_v55 = vrot.slane %v4330_v19, 1  ;;  %v4339_v32 = vmax.f32 %v4337_v53, %v4338_v3  ;;  %v4348_v58 = vmax.f32 %v4346_v34, %v4347_v18  ;;  %v4356_v33 = vrot.slane %v4355_v25, 2  ;;  %v7452_v38 = vpop.f32.mrf.mxu1  ;;  %7514 = vmatprep.subr.bf16.mxu0 %v7978_v62 }
 0x389   : > { %v4366_v52 = vmax.f32 %v4364_v20, %v4365_v9  ;;  %v4374_v27 = vrot.slane %v4373_v42, 2  ;;  %v4383_v49 = vrot.slane %v4382_v61, 2  ;;  %v3714_v16 = vrot.slane %v9887_v54, %v9592_v15 }
 0x38a   : > { %v4332_v40 = vmax.f32 %v4330_v19, %v4331_v55  ;;  %v4340_v31 = vrot.slane %v4339_v32, 1  ;;  %v4349_v39 = vrot.slane %v4348_v58, 1  ;;  %v4357_v5 = vmax.f32 %v4355_v25, %v4356_v33  ;;  %v7454_v51 = vpop.f32.mrf.mxu1  ;;  %v7979_v19 = vld [vmem:[%s11194_s7 + $0x20] sm:$0xff]  }
 0x38b   : > { %v4367_v13 = vrot.slane %v4366_v52, 1  ;;  %v4375_v26 = vmax.f32 %v4373_v42, %v4374_v27  ;;  %v4384_v28 = vmax.f32 %v4382_v61, %v4383_v49  ;;  %v4392_v10 = vrot.slane %v4391_v1, 2  ;;  %7515 = vmatpush3.bf16.msra.mxu0 %v7979_v19 }
 0x38c   : > { %v4341_v48 = vmax.f32 %v4339_v32, %v4340_v31  ;;  %v4350_v0 = vmax.f32 %v4348_v58, %v4349_v39  ;;  %v4358_v63 = vrot.slane %v4357_v5, 1  ;;  %v4708_v53 = vpack.c.bf16 %v4332_v40, %v4332_v40  ;;  %v7455_v45 = vpop.f32.mrf.mxu1 }
 0x38d   : > { %v4368_v34 = vmax.f32 %v4366_v52, %v4367_v13  ;;  %v4376_v8 = vrot.slane %v4375_v26, 1  ;;  %v4385_v20 = vrot.slane %v4384_v28, 1  ;;  %v3721_v6 = vrot.slane %v3707_v12, %v9592_v15 }
 0x38e   : > { %v4359_v3 = vmax.f32 %v4357_v5, %v4358_v63  ;;  %v4709_v18 = vpack.c.bf16 %v4341_v48, %v4341_v48  ;;  %v4710_v25 = vpack.c.bf16 %v4350_v0, %v4350_v0  ;;  %v3318_v9 = vmul.f32 %v9860_v47, %v9889_v44  ;;  %v7457_v48 = vpop.f32.mrf.mxu1 }
 0x38f   : > { %v9946_v42 = vmax.f32 %v4375_v26, %v4376_v8  ;;  %v4712_v61 = vpack.c.bf16 %v4368_v34, %v4368_v34  ;;  %v3722_v54 = vcombine.high %v3714_v16, %v3714_v16  ;;  %v4323_v12 = vmax.f32 %v9809_v21, %v4322_v7  ;;  %v9961_v21 = vpop.f32.mrf.mxu0 }
 0x390   : > { %v4910_v55 = vunpack.c.l.b16 %v4708_v53  ;;  %v9951_v32 = vmax.f32 %v4391_v1, %v4392_v10  ;;  %v4908_v58 = vunpack.c.l.b16 %v4706_v24  ;;  %v4972_v44 = vsel %vm4952_vm7, %v9807_v57, %v9819_v59 }
 0x391   : > { %v4711_v33 = vpack.c.bf16 %v4359_v3, %v4359_v3  ;;  %v4911_v52 = vunpack.c.l.b16 %v4709_v18  ;;  %v9959_v27 = vmax.f32 %v4384_v28, %v4385_v20  ;;  %v3723_v49 = vcombine.high %v3721_v6, %v3721_v6  ;;  %v3248_v0 = vpop.f32.mrf.mxu0  ;;  %v7458_v3 = vpop.f32.mrf.mxu1 }
 0x392   : > { %v9963_v7 = vunpack.c.l.b16 %v4710_v25  ;;  %v4713_v1 = vpack.c.bf16 %v9946_v42, %v9946_v42  ;;  %v9968_v22 = vsel %vm4107_vm1, %v3714_v16, -inf  ;;  %v3356_v24 = vadd.f32 %v9875_v30, %v3318_v9 }
 0x393   : > { %v9971_v57 = vunpack.c.l.b16 %v4712_v61  ;;  %v9974_v59 = vsel %vm4107_vm1, %v3722_v54, -inf  ;;  %v4707_v14 = vpack.c.bf16 %v4323_v12, %v4323_v12  ;;  %v4973_v40 = vsel %vm4954_vm8, %v9816_v46, %v4972_v44  ;;  %v10006_v9 = vpop.f32.mrf.mxu0 }
 0x394   : > { %v3388_v31 = vmax.f32 %v3356_v24, 0.0  ;;  %v4974_v39 = vsel %vm4956_vm9, %v9827_v37, %v4973_v40  ;;  %v5122_v5 = vshll.u32 %v9896_v43, 16  ;;  %v7450_v16 = vadd.f32 %v9922_v35, %v9920_v60 }
 0x395   : > { %v4909_v13 = vunpack.c.l.b16 %v4707_v14  ;;  %v4975_v26 = vsel %vm4958_vm10, %v9851_v4, %v4974_v39  ;;  %v7453_v28 = vadd.f32 %v7452_v38, %v9924_v41  ;;  %v7456_v10 = vadd.f32 %v7455_v45, %v7454_v51  ;;  %v7981_v39 = vld [vmem:[%s11194_s7 + $0x18] sm:$0xff]  }
 0x396   : > { %v9987_v46 = vsel %vm4107_vm1, %v3721_v6, -inf  ;;  %v3724_v63 = vcombine.high %v3388_v31, %v3388_v31  ;;  %v3731_v37 = vrot.slane %v3388_v31, %v9592_v15  ;;  %v4976_v53 = vsel %vm4960_vm11, %v4908_v58, %v4975_v26  ;;  %v10017_v40 = vpop.f32.mrf.mxu1  ;;  %v7980_v31 = vld [vmem:[%s11194_s7 + $0x58] sm:$0xff]  }
 0x397   : > { %v4977_v34 = vsel %vm4962_vm12, %v4909_v13, %v4976_v53  ;;  %v3241_v60 = vadd.f32 %v9814_v11, %v7450_v16  ;;  %v3244_v35 = vadd.f32 %v9855_v23, %v7453_v28  ;;  %v3249_v4 = vadd.f32 %v7456_v10, %v3248_v0  ;;  %v3251_v28 = vpop.f32.mrf.mxu0  ;;  %7516 = vmatprep.subr.bf16.mxu0 %v7980_v31 }
 0x398   : > { %v9994_v8 = vunpack.c.l.b16 %v4711_v33  ;;  %v9997_v41 = vsel %vm4950_vm6, %v4911_v52, %v4910_v55  ;;  %v3738_v38 = vrot.slane %v3724_v63, %v9592_v15  ;;  %v5015_v20 = vpack.c.b16 %v4977_v34, %v4977_v34  ;;  %7517 = vmatpush3.bf16.msra.mxu0 %v7981_v39 }
 0x399   : > { %v5124_v6 = vrot.slane %v5122_v5, 1  ;;  %v3319_v51 = vmul.f32 %v9860_v47, %v3241_v60  ;;  %v3320_v62 = vmul.f32 %v9860_v47, %v3244_v35  ;;  %v3321_v19 = vmul.f32 %v9860_v47, %v3249_v4  ;;  %v7982_v35 = vld [vmem:[%s11194_s7 + $0x50] sm:$0xff]  }
 0x39a   : > { %v10004_v11 = vsel %vm4107_vm1, %v3723_v49, -inf  ;;  %v3739_v23 = vcombine.high %v3731_v37, %v3731_v37  ;;  %v3740_v18 = vcombine.high %v3738_v38, %v3738_v38  ;;  %v5036_v25 = vshrl.u32 %v5015_v20, 16  ;;  %v7983_v4 = vld [vmem:[%s11194_s7 + $0x10] sm:$0xff]   ;;  %7518 = vmatprep.subr.bf16.mxu0 %v7982_v35 }
 0x39b   : > { %v5120_v61 = vshrl.u32 %v9896_v43, 16  ;;  %v3357_v54 = vadd.f32 %v9875_v30, %v3319_v51  ;;  %v3358_v12 = vadd.f32 %v9875_v30, %v3320_v62  ;;  %v3359_v55 = vadd.f32 %v9875_v30, %v3321_v19  ;;  %v10049_v62 = vpop.f32.mrf.mxu1  ;;  %v7984_v19 = vld [vmem:[%s11194_s7 + $0x48] sm:$0xff]  }
 0x39c   : > { %v4432_v58 = vsel %vm4107_vm1, %v3731_v37, -inf  ;;  %v5038_v44 = vrot.slane %v5036_v25, 7  ;;  %v5039_v33 = vshll.u32 %v5015_v20, 16  ;;  %v7459_v52 = vadd.f32 %v7458_v3, %v7457_v48  ;;  %7519 = vmatpush3.bf16.msra.mxu0 %v7983_v4 }
 0x39d   : > { %v10013_v49 = vor.u32 %v5124_v6, %v5120_v61  ;;  %v3389_v45 = vmax.f32 %v3357_v54, 0.0  ;;  %v3390_v24 = vmax.f32 %v3358_v12, 0.0  ;;  %v10015_v14 = vmax.f32 %v3359_v55, 0.0  ;;  %7520 = vmatprep.subr.bf16.mxu0 %v7984_v19  ;;  %v7987_v19 = vld [vmem:[%s11194_s7] sm:$0xff]  }
 0x39e   : > { %v4441_v5 = vsel %vm4107_vm1, %v3739_v23, -inf  ;;  %v4450_v16 = vsel %vm4107_vm1, %v3738_v38, -inf  ;;  %v4459_v13 = vsel %vm4107_vm1, %v3740_v18, -inf  ;;  %v5041_v26 = vor.u32 %v5039_v33, %v5038_v44 }
 0x39f   : > { %11244 = vst [vmem:[#allocation6_spill] sm:$0xff] %v10013_v49  ;;  %v3741_v10 = vcombine.high %v3389_v45, %v3389_v45  ;;  %v3748_v48 = vrot.slane %v3389_v45, %v9592_v15  ;;  %v3758_v0 = vcombine.high %v3390_v24, %v3390_v24  ;;  %v3765_v63 = vrot.slane %v3390_v24, %v9592_v15 }
 0x3a0   : > { %v5087_v37 = vsel %vm8280_vm2, 0, %v5041_v26  ;;  %v3775_v53 = vcombine.high %v10015_v14, %v10015_v14  ;;  %v10034_v34 = vadd.f32 %v7459_v52, %v3251_v28  ;;  %v4394_v60 = vrot.slane %v9951_v32, 1  ;;  %v10069_v28 = vpop.f32.mrf.mxu1 }
 0x3a1   : > { %v10045_v38 = vsel %vm9606_vm5, %v5087_v37, 0  ;;  %v3755_v20 = vrot.slane %v3741_v10, %v9592_v15  ;;  %v3756_v6 = vcombine.high %v3748_v48, %v3748_v48  ;;  %v4397_v51 = vsel %vm4107_vm1, %v3748_v48, -inf  ;;  %v7986_v48 = vld [vmem:[%s11194_s7 + $0x40] sm:$0xff]  }
 0x3a2   : > { %5198 = vrot.lane.b32.xlu0 %v10045_v38, %s11239_s21  ;;  %v4398_v3 = vmax.f32 %v9968_v22, %v4397_v51  ;;  %v3772_v23 = vrot.slane %v3758_v0, %v9592_v15  ;;  %v3773_v18 = vcombine.high %v3765_v63, %v3765_v63  ;;  %v4433_v25 = vsel %vm4107_vm1, %v3765_v63, -inf  ;;  %v7985_v22 = vld [vmem:[%s11194_s7 + $0x8] sm:$0xff]  }
 0x3a3   : > { %v3757_v61 = vcombine.high %v3755_v20, %v3755_v20  ;;  %v4406_v54 = vsel %vm4107_vm1, %v3756_v6, -inf  ;;  %v4415_v12 = vsel %vm4107_vm1, %v3755_v20, -inf  ;;  %v4434_v55 = vmax.f32 %v4432_v58, %v4433_v25  ;;  %7521 = vmatpush3.bf16.msra.mxu0 %v7985_v22  ;;  %v10081_v25 = vpop.f32.mrf.mxu1 }
 0x3a4   : > { %v4399_v44 = vrot.slane %v4398_v3, 4  ;;  %v4407_v33 = vmax.f32 %v9974_v59, %v4406_v54  ;;  %v4416_v52 = vmax.f32 %v9987_v46, %v4415_v12  ;;  %v3774_v45 = vcombine.high %v3772_v23, %v3772_v23  ;;  %7522 = vmatprep.subr.bf16.mxu0 %v7986_v48 }
 0x3a5   : > { %v4424_v24 = vsel %vm4107_vm1, %v3757_v61, -inf  ;;  %v4435_v31 = vrot.slane %v4434_v55, 4  ;;  %v4442_v39 = vsel %vm4107_vm1, %v3773_v18, -inf  ;;  %v4451_v26 = vsel %vm4107_vm1, %v3772_v23, -inf }
 0x3a6   : > { %5165 = vrot.lane.b32.xlu0 %v10013_v49, %s11239_s21  ;;  %v4400_v59 = vmax.f32 %v4398_v3, %v4399_v44  ;;  %v4408_v46 = vrot.slane %v4407_v33, 4  ;;  %v4417_v58 = vrot.slane %v4416_v52, 4  ;;  %v4425_v10 = vmax.f32 %v10004_v11, %v4424_v24 }
 0x3a7   : > { %v4436_v0 = vmax.f32 %v4434_v55, %v4435_v31  ;;  %v4443_v63 = vmax.f32 %v4441_v5, %v4442_v39  ;;  %v4452_v37 = vmax.f32 %v4450_v16, %v4451_v26  ;;  %v4460_v35 = vsel %vm4107_vm1, %v3774_v45, -inf  ;;  %7523 = vmatpush3.bf16.msra.mxu0 %v7987_v19 }
 0x3a8   : > { %v4401_v4 = vrot.slane %v4400_v59, 2  ;;  %v4409_v20 = vmax.f32 %v4407_v33, %v4408_v46  ;;  %v4418_v6 = vmax.f32 %v4416_v52, %v4417_v58  ;;  %v4426_v51 = vrot.slane %v4425_v10, 4  ;;  %v7466_v46 = vpop.f32.mrf.mxu1 }
 0x3a9   : > { %v4437_v3 = vrot.slane %v4436_v0, 2  ;;  %v4444_v11 = vrot.slane %v4443_v63, 4  ;;  %v4453_v23 = vrot.slane %v4452_v37, 4  ;;  %v4461_v18 = vmax.f32 %v4459_v13, %v4460_v35 }
 0x3aa   : > { %v4402_v5 = vmax.f32 %v4400_v59, %v4401_v4  ;;  %v4410_v16 = vrot.slane %v4409_v20, 2  ;;  %v4419_v61 = vrot.slane %v4418_v6, 2  ;;  %v4427_v54 = vmax.f32 %v4425_v10, %v4426_v51 }
 0x3ab   : > { %v4438_v12 = vmax.f32 %v4436_v0, %v4437_v3  ;;  %v4445_v55 = vmax.f32 %v4443_v63, %v4444_v11  ;;  %v4454_v44 = vmax.f32 %v4452_v37, %v4453_v23  ;;  %v4462_v33 = vrot.slane %v4461_v18, 4 }
 0x3ac   : > { %v4403_v52 = vrot.slane %v4402_v5, 1  ;;  %v4411_v45 = vmax.f32 %v4409_v20, %v4410_v16  ;;  %v4420_v22 = vmax.f32 %v4418_v6, %v4419_v61  ;;  %v4428_v24 = vrot.slane %v4427_v54, 2 }
 0x3ad   : > { %v4439_v31 = vrot.slane %v4438_v12, 1  ;;  %v4446_v39 = vrot.slane %v4445_v55, 2  ;;  %v4455_v26 = vrot.slane %v4454_v44, 2  ;;  %v4463_v13 = vmax.f32 %v4461_v18, %v4462_v33  ;;  %v7467_v18 = vpop.f32.mrf.mxu1 }
 0x3ae   : > { %v4404_v58 = vmax.f32 %v4402_v5, %v4403_v52  ;;  %v4412_v48 = vrot.slane %v4411_v45, 1  ;;  %v4421_v59 = vrot.slane %v4420_v22, 1  ;;  %v4429_v35 = vmax.f32 %v4427_v54, %v4428_v24 }
 0x3af   : > { %v4440_v4 = vmax.f32 %v4438_v12, %v4439_v31  ;;  %v4447_v10 = vmax.f32 %v4445_v55, %v4446_v39  ;;  %v4456_v0 = vmax.f32 %v4454_v44, %v4455_v26  ;;  %v4464_v63 = vrot.slane %v4463_v13, 2 }
 0x3b0   : > { %v4413_v37 = vmax.f32 %v4411_v45, %v4412_v48  ;;  %v4422_v51 = vmax.f32 %v4420_v22, %v4421_v59  ;;  %v4430_v3 = vrot.slane %v4429_v35, 1  ;;  %v4716_v20 = vpack.c.bf16 %v4404_v58, %v4404_v58 }
 0x3b1   : > { %v4448_v6 = vrot.slane %v4447_v10, 1  ;;  %v4457_v11 = vrot.slane %v4456_v0, 1  ;;  %v4720_v19 = vpack.c.bf16 %v4440_v4, %v4440_v4  ;;  %v3782_v23 = vrot.slane %v10015_v14, %v9592_v15 }
 0x3b2   : > { %v4431_v16 = vmax.f32 %v4429_v35, %v4430_v3  ;;  %v4717_v5 = vpack.c.bf16 %v4413_v37, %v4413_v37  ;;  %v4718_v61 = vpack.c.bf16 %v4422_v51, %v4422_v51  ;;  %v3322_v54 = vmul.f32 %v9860_v47, %v10034_v34 }
 0x3b3   : > { %v4449_v12 = vmax.f32 %v4447_v10, %v4448_v6  ;;  %v3789_v55 = vrot.slane %v3775_v53, %v9592_v15  ;;  %v4395_v44 = vmax.f32 %v9951_v32, %v4394_v60  ;;  %v4714_v33 = vpack.c.bf16 %v9959_v27, %v9959_v27  ;;  %v7469_v32 = vpop.f32.mrf.mxu1 }
 0x3b4   : > { %v4915_v52 = vunpack.c.l.b16 %v4713_v1  ;;  %v4918_v45 = vunpack.c.l.b16 %v4716_v20  ;;  %v10099_v22 = vmax.f32 %v4463_v13, %v4464_v63  ;;  %v4979_v34 = vsel %vm4952_vm7, %v9963_v7, %v9997_v41  ;;  %v10111_v1 = vpop.f32.mrf.mxu0 }
 0x3b5   : > { %v4719_v14 = vpack.c.bf16 %v4431_v16, %v4431_v16  ;;  %v4919_v53 = vunpack.c.l.b16 %v4717_v5  ;;  %v10104_v24 = vmax.f32 %v4456_v0, %v4457_v11  ;;  %v10106_v31 = vunpack.c.l.b16 %v4720_v19  ;;  %v7470_v37 = vpop.f32.mrf.mxu1 }
 0x3b6   : > { %v10108_v60 = vunpack.c.l.b16 %v4718_v61  ;;  %v4721_v27 = vpack.c.bf16 %v4449_v12, %v4449_v12  ;;  %v3790_v39 = vcombine.high %v3782_v23, %v3782_v23  ;;  %v3360_v42 = vadd.f32 %v9875_v30, %v3322_v54  ;;  %v3264_v6 = vpop.f32.mrf.mxu0 }
 0x3b7   : > { %v3791_v26 = vcombine.high %v3789_v55, %v3789_v55  ;;  %v10114_v13 = vsel %vm4107_vm1, %v3782_v23, -inf  ;;  %v4715_v7 = vpack.c.bf16 %v4395_v44, %v4395_v44  ;;  %v4916_v41 = vunpack.c.l.b16 %v4714_v33  ;;  %v7472_v54 = vpop.f32.mrf.mxu1 }
 0x3b8   : > { %v10117_v58 = vsel %vm4107_vm1, %v3789_v55, -inf  ;;  %v3392_v48 = vmax.f32 %v3360_v42, 0.0  ;;  %v4980_v59 = vsel %vm4954_vm8, %v9994_v8, %v4979_v34  ;;  %v7462_v35 = vadd.f32 %v10049_v62, %v10017_v40  ;;  %v10145_v55 = vpop.f32.mrf.mxu0 }
 0x3b9   : > { %v4917_v4 = vunpack.c.l.b16 %v4715_v7  ;;  %v4981_v10 = vsel %vm4956_vm9, %v9971_v57, %v4980_v59  ;;  %v5129_v0 = vshll.u32 %v10045_v38, 16  ;;  %v7465_v63 = vadd.f32 %v10081_v25, %v10069_v28 }
 0x3ba   : > { %v3792_v51 = vcombine.high %v3392_v48, %v3392_v48  ;;  %v3799_v3 = vrot.slane %v3392_v48, %v9592_v15  ;;  %v4982_v20 = vsel %vm4958_vm10, %v4915_v52, %v4981_v10  ;;  %v3257_v8 = vadd.f32 %v9961_v21, %v7462_v35  ;;  %v7473_v48 = vpop.f32.mrf.mxu1  ;;  %v7988_v10 = vld [vmem:[%s11194_s7 + $0xf8] sm:$0xff]  }
 0x3bb   : > { %v10131_v11 = vunpack.c.l.b16 %v4719_v14  ;;  %v4983_v40 = vsel %vm4960_vm11, %v4916_v41, %v4982_v20  ;;  %v3260_v57 = vadd.f32 %v10006_v9, %v7465_v63  ;;  %v7468_v62 = vadd.f32 %v7467_v18, %v7466_v46  ;;  %7548 = vmatprep.subr.bf16.mxu1 %v7988_v10  ;;  %v7990_v10 = vld [vmem:[%s11194_s7 + $0xf0] sm:$0xff]  }
 0x3bc   : > { %v10136_v19 = vsel %vm4950_vm6, %v4919_v53, %v4918_v45  ;;  %v4477_v28 = vsel %vm4107_vm1, %v3790_v39, -inf  ;;  %v3806_v25 = vrot.slane %v3792_v51, %v9592_v15  ;;  %v4984_v23 = vsel %vm4962_vm12, %v4917_v4, %v4983_v40 }
 0x3bd   : > { %v10141_v16 = vunpack.c.l.b16 %v4721_v27  ;;  %v5016_v21 = vpack.c.b16 %v4984_v23, %v4984_v23  ;;  %v3323_v5 = vmul.f32 %v9860_v47, %v3257_v8  ;;  %v3324_v61 = vmul.f32 %v9860_v47, %v3260_v57 }
 0x3be   : > { %v3807_v12 = vcombine.high %v3799_v3, %v3799_v3  ;;  %v3808_v9 = vcombine.high %v3806_v25, %v3806_v25  ;;  %v5131_v46 = vrot.slane %v5129_v0, 1  ;;  %v3265_v18 = vadd.f32 %v7468_v62, %v3264_v6  ;;  %v3267_v0 = vpop.f32.mrf.mxu0 }
 0x3bf   : > { %v4495_v44 = vsel %vm4107_vm1, %v3791_v26, -inf  ;;  %v5043_v33 = vshrl.u32 %v5016_v21, 16  ;;  %v3361_v52 = vadd.f32 %v9875_v30, %v3323_v5  ;;  %v3362_v45 = vadd.f32 %v9875_v30, %v3324_v61 }
 0x3c0   : > { %v4504_v34 = vsel %vm4107_vm1, %v3799_v3, -inf  ;;  %v5127_v14 = vshrl.u32 %v10045_v38, 16  ;;  %v3325_v53 = vmul.f32 %v9860_v47, %v3265_v18  ;;  %v7471_v27 = vadd.f32 %v7470_v37, %v7469_v32  ;;  %v7989_v32 = vld [vmem:[%s11194_s7 + $0xb8] sm:$0xff]  }
 0x3c1   : > { %v5045_v39 = vrot.slane %v5043_v33, 7  ;;  %v5046_v42 = vshll.u32 %v5016_v21, 16  ;;  %v3393_v7 = vmax.f32 %v3361_v52, 0.0  ;;  %v3394_v41 = vmax.f32 %v3362_v45, 0.0  ;;  %7549 = vmatpush3.bf16.msra.mxu1 %v7989_v32 }
 0x3c2   : > { %v4513_v59 = vsel %vm4107_vm1, %v3807_v12, -inf  ;;  %v4522_v26 = vsel %vm4107_vm1, %v3806_v25, -inf  ;;  %v4531_v35 = vsel %vm4107_vm1, %v3808_v9, -inf  ;;  %v10156_v4 = vor.u32 %v5131_v46, %v5127_v14  ;;  %7550 = vmatprep.subr.bf16.mxu1 %v7990_v10 }
 0x3c3   : > { %v5048_v63 = vor.u32 %v5046_v42, %v5045_v39  ;;  %v3809_v37 = vcombine.high %v3393_v7, %v3393_v7  ;;  %v3816_v51 = vrot.slane %v3393_v7, %v9592_v15  ;;  %v3826_v3 = vcombine.high %v3394_v41, %v3394_v41 }
 0x3c4   : > { %11245 = vst [vmem:[#allocation7_spill] sm:$0xff] %v10156_v4  ;;  %v3833_v20 = vrot.slane %v3394_v41, %v9592_v15  ;;  %v10167_v8 = vadd.f32 %v9875_v30, %v3325_v53  ;;  %v10169_v6 = vadd.f32 %v7471_v27, %v3267_v0  ;;  %v10171_v40 = vadd.f32 %v7473_v48, %v7472_v54 }
 0x3c5   : > { %v5088_v57 = vsel %vm8280_vm2, 0, %v5048_v63  ;;  %v3823_v62 = vrot.slane %v3809_v37, %v9592_v15  ;;  %v3824_v25 = vcombine.high %v3816_v51, %v3816_v51  ;;  %v4469_v23 = vsel %vm4107_vm1, %v3816_v51, -inf }
 0x3c6   : > { %v10179_v21 = vsel %vm9606_vm5, %v5088_v57, 0  ;;  %v4470_v5 = vmax.f32 %v10114_v13, %v4469_v23  ;;  %v3840_v61 = vrot.slane %v3826_v3, %v9592_v15  ;;  %v3841_v54 = vcombine.high %v3833_v20, %v3833_v20  ;;  %v7992_v3 = vld [vmem:[%s11194_s7 + $0xe8] sm:$0xff]  }
 0x3c7   : > { %5200 = vrot.lane.b32.xlu1 %v10179_v21, %s11239_s21  ;;  %v3825_v12 = vcombine.high %v3823_v62, %v3823_v62  ;;  %v4478_v9 = vsel %vm4107_vm1, %v3824_v25, -inf  ;;  %v4487_v46 = vsel %vm4107_vm1, %v3823_v62, -inf  ;;  %v4505_v18 = vsel %vm4107_vm1, %v3833_v20, -inf }
 0x3c8   : > { %v4471_v33 = vrot.slane %v4470_v5, 4  ;;  %v4479_v52 = vmax.f32 %v4477_v28, %v4478_v9  ;;  %v4488_v45 = vmax.f32 %v10117_v58, %v4487_v46  ;;  %v3842_v14 = vcombine.high %v3840_v61, %v3840_v61  ;;  %v7991_v58 = vld [vmem:[%s11194_s7 + $0xb0] sm:$0xff]  }
 0x3c9   : > { %v4496_v13 = vsel %vm4107_vm1, %v3825_v12, -inf  ;;  %v4506_v53 = vmax.f32 %v4504_v34, %v4505_v18  ;;  %v4514_v27 = vsel %vm4107_vm1, %v3841_v54, -inf  ;;  %v4523_v39 = vsel %vm4107_vm1, %v3840_v61, -inf  ;;  %7551 = vmatpush3.bf16.msra.mxu1 %v7991_v58  ;;  %v7994_v54 = vld [vmem:[%s11194_s7 + $0xe0] sm:$0xff]  }
 0x3ca   : > { %v4472_v42 = vmax.f32 %v4470_v5, %v4471_v33  ;;  %v4480_v7 = vrot.slane %v4479_v52, 4  ;;  %v4489_v41 = vrot.slane %v4488_v45, 4  ;;  %v4497_v48 = vmax.f32 %v4495_v44, %v4496_v13  ;;  %7552 = vmatprep.subr.bf16.mxu1 %v7992_v3 }
 0x3cb   : > { %5167 = vrot.lane.b32.xlu1 %v10156_v4, %s11239_s21  ;;  %v4507_v28 = vrot.slane %v4506_v53, 4  ;;  %v4515_v34 = vmax.f32 %v4513_v59, %v4514_v27  ;;  %v4524_v32 = vmax.f32 %v4522_v26, %v4523_v39  ;;  %v4532_v0 = vsel %vm4107_vm1, %v3842_v14, -inf  ;;  %v7993_v59 = vld [vmem:[%s11194_s7 + $0xa8] sm:$0xff]   ;;  %v7475_v14 = vpop.f32.mrf.mxu1 }
 0x3cc   : > { %v4473_v63 = vrot.slane %v4472_v42, 2  ;;  %v4481_v37 = vmax.f32 %v4479_v52, %v4480_v7  ;;  %v4490_v51 = vmax.f32 %v4488_v45, %v4489_v41  ;;  %v4498_v44 = vrot.slane %v4497_v48, 4 }
 0x3cd   : > { %v4508_v20 = vmax.f32 %v4506_v53, %v4507_v28  ;;  %v4516_v57 = vrot.slane %v4515_v34, 4  ;;  %v4525_v62 = vrot.slane %v4524_v32, 4  ;;  %v4533_v25 = vmax.f32 %v4531_v35, %v4532_v0  ;;  %7553 = vmatpush3.bf16.msra.mxu1 %v7993_v59 }
 0x3ce   : > { %v4474_v26 = vmax.f32 %v4472_v42, %v4473_v63  ;;  %v4482_v23 = vrot.slane %v4481_v37, 2  ;;  %v4491_v5 = vrot.slane %v4490_v51, 2  ;;  %v4499_v61 = vmax.f32 %v4497_v48, %v4498_v44  ;;  %v7995_v42 = vld [vmem:[%s11194_s7 + $0xa0] sm:$0xff]   ;;  %7554 = vmatprep.subr.bf16.mxu1 %v7994_v54  ;;  %v7476_v44 = vpop.f32.mrf.mxu1 }
 0x3cf   : > { %v4509_v12 = vrot.slane %v4508_v20, 2  ;;  %v4517_v9 = vmax.f32 %v4515_v34, %v4516_v57  ;;  %v4526_v46 = vmax.f32 %v4524_v32, %v4525_v62  ;;  %v4534_v18 = vrot.slane %v4533_v25, 4 }
 0x3d0   : > { %v4475_v33 = vrot.slane %v4474_v26, 1  ;;  %v4483_v35 = vmax.f32 %v4481_v37, %v4482_v23  ;;  %v4492_v52 = vmax.f32 %v4490_v51, %v4491_v5  ;;  %v4500_v45 = vrot.slane %v4499_v61, 2  ;;  %v7478_v5 = vpop.f32.mrf.mxu1 }
 0x3d1   : > { %v4510_v13 = vmax.f32 %v4508_v20, %v4509_v12  ;;  %v4518_v53 = vrot.slane %v4517_v9, 2  ;;  %v4527_v27 = vrot.slane %v4526_v46, 2  ;;  %v4535_v39 = vmax.f32 %v4533_v25, %v4534_v18  ;;  %7555 = vmatpush3.bf16.msra.mxu1 %v7995_v42  ;;  %v10222_v18 = vpop.f32.mrf.mxu0 }
 0x3d2   : > { %v4476_v7 = vmax.f32 %v4474_v26, %v4475_v33  ;;  %v4484_v41 = vrot.slane %v4483_v35, 1  ;;  %v4493_v48 = vrot.slane %v4492_v52, 1  ;;  %v4501_v10 = vmax.f32 %v4499_v61, %v4500_v45  ;;  %v7479_v42 = vpop.f32.mrf.mxu1 }
 0x3d3   : > { %v4511_v58 = vrot.slane %v4510_v13, 1  ;;  %v4519_v28 = vmax.f32 %v4517_v9, %v4518_v53  ;;  %v4528_v34 = vmax.f32 %v4526_v46, %v4527_v27  ;;  %v3395_v32 = vmax.f32 %v10167_v8, 0.0 }
 0x3d4   : > { %v4485_v0 = vmax.f32 %v4483_v35, %v4484_v41  ;;  %v4494_v63 = vmax.f32 %v4492_v52, %v4493_v48  ;;  %v4502_v37 = vrot.slane %v4501_v10, 1  ;;  %v3273_v51 = vadd.f32 %v10111_v1, %v10171_v40 }
 0x3d5   : > { %v4512_v3 = vmax.f32 %v4510_v13, %v4511_v58  ;;  %v4520_v20 = vrot.slane %v4519_v28, 1  ;;  %v4536_v57 = vrot.slane %v4535_v39, 2  ;;  %v3326_v62 = vmul.f32 %v9860_v47, %v10169_v6 }
 0x3d6   : > { %v4503_v25 = vmax.f32 %v4501_v10, %v4502_v37  ;;  %v4724_v59 = vpack.c.bf16 %v4476_v7, %v4476_v7  ;;  %v4725_v26 = vpack.c.bf16 %v4485_v0, %v4485_v0  ;;  %v4529_v23 = vrot.slane %v4528_v34, 1 }
 0x3d7   : > { %v4726_v8 = vpack.c.bf16 %v4494_v63, %v4494_v63  ;;  %v10218_v61 = vmax.f32 %v4519_v28, %v4520_v20  ;;  %v4728_v54 = vpack.c.bf16 %v4512_v3, %v4512_v3  ;;  %v3843_v12 = vcombine.high %v3395_v32, %v3395_v32 }
 0x3d8   : > { %v4727_v9 = vpack.c.bf16 %v4503_v25, %v4503_v25  ;;  %v3850_v1 = vrot.slane %v3395_v32, %v9592_v15  ;;  %v3327_v40 = vmul.f32 %v9860_v47, %v3273_v51  ;;  %v7477_v46 = vadd.f32 %v7476_v44, %v7475_v14  ;;  %v3280_v32 = vpop.f32.mrf.mxu0 }
 0x3d9   : > { %v10224_v6 = vmax.f32 %v4535_v39, %v4536_v57  ;;  %v3857_v33 = vrot.slane %v3843_v12, %v9592_v15  ;;  %v3364_v35 = vadd.f32 %v9875_v30, %v3326_v62  ;;  %v10229_v52 = vrot.slane %v9615_v17, 1 }
 0x3da   : > { %v10231_v45 = vunpack.c.l.b16 %v4724_v59  ;;  %v10233_v13 = vunpack.c.l.b16 %v4725_v26  ;;  %v10235_v53 = vmax.f32 %v4528_v34, %v4529_v23  ;;  %v3858_v27 = vcombine.high %v3850_v1, %v3850_v1 }
 0x3db   : > { %v10237_v14 = vunpack.c.l.b16 %v4726_v8  ;;  %v10241_v7 = vunpack.c.l.b16 %v4728_v54  ;;  %v3396_v41 = vmax.f32 %v3364_v35, 0.0  ;;  %v10243_v48 = vunpack.c.l.b16 %v4727_v9 }
 0x3dc   : > { %v3859_v10 = vcombine.high %v3857_v33, %v3857_v33  ;;  %v3365_v58 = vadd.f32 %v9875_v30, %v3327_v40  ;;  %v3276_v28 = vadd.f32 %v10145_v55, %v7477_v46  ;;  %v4540_v34 = vsel %vm4107_vm1, %v3850_v1, -inf }
 0x3dd   : > { %v3860_v0 = vcombine.high %v3396_v41, %v3396_v41  ;;  %v3867_v63 = vrot.slane %v3396_v41, %v9592_v15  ;;  %v7480_v37 = vadd.f32 %v7479_v42, %v7478_v5  ;;  %v4549_v51 = vsel %vm4107_vm1, %v3858_v27, -inf }
 0x3de   : > { %v4558_v44 = vsel %vm4107_vm1, %v3857_v33, -inf  ;;  %v3397_v3 = vmax.f32 %v3365_v58, 0.0  ;;  %v3328_v20 = vmul.f32 %v9860_v47, %v3276_v28  ;;  %v4466_v55 = vrot.slane %v10099_v22, 1  ;;  %v10261_v47 = vld [vmem:[%s11192_s5] ss:$0 sm:$0xff] }
 0x3df   : > { %v3874_v57 = vrot.slane %v3860_v0, %v9592_v15  ;;  %v3875_v62 = vcombine.high %v3867_v63, %v3867_v63  ;;  %v3281_v25 = vadd.f32 %v7480_v37, %v3280_v32  ;;  %v4567_v59 = vsel %vm4107_vm1, %v3859_v10, -inf }
 0x3e0   : > { %v3877_v26 = vcombine.high %v3397_v3, %v3397_v3  ;;  %v3884_v23 = vrot.slane %v3397_v3, %v9592_v15  ;;  %v3366_v5 = vadd.f32 %v9875_v30, %v3328_v20  ;;  %v4576_v54 = vsel %vm4107_vm1, %v3867_v63, -inf }
 0x3e1   : > { %v3876_v8 = vcombine.high %v3874_v57, %v3874_v57  ;;  %v3329_v12 = vmul.f32 %v10261_v47, %v3281_v25  ;;  %v4585_v30 = vsel %vm4107_vm1, %v3875_v62, -inf  ;;  %v4594_v35 = vsel %vm4107_vm1, %v3874_v57, -inf }
 0x3e2   : > { %v3891_v1 = vrot.slane %v3877_v26, %v9592_v15  ;;  %v3892_v40 = vcombine.high %v3884_v23, %v3884_v23  ;;  %v4541_v46 = vsel %vm4107_vm1, %v3884_v23, -inf  ;;  %v3398_v33 = vmax.f32 %v3366_v5, 0.0 }
 0x3e3   : > { %v4542_v27 = vmax.f32 %v4540_v34, %v4541_v46  ;;  %v10271_v42 = vmax.f32 %v10099_v22, %v4466_v55  ;;  %v4603_v3 = vsel %vm4107_vm1, %v3876_v8, -inf  ;;  %v10282_v22 = vld [vmem:[%s11193_s6] ss:$0 sm:$0xff]  ;;  %v10287_v8 = vpop.f32.mrf.mxu1 }
 0x3e4   : > { %v3893_v41 = vcombine.high %v3891_v1, %v3891_v1  ;;  %v4550_v10 = vsel %vm4107_vm1, %v3892_v40, -inf  ;;  %v4559_v58 = vsel %vm4107_vm1, %v3891_v1, -inf  ;;  %v3894_v28 = vcombine.high %v3398_v33, %v3398_v33 }
 0x3e5   : > { %v4543_v32 = vrot.slane %v4542_v27, 4  ;;  %v4551_v0 = vmax.f32 %v4549_v51, %v4550_v10  ;;  %v4560_v63 = vmax.f32 %v4558_v44, %v4559_v58  ;;  %v3901_v37 = vrot.slane %v3398_v33, %v9592_v15  ;;  %v7482_v39 = vpop.f32.mrf.mxu1 }
 0x3e6   : > { %v4568_v20 = vsel %vm4107_vm1, %v3893_v41, -inf  ;;  %v3908_v34 = vrot.slane %v3894_v28, %v9592_v15  ;;  %v3367_v57 = vadd.f32 %v10282_v22, %v3329_v12 }
 0x3e7   : > { %v4544_v62 = vmax.f32 %v4542_v27, %v4543_v32  ;;  %v4552_v25 = vrot.slane %v4551_v0, 4  ;;  %v4561_v55 = vrot.slane %v4560_v63, 4  ;;  %v4569_v51 = vmax.f32 %v4567_v59, %v4568_v20 }
 0x3e8   : > { %v3909_v44 = vcombine.high %v3901_v37, %v3901_v37  ;;  %v3910_v26 = vcombine.high %v3908_v34, %v3908_v34  ;;  %v4577_v23 = vsel %vm4107_vm1, %v3901_v37, -inf  ;;  %v4595_v5 = vsel %vm4107_vm1, %v3908_v34, -inf }
 0x3e9   : > { %v4545_v1 = vrot.slane %v4544_v62, 2  ;;  %v4553_v40 = vmax.f32 %v4551_v0, %v4552_v25  ;;  %v4562_v46 = vmax.f32 %v4560_v63, %v4561_v55  ;;  %v4570_v33 = vrot.slane %v4569_v51, 4 }
 0x3ea   : > { %v4578_v41 = vmax.f32 %v4576_v54, %v4577_v23  ;;  %v4586_v10 = vsel %vm4107_vm1, %v3909_v44, -inf  ;;  %v4596_v12 = vmax.f32 %v4594_v35, %v4595_v5  ;;  %v4604_v27 = vsel %vm4107_vm1, %v3910_v26, -inf  ;;  %v7484_v35 = vpop.f32.mrf.mxu1 }
 0x3eb   : > { %v4546_v58 = vmax.f32 %v4544_v62, %v4545_v1  ;;  %v4554_v59 = vrot.slane %v4553_v40, 2  ;;  %v4563_v28 = vrot.slane %v4562_v46, 2  ;;  %v4571_v32 = vmax.f32 %v4569_v51, %v4570_v33 }
 0x3ec   : > { %v4579_v20 = vrot.slane %v4578_v41, 4  ;;  %v4587_v37 = vmax.f32 %v4585_v30, %v4586_v10  ;;  %v4597_v9 = vrot.slane %v4596_v12, 4  ;;  %v4605_v34 = vmax.f32 %v4603_v3, %v4604_v27 }
 0x3ed   : > { %v4547_v36 = vrot.slane %v4546_v58, 1  ;;  %v4555_v4 = vmax.f32 %v4553_v40, %v4554_v59  ;;  %v4564_v0 = vmax.f32 %v4562_v46, %v4563_v28  ;;  %v4572_v63 = vrot.slane %v4571_v32, 2  ;;  %v5195_v46 = vpop.permute.xlu0 %5194 }
 0x3ee   : > { %v4580_v25 = vmax.f32 %v4578_v41, %v4579_v20  ;;  %v4588_v54 = vrot.slane %v4587_v37, 4  ;;  %v4598_v55 = vmax.f32 %v4596_v12, %v4597_v9  ;;  %v4606_v44 = vrot.slane %v4605_v34, 4  ;;  %v7485_v12 = vpop.f32.mrf.mxu1 }
 0x3ef   : > { %v4548_v23 = vmax.f32 %v4546_v58, %v4547_v36  ;;  %v4556_v26 = vrot.slane %v4555_v4, 1  ;;  %v4565_v62 = vrot.slane %v4564_v0, 1  ;;  %v4573_v5 = vmax.f32 %v4571_v32, %v4572_v63 }
 0x3f0   : > { %v4581_v1 = vrot.slane %v4580_v25, 2  ;;  %v4589_v51 = vmax.f32 %v4587_v37, %v4588_v54  ;;  %v4599_v33 = vrot.slane %v4598_v55, 2  ;;  %v4607_v30 = vmax.f32 %v4605_v34, %v4606_v44 }
 0x3f1   : > { %v4557_v10 = vmax.f32 %v4555_v4, %v4556_v26  ;;  %v4566_v3 = vmax.f32 %v4564_v0, %v4565_v62  ;;  %v4574_v27 = vrot.slane %v4573_v5, 1  ;;  %v3399_v49 = vmax.f32 %v3367_v57, 0.0  ;;  %v7487_v26 = vpop.f32.mrf.mxu1 }
 0x3f2   : > { %v10294_v40 = vsel %vm4950_vm6, %v10233_v13, %v10231_v45  ;;  %v4732_v9 = vpack.c.bf16 %v4548_v23, %v4548_v23  ;;  %v4582_v41 = vmax.f32 %v4580_v25, %v4581_v1  ;;  %v4590_v36 = vrot.slane %v4589_v51, 2  ;;  %v7841_v13 = vpop.f32.mrf.mxu0 }
 0x3f3   : > { %v11246_v58 = vpack.c.bf16 %v10218_v61, %v10218_v61  ;;  %v10301_v28 = vmax.f32 %v4573_v5, %v4574_v27  ;;  %v10303_v4 = vmax.f32 %v4598_v55, %v4599_v33  ;;  %v4608_v57 = vrot.slane %v4607_v30, 2 }
 0x3f4   : > { %v4733_v32 = vpack.c.bf16 %v4557_v10, %v4557_v10  ;;  %v4734_v20 = vpack.c.bf16 %v4566_v3, %v4566_v3  ;;  %v4583_v37 = vrot.slane %v4582_v41, 1  ;;  %v4591_v45 = vmax.f32 %v4589_v51, %v4590_v36  ;;  %v3283_v3 = vpop.f32.mrf.mxu0 }
 0x3f5   : > { %v10299_v59 = vunpack.c.l.b16 %v11246_v58  ;;  %v10307_v34 = vsel %vm2607_vm15, %v10229_v52, %v5195_v46  ;;  %v3911_v0 = vcombine.high %v3399_v49, %v3399_v49  ;;  %v4723_v61 = vpack.c.bf16 %v10271_v42, %v10271_v42 }
 0x3f6   : > { %v11247_v63 = vpack.c.bf16 %v10104_v24, %v10104_v24  ;;  %v10314_v54 = vunpack.c.l.b16 %v4732_v9  ;;  %v10316_v55 = vmax.f32 %v4582_v41, %v4583_v37  ;;  %v4592_v44 = vrot.slane %v4591_v45, 1 }
 0x3f7   : > { %v3918_v23 = vrot.slane %v3399_v49, %v9592_v15  ;;  %v4735_v62 = vpack.c.bf16 %v10301_v28, %v10301_v28  ;;  %v4601_v5 = vrot.slane %v10303_v4, 1  ;;  %v10322_v1 = vmax.f32 %v4607_v30, %v4608_v57  ;;  %v7488_v57 = vpop.f32.mrf.mxu1 }
 0x3f8   : > { %v4924_v25 = vunpack.c.l.b16 %v11247_v63  ;;  %v3925_v42 = vrot.slane %v3911_v0, %v9592_v15  ;;  %v10325_v51 = vunpack.c.l.b16 %v4733_v32  ;;  %v10327_v24 = vunpack.c.l.b16 %v4734_v20 }
 0x3f9   : > { %v10329_v33 = vmax.f32 %v4591_v45, %v4592_v44  ;;  %v3926_v10 = vcombine.high %v3918_v23, %v3918_v23  ;;  %v4925_v49 = vunpack.c.l.b16 %v4723_v61  ;;  %v4986_v9 = vsel %vm4952_vm7, %v10108_v60, %v10136_v19  ;;  %v5197_v45 = vpop.permute.xlu1 %5196 }
 0x3fa   : > { %v3927_v27 = vcombine.high %v3925_v42, %v3925_v42  ;;  %v7483_v46 = vadd.f32 %v7482_v39, %v10287_v8  ;;  %v4736_v30 = vpack.c.bf16 %v10316_v55, %v10316_v55  ;;  %v10338_v41 = vsel %vm4107_vm1, %v3918_v23, -inf }
 0x3fb   : > { %v10341_v36 = vsel %vm4107_vm1, %v3925_v42, -inf  ;;  %v4987_v58 = vsel %vm4954_vm8, %v10131_v11, %v4986_v9  ;;  %v4737_v32 = vpack.c.bf16 %v10329_v33, %v10329_v33  ;;  %v10348_v60 = vsel %vm4107_vm1, %v3926_v10, -inf  ;;  %v7997_v9 = vld [vmem:[%s11194_s7 + $0x98] sm:$0xff]  }
 0x3fc   : > { %v4988_v19 = vsel %vm4956_vm9, %v10106_v31, %v4987_v58  ;;  %v3284_v39 = vadd.f32 %v7483_v46, %v3283_v3  ;;  %v10353_v8 = vsel %vm4107_vm1, %v3927_v27, -inf  ;;  %v5136_v37 = vshll.u32 %v10179_v21, 16 }
 0x3fd   : > { %v4989_v20 = vsel %vm4958_vm10, %v10141_v16, %v4988_v19  ;;  %v7486_v11 = vadd.f32 %v7485_v12, %v7484_v35  ;;  %v7489_v63 = vadd.f32 %v7488_v57, %v7487_v26  ;;  %v5186_v44 = vrot.slane %v9779_v50, 1 }
 0x3fe   : > { %v4990_v0 = vsel %vm4960_vm11, %v4924_v25, %v4989_v20  ;;  %v3330_v61 = vmul.f32 %v10261_v47, %v3284_v39  ;;  %v5134_v23 = vshrl.u32 %v10179_v21, 16  ;;  %v4538_v10 = vrot.slane %v10224_v6, 1 }
 0x3ff   : > { %v4991_v31 = vsel %vm4962_vm12, %v4925_v49, %v4990_v0  ;;  %v3289_v42 = vadd.f32 %v10222_v18, %v7486_v11  ;;  %v3292_v35 = vadd.f32 %v7841_v13, %v7489_v63  ;;  %v5257_v12 = vsel %vm2607_vm15, %v5186_v44, %v5197_v45  ;;  %v7996_v18 = vld [vmem:[%s11194_s7 + $0xd8] sm:$0xff]  }
 0x400   : > { %v5017_v16 = vpack.c.b16 %v4991_v31, %v4991_v31  ;;  %v3368_v3 = vadd.f32 %v10282_v22, %v3330_v61  ;;  %v5138_v25 = vrot.slane %v5136_v37, 1  ;;  %v7193_v27 = vcombine.low %v10307_v34, %v5257_v12  ;;  %7556 = vmatprep.subr.bf16.mxu1 %v7996_v18 }
 0x401   : > { %v3331_v26 = vmul.f32 %v10261_v47, %v3289_v42  ;;  %v4539_v49 = vmax.f32 %v10224_v6, %v4538_v10  ;;  %v3332_v57 = vmul.f32 %v10261_v47, %v3292_v35  ;;  %v4730_v34 = vpack.c.bf16 %v10235_v53, %v10235_v53  ;;  %7557 = vmatpush3.bf16.msra.mxu1 %v7997_v9 }
 0x402   : > { %v5050_v13 = vshrl.u32 %v5017_v16, 16  ;;  %v5053_v46 = vshll.u32 %v5017_v16, 16  ;;  %v3400_v58 = vmax.f32 %v3368_v3, 0.0  ;;  %v4993_v6 = vsel %vm4952_vm7, %v10237_v14, %v10294_v40  ;;  %5650 = vmatprep.mubr.bf16.mxu0 %v7193_v27 }
 0x403   : > { %v3369_v19 = vadd.f32 %v10282_v22, %v3331_v26  ;;  %v4731_v39 = vpack.c.bf16 %v4539_v49, %v4539_v49  ;;  %v3370_v45 = vadd.f32 %v10282_v22, %v3332_v57  ;;  %v10387_v0 = vor.u32 %v5138_v25, %v5134_v23 }
 0x404   : > { %v5052_v20 = vrot.slane %v5050_v13, 7  ;;  %v3928_v37 = vcombine.high %v3400_v58, %v3400_v58  ;;  %v3935_v11 = vrot.slane %v3400_v58, %v9592_v15  ;;  %v10389_v61 = vunpack.c.l.b16 %v4730_v34 }
 0x405   : > { %v3401_v47 = vmax.f32 %v3369_v19, 0.0  ;;  %v4994_v53 = vsel %vm4954_vm8, %v10243_v48, %v4993_v6  ;;  %v10394_v31 = vunpack.c.l.b16 %v4731_v39  ;;  %v3402_v23 = vmax.f32 %v3370_v45, 0.0 }
 0x406   : > { %v5055_v63 = vor.u32 %v5053_v46, %v5052_v20  ;;  %v3942_v14 = vrot.slane %v3928_v37, %v9592_v15  ;;  %v3943_v40 = vcombine.high %v3935_v11, %v3935_v11  ;;  %v4648_v42 = vsel %vm4107_vm1, %v3935_v11, -inf }
 0x407   : > { %v3945_v10 = vcombine.high %v3401_v47, %v3401_v47  ;;  %v3952_v22 = vrot.slane %v3401_v47, %v9592_v15  ;;  %v4995_v48 = vsel %vm4956_vm9, %v10241_v7, %v4994_v53  ;;  %v3962_v9 = vcombine.high %v3402_v23, %v3402_v23 }
 0x408   : > { %v5089_v16 = vsel %vm8280_vm2, 0, %v5055_v63  ;;  %v3944_v3 = vcombine.high %v3942_v14, %v3942_v14  ;;  %v4657_v35 = vsel %vm4107_vm1, %v3943_v40, -inf  ;;  %v4666_v49 = vsel %vm4107_vm1, %v3942_v14, -inf }
 0x409   : > { %v10405_v12 = vsel %vm9606_vm5, %v5089_v16, 0  ;;  %v3959_v25 = vrot.slane %v3945_v10, %v9592_v15  ;;  %v3960_v26 = vcombine.high %v3952_v22, %v3952_v22  ;;  %v4613_v27 = vsel %vm4107_vm1, %v3952_v22, -inf }
 0x40a   : > { %5202 = vrot.lane.b32.xlu0 %v10405_v12, %s11239_s21  ;;  %v4614_v18 = vmax.f32 %v10338_v41, %v4613_v27  ;;  %v3969_v13 = vrot.slane %v3402_v23, %v9592_v15  ;;  %v4675_v7 = vsel %vm4107_vm1, %v3944_v3, -inf  ;;  %v3976_v6 = vrot.slane %v3962_v9, %v9592_v15 }
 0x40b   : > { %v3961_v46 = vcombine.high %v3959_v25, %v3959_v25  ;;  %v4622_v58 = vsel %vm4107_vm1, %v3960_v26, -inf  ;;  %v4631_v57 = vsel %vm4107_vm1, %v3959_v25, -inf  ;;  %v4996_v11 = vsel %vm4958_vm10, %v10299_v59, %v4995_v48 }
 0x40c   : > { %v4615_v19 = vrot.slane %v4614_v18, 4  ;;  %v4623_v34 = vmax.f32 %v10348_v60, %v4622_v58  ;;  %v4632_v39 = vmax.f32 %v10341_v36, %v4631_v57  ;;  %v3977_v41 = vcombine.high %v3969_v13, %v3969_v13 }
 0x40d   : > { %v4640_v20 = vsel %vm4107_vm1, %v3961_v46, -inf  ;;  %v4649_v37 = vsel %vm4107_vm1, %v3969_v13, -inf  ;;  %v3978_v63 = vcombine.high %v3976_v6, %v3976_v6  ;;  %v4667_v14 = vsel %vm4107_vm1, %v3976_v6, -inf }
 0x40e   : > { %5169 = vrot.lane.b32.xlu0 %v10387_v0, %s11239_s21  ;;  %v4616_v45 = vmax.f32 %v4614_v18, %v4615_v19  ;;  %v4624_v47 = vrot.slane %v4623_v34, 4  ;;  %v4633_v53 = vrot.slane %v4632_v39, 4  ;;  %v4641_v60 = vmax.f32 %v10353_v8, %v4640_v20 }
 0x40f   : > { %v4650_v36 = vmax.f32 %v4648_v42, %v4649_v37  ;;  %v4658_v15 = vsel %vm4107_vm1, %v3977_v41, -inf  ;;  %v4668_v3 = vmax.f32 %v4666_v49, %v4667_v14  ;;  %v4676_v48 = vsel %vm4107_vm1, %v3978_v63, -inf }
 0x410   : > { %v4617_v40 = vrot.slane %v4616_v45, 2  ;;  %v4625_v10 = vmax.f32 %v4623_v34, %v4624_v47  ;;  %v4634_v22 = vmax.f32 %v4632_v39, %v4633_v53  ;;  %v4642_v23 = vrot.slane %v4641_v60, 4 }
 0x411   : > { %v4651_v16 = vrot.slane %v4650_v36, 4  ;;  %v4659_v59 = vmax.f32 %v4657_v35, %v4658_v15  ;;  %v4669_v42 = vrot.slane %v4668_v3, 4  ;;  %v4677_v13 = vmax.f32 %v4675_v7, %v4676_v48 }
 0x412   : > { %v4618_v25 = vmax.f32 %v4616_v45, %v4617_v40  ;;  %v4626_v26 = vrot.slane %v4625_v10, 2  ;;  %v4635_v27 = vrot.slane %v4634_v22, 2  ;;  %v4643_v18 = vmax.f32 %v4641_v60, %v4642_v23 }
 0x413   : > { %v4652_v8 = vmax.f32 %v4650_v36, %v4651_v16  ;;  %v4660_v9 = vrot.slane %v4659_v59, 4  ;;  %v4670_v6 = vmax.f32 %v4668_v3, %v4669_v42  ;;  %v4678_v20 = vrot.slane %v4677_v13, 4 }
 0x414   : > { %v4619_v46 = vrot.slane %v4618_v25, 1  ;;  %v4627_v58 = vmax.f32 %v4625_v10, %v4626_v26  ;;  %v4636_v57 = vmax.f32 %v4634_v22, %v4635_v27  ;;  %v4644_v19 = vrot.slane %v4643_v18, 2 }
 0x415   : > { %v4653_v34 = vrot.slane %v4652_v8, 2  ;;  %v4661_v39 = vmax.f32 %v4659_v59, %v4660_v9  ;;  %v4671_v53 = vrot.slane %v4670_v6, 2  ;;  %v4679_v60 = vmax.f32 %v4677_v13, %v4678_v20 }
 0x416   : > { %v4620_v35 = vmax.f32 %v4618_v25, %v4619_v46  ;;  %v4628_v49 = vrot.slane %v4627_v58, 1  ;;  %v4637_v41 = vrot.slane %v4636_v57, 1  ;;  %v4645_v37 = vmax.f32 %v4643_v18, %v4644_v19  ;;  %v5164_v18 = vpop.permute.xlu1 %5163 }
 0x417   : > { %v4654_v45 = vmax.f32 %v4652_v8, %v4653_v34  ;;  %v4662_v47 = vrot.slane %v4661_v39, 2  ;;  %v4997_v7 = vsel %vm4960_vm11, %v10389_v61, %v4996_v11  ;;  %v4672_v22 = vmax.f32 %v4670_v6, %v4671_v53  ;;  %v5162_v61 = vpop.permute.xlu0 %5161  ;;  %v7998_v11 = vld [vmem:[%s11194_s7 + $0xd0] sm:$0xff]  }
 0x418   : > { %v4629_v63 = vmax.f32 %v4627_v58, %v4628_v49  ;;  %v4638_v36 = vmax.f32 %v4636_v57, %v4637_v41  ;;  %v4646_v15 = vrot.slane %v4645_v37, 1  ;;  %v4740_v14 = vpack.c.bf16 %v4620_v35, %v4620_v35  ;;  %7558 = vmatprep.subr.bf16.mxu1 %v7998_v11 }
 0x419   : > { %v4655_v40 = vrot.slane %v4654_v45, 1  ;;  %v4663_v10 = vmax.f32 %v4661_v39, %v4662_v47  ;;  %v4937_v23 = vunpack.c.l.b16 %v4735_v62  ;;  %v4602_v16 = vmax.f32 %v10303_v4, %v4601_v5 }
 0x41a   : > { %v4647_v59 = vmax.f32 %v4645_v37, %v4646_v15  ;;  %v4680_v3 = vrot.slane %v4679_v60, 2  ;;  %v4741_v48 = vpack.c.bf16 %v4629_v63, %v4629_v63  ;;  %v4742_v25 = vpack.c.bf16 %v4638_v36, %v4638_v36 }
 0x41b   : > { %v4656_v26 = vmax.f32 %v4654_v45, %v4655_v40  ;;  %v4664_v27 = vrot.slane %v4663_v10, 1  ;;  %v4999_v28 = vsel %vm4950_vm6, %v10325_v51, %v10314_v54  ;;  %v4938_v4 = vunpack.c.l.b16 %v4736_v30 }
 0x41c   : > { %v4939_v62 = vunpack.c.l.b16 %v4737_v32  ;;  %v4998_v5 = vsel %vm4962_vm12, %v10394_v31, %v4997_v7  ;;  %v4942_v8 = vunpack.c.l.b16 %v4740_v14  ;;  %v4673_v42 = vrot.slane %v4672_v22, 1  ;;  %v7999_v31 = vld [vmem:[%s11194_s7 + $0x90] sm:$0xff]  }
 0x41d   : > { %v4665_v9 = vmax.f32 %v4663_v10, %v4664_v27  ;;  %v5018_v13 = vpack.c.b16 %v4998_v5, %v4998_v5  ;;  %v4743_v46 = vpack.c.bf16 %v4647_v59, %v4647_v59  ;;  %v4681_v58 = vmax.f32 %v4679_v60, %v4680_v3  ;;  %7559 = vmatpush3.bf16.msra.mxu1 %v7999_v31 }
 0x41e   : > { %v5239_v54 = vsel %vm2607_vm15, %v9779_v50, %v5164_v18  ;;  %v10456_v55 = vsel %vm2607_vm15, %v9615_v17, %v5162_v61  ;;  %v4943_v51 = vunpack.c.l.b16 %v4741_v48  ;;  %v4944_v33 = vunpack.c.l.b16 %v4742_v25  ;;  %v8000_v48 = vld [vmem:[%s11194_s7 + $0xc8] sm:$0xff]  }
 0x41f   : > { %v4744_v30 = vpack.c.bf16 %v4656_v26, %v4656_v26  ;;  %v5057_v32 = vshrl.u32 %v5018_v13, 16  ;;  %v4745_v57 = vpack.c.bf16 %v4665_v9, %v4665_v9  ;;  %v5060_v19 = vshll.u32 %v5018_v13, 16  ;;  %v8001_v25 = vld [vmem:[%s11194_s7 + $0x88] sm:$0xff]   ;;  %7560 = vmatprep.subr.bf16.mxu1 %v8000_v48  ;;  %v8002_v13 = vld [vmem:[%s11194_s7 + $0x118] sm:$0xff]   ;;  %v8007_v48 = vld [vmem:[%s11194_s7 + $0x100] sm:$0xff]  }
 0x420   : > { %v7192_v34 = vcombine.low %v10456_v55, %v5239_v54  ;;  %v4610_v39 = vrot.slane %v10322_v1, 1  ;;  %v5143_v20 = vshll.u32 %v10405_v12, 16  ;;  %v4738_v35 = vpack.c.bf16 %v4602_v16, %v4602_v16  ;;  %7842 = vmatprep.subr.bf16.mxu0 %v8002_v13 }
 0x421   : > { %v5059_v6 = vrot.slane %v5057_v32, 7  ;;  %v5000_v49 = vsel %vm4952_vm7, %v10327_v24, %v4999_v28  ;;  %v4945_v41 = vunpack.c.l.b16 %v4743_v46  ;;  %v4674_v37 = vmax.f32 %v4672_v22, %v4673_v42  ;;  %7561 = vmatpush3.bf16.msra.mxu1 %v8001_v25 }
 0x422   : > { %5651 = vmatmul.mubr.bf16.vlgmr.msra.gmra.mxu0 %v7192_v34  ;;  %v4611_v45 = vmax.f32 %v10322_v1, %v4610_v39  ;;  %v5001_v47 = vsel %vm4954_vm8, %v4937_v23, %v5000_v49  ;;  %v5006_v53 = vsel %vm4950_vm6, %v4943_v51, %v4942_v8  ;;  %v4940_v63 = vunpack.c.l.b16 %v4738_v35  ;;  %v8003_v35 = vld [vmem:[%s11194_s7 + $0x110] sm:$0xff]  }
 0x423   : > { %v5062_v60 = vor.u32 %v5060_v19, %v5059_v6  ;;  %v5002_v36 = vsel %vm4956_vm9, %v4938_v4, %v5001_v47  ;;  %v4946_v15 = vunpack.c.l.b16 %v4744_v30  ;;  %v4947_v7 = vunpack.c.l.b16 %v4745_v57  ;;  %7843 = vmatpush3.bf16.msra.mxu0 %v8002_v13 }
 0x424   : > { %v4739_v14 = vpack.c.bf16 %v4611_v45, %v4611_v45  ;;  %v5003_v40 = vsel %vm4958_vm10, %v4939_v62, %v5002_v36  ;;  %v5145_v10 = vrot.slane %v5143_v20, 1  ;;  %v10475_v1 = vrot.slane %v10045_v38, 1  ;;  %7844 = vmatprep.subr.bf16.mxu0 %v8003_v35  ;;  %v8005_v36 = vld [vmem:[%s11194_s7 + $0x80] sm:$0xff]  }
 0x425   : > { %v5090_v24 = vsel %vm8280_vm2, 0, %v5062_v60  ;;  %v5004_v22 = vsel %vm4960_vm11, %v4940_v63, %v5003_v40  ;;  %v4682_v59 = vrot.slane %v4681_v58, 1  ;;  %v4746_v3 = vpack.c.bf16 %v4674_v37, %v4674_v37  ;;  %v5199_v60 = vpop.permute.xlu0 %5198  ;;  %v8004_v63 = vld [vmem:[%s11194_s7 + $0xc0] sm:$0xff]  }
 0x426   : > { %v10479_v23 = vsel %vm9606_vm5, %v5090_v24, 0  ;;  %v4941_v16 = vunpack.c.l.b16 %v4739_v14  ;;  %v5141_v26 = vshrl.u32 %v10405_v12, 16  ;;  %v10491_v27 = vrot.slane %v9896_v43, 1  ;;  %7562 = vmatprep.subr.bf16.mxu1 %v8004_v63  ;;  %v11248_v63 = vld [vmem:[#allocation6_spill] sm:$0xff] }
 0x427   : > { %5204 = vrot.lane.b32.xlu1 %v10479_v23, %s11239_s21  ;;  %v5007_v18 = vsel %vm4952_vm7, %v4944_v33, %v5006_v53  ;;  %v4683_v11 = vmax.f32 %v4681_v58, %v4682_v59  ;;  %v4948_v28 = vunpack.c.l.b16 %v4746_v3  ;;  %v5150_v32 = vshll.u32 %v10479_v23, 16  ;;  %7845 = vmatpush3.bf16.msra.mxu0 %v8003_v35 }
 0x428   : > { %v5005_v61 = vsel %vm4962_vm12, %v4941_v16, %v5004_v22  ;;  %v5008_v4 = vsel %vm4954_vm8, %v4945_v41, %v5007_v18  ;;  %v10496_v62 = vor.u32 %v5145_v10, %v5141_v26  ;;  %v7196_v46 = vcombine.low %v10491_v27, %v10475_v1  ;;  %7563 = vmatpush3.bf16.msra.mxu1 %v8005_v36 }
 0x429   : > { %v5019_v5 = vpack.c.b16 %v5005_v61, %v5005_v61  ;;  %v5009_v8 = vsel %vm4956_vm9, %v4946_v15, %v5008_v4  ;;  %v4747_v9 = vpack.c.bf16 %v4683_v11, %v4683_v11  ;;  %v5152_v39 = vrot.slane %v5150_v32, 1  ;;  %v8006_v15 = vld [vmem:[%s11194_s7 + $0x108] sm:$0xff]   ;;  %v5166_v25 = vpop.permute.xlu0 %5165 }
 0x42a   : > { %v5010_v42 = vsel %vm4958_vm10, %v4947_v7, %v5009_v8  ;;  %v5148_v49 = vshrl.u32 %v10479_v23, 16  ;;  %7846 = vmatprep.subr.bf16.mxu0 %v8006_v15  ;;  %v5260_v22 = vsel %vm2607_vm15, %v10491_v27, %v5199_v60 }
 0x42b   : > { %5171 = vrot.lane.b32.xlu1 %v10496_v62, %s11239_s21  ;;  %v5064_v58 = vshrl.u32 %v5019_v5, 16  ;;  %v5011_v54 = vsel %vm4960_vm11, %v4948_v28, %v5010_v42  ;;  %v4949_v51 = vunpack.c.l.b16 %v4747_v9  ;;  %v5067_v30 = vshll.u32 %v5019_v5, 16  ;;  %7847 = vmatpush3.bf16.msra.mxu0 %v8006_v15 }
 0x42c   : > { %v10523_v47 = vor.u32 %v5152_v39, %v5148_v49  ;;  %7848 = vmatprep.subr.bf16.mxu0 %v8007_v48  ;;  %v5190_v28 = vrot.slane %v10405_v12, 1 }
 0x42d   : > { %v5066_v33 = vrot.slane %v5064_v58, 7  ;;  %v5012_v31 = vsel %vm4962_vm12, %v4949_v51, %v5011_v54 }
 0x42e   : > { %v5020_v19 = vpack.c.b16 %v5012_v31, %v5012_v31 }
 0x42f   : > { %v5069_v57 = vor.u32 %v5067_v30, %v5066_v33  ;;  %7849 = vmatpush3.bf16.msra.mxu0 %v8007_v48 }
 0x430   : > { %v5071_v6 = vshrl.u32 %v5020_v19, 16  ;;  %v5074_v37 = vshll.u32 %v5020_v19, 16 }
 0x431   : > { %v5091_v34 = vsel %vm8280_vm2, 0, %v5069_v57 }
 0x432   : > { %v10514_v20 = vsel %vm9606_vm5, %v5091_v34, 0  ;;  %v5073_v41 = vrot.slane %v5071_v6, 7 }
 0x433   : > { %5206 = vrot.lane.b32.xlu0 %v10514_v20, %s11239_s21  ;;  %v5157_v45 = vshll.u32 %v10514_v20, 16  ;;  %v5155_v24 = vshrl.u32 %v10514_v20, 16  ;;  %v5192_v9 = vrot.slane %v10514_v20, 1 }
 0x434   : > { %v5076_v53 = vor.u32 %v5074_v37, %v5073_v41 }
 0x435   : > { %v5159_v14 = vrot.slane %v5157_v45, 1 }
 0x436   : > { %v5092_v7 = vsel %vm8280_vm2, 0, %v5076_v53 }
 0x437   : > { %5173 = vrot.lane.b32.xlu0 %v10523_v47, %s11239_s21  ;;  %v10540_v40 = vsel %vm9606_vm5, %v5092_v7, 0  ;;  %v10550_v16 = vor.u32 %v5159_v14, %v5155_v24 }
 0x438   : > { %5208 = vrot.lane.b32.xlu1 %v10540_v40, %s11239_s21  ;;  %v5213_v59 = vshll.u32 %v10540_v40, 16  ;;  %v5211_v4 = vshrl.u32 %v10540_v40, 16  ;;  %v5217_v8 = vrot.slane %v10540_v40, 1 }
 0x439   : > { %v5201_v10 = vpop.permute.xlu1 %5200 }
 0x43a   : > { %v5263_v3 = vsel %vm2607_vm15, %v10475_v1, %v5201_v10  ;;  %v5215_v18 = vrot.slane %v5213_v59, 1  ;;  %v7208_v59 = vcombine.low %v5217_v8, %v10229_v52 }
 0x43b   : > { %5218 = vrot.lane.b32.xlu0 %v5186_v44, %s11239_s21  ;;  %v7197_v26 = vcombine.low %v5260_v22, %v5263_v3  ;;  %v5241_v44 = vsel %vm2607_vm15, %v9896_v43, %v5166_v25  ;;  %v5189_v43 = vrot.slane %v10179_v21, 1 }
 0x43c   : > { %5175 = vrot.lane.b32.xlu1 %v10550_v16, %s11239_s21  ;;  %v10571_v5 = vor.u32 %v5215_v18, %v5211_v4  ;;  %v8014_v4 = vld [vmem:[%s11197_s10 + $0xb0] sm:$0xff]  }
 0x43d   : > { %v5168_v50 = vpop.permute.xlu1 %5167  ;;  %5658 = vmatprep.mubr.bf16.mxu0 %v7197_v26 }
 0x43e   : > { %v5243_v61 = vsel %vm2607_vm15, %v10045_v38, %v5168_v50  ;;  %v5191_v38 = vrot.slane %v10479_v23, 1 }
 0x43f   : > { %5222 = vrot.lane.b32.xlu0 %v10475_v1, %s11239_s21  ;;  %v7195_v11 = vcombine.low %v5241_v44, %v5243_v61 }
 0x440   : > { %5220 = vrot.lane.b32.xlu1 %v10491_v27, %s11239_s21  ;;  %v7204_v24 = vcombine.low %v5191_v38, %v5192_v9 }
 0x441   : > { %5659 = vmatmul.mubr.bf16.gmra.mxu0 %v7195_v11  ;;  %5715 = vmatprep.mubr.bf16.mxu1 %v7195_v11  ;;  %v8012_v11 = vld [vmem:[%s11197_s10 + $0xf0] sm:$0xff]  }
 0x443   : > { %5226 = vrot.lane.b32.xlu0 %v5190_v28, %s11239_s21 }
 0x444   : > { %5224 = vrot.lane.b32.xlu1 %v5189_v43, %s11239_s21 }
 0x447   : > { %5234 = vrot.lane.b32.xlu0 %v10571_v5, %s11239_s21 }
 0x448   : > { %5228 = vrot.lane.b32.xlu1 %v5191_v38, %s11239_s21 }
 0x44b   : > { %5232 = vrot.lane.b32.xlu0 %v5217_v8, %s11239_s21  ;;  %v8018_v8 = vld [vmem:[%s11197_s10 + $0xa8] sm:$0xff]  }
 0x44c   : > { %5230 = vrot.lane.b32.xlu1 %v5192_v9, %s11239_s21  ;;  %s11138_s21 = scalar_lea.hbm %s11200_s13, %s7358_s24  ;;  %s8092_s24 = scalar_lea.vmem %s8091_s22, 2048 }
 0x44d   : > { %p8094_p1 = scmp.lt.s32.totalorder %s8092_s24, %s8086_s23 }
 0x44f   : > { %p8095_p2 = por %p8094_p1, %p8093_p0 }
 0x451   : > { %p8096_p3 = pnand %p8095_p2, %p8089_p13 }
 0x47c   : > { %v5203_v42 = vpop.permute.xlu0 %5202 }
 0x47d   : > { %v5266_v58 = vsel %vm2607_vm15, %v5189_v43, %v5203_v42  ;;  %v8020_v42 = vld [vmem:[%s11197_s10 + $0xe0] sm:$0xff]  }
 0x480   : > { %v5170_v51 = vpop.permute.xlu0 %5169 }
 0x481   : > { %v5245_v32 = vsel %vm2607_vm15, %v10179_v21, %v5170_v51  ;;  %v8024_v51 = vld [vmem:[%s11197_s10 + $0xd8] sm:$0xff]  }
 0x499   : > { %v5205_v13 = vpop.permute.xlu1 %5204 }
 0x49a   : > { %v5269_v54 = vsel %vm2607_vm15, %v5190_v28, %v5205_v13  ;;  %v8021_v13 = vld [vmem:[%s11197_s10 + $0x60] sm:$0xff]  }
 0x49b   : > { %v7201_v33 = vcombine.low %v5266_v58, %v5269_v54  ;;  %v8022_v58 = vld [vmem:[%s11197_s10 + $0xa0] sm:$0xff]  }
 0x49c   : > { %v8023_v54 = vld [vmem:[%s11197_s10 + $0x20] sm:$0xff]  }
 0x49d   : > { %v5172_v30 = vpop.permute.xlu1 %5171  ;;  %5666 = vmatprep.mubr.bf16.mxu0 %v7201_v33  ;;  %v8025_v33 = vld [vmem:[%s11197_s10 + $0x58] sm:$0xff]  }
 0x49e   : > { %v5247_v31 = vsel %vm2607_vm15, %v10405_v12, %v5172_v30  ;;  %v8026_v30 = vld [vmem:[%s11197_s10 + $0x98] sm:$0xff]  }
 0x49f   : > { %v7199_v57 = vcombine.low %v5245_v32, %v5247_v31  ;;  %v8027_v32 = vld [vmem:[%s11197_s10 + $0x18] sm:$0xff]   ;;  %v8028_v31 = vld [vmem:[%s11197_s10 + $0xd0] sm:$0xff]  }
 0x4a1   : > { %5667 = vmatmul.mubr.bf16.gmra.mxu0 %v7199_v57 }
 0x4a5   : > { %v5207_v19 = vpop.permute.xlu0 %5206 }
 0x4a6   : > { %v5272_v6 = vsel %vm2607_vm15, %v5191_v38, %v5207_v19  ;;  %v8017_v38 = vld [vmem:[%s11197_s10 + $0x68] sm:$0xff]   ;;  %v8030_v19 = vld [vmem:[%s11197_s10 + $0x90] sm:$0xff]  }
 0x4a9   : > { %v5174_v34 = vpop.permute.xlu0 %5173 }
 0x4aa   : > { %v5209_v39 = vpop.permute.xlu1 %5208  ;;  %v5249_v37 = vsel %vm2607_vm15, %v10479_v23, %v5174_v34  ;;  %v8031_v34 = vld [vmem:[%s11197_s10 + $0x10] sm:$0xff]  }
 0x4ab   : > { %v5275_v35 = vsel %vm2607_vm15, %v5192_v9, %v5209_v39  ;;  %v8019_v9 = vld [vmem:[%s11197_s10 + $0x28] sm:$0xff]  }
 0x4ac   : > { %v7205_v49 = vcombine.low %v5272_v6, %v5275_v35  ;;  %v8032_v39 = vld [vmem:[%s11197_s10 + $0xc8] sm:$0xff]  }
 0x4ad   : > { %v5219_v45 = vpop.permute.xlu0 %5218  ;;  %v8033_v6 = vld [vmem:[%s11197_s10 + $0x48] sm:$0xff]  }
 0x4ae   : > { %v5176_v41 = vpop.permute.xlu1 %5175  ;;  %5674 = vmatprep.mubr.bf16.mxu0 %v7205_v49  ;;  %v5278_v60 = vsel %vm2607_vm15, %v9881_v56, %v5219_v45  ;;  %v11249_v56 = vld [vmem:[#allocation7_spill] sm:$0xff]  ;;  %v8034_v35 = vld [vmem:[%s11197_s10 + $0x88] sm:$0xff]   ;;  %v8038_v45 = vld [vmem:[%s11197_s10 + $0x80] sm:$0xff]  }
 0x4af   : > { %v5251_v21 = vsel %vm2607_vm15, %v10514_v20, %v5176_v41  ;;  %v7200_v20 = vcombine.low %v5189_v43, %v5190_v28  ;;  %v8013_v28 = vld [vmem:[%s11197_s10 + $0x70] sm:$0xff]   ;;  %v8016_v43 = vld [vmem:[%s11197_s10 + $0xe8] sm:$0xff]   ;;  %v8036_v41 = vld [vmem:[%s11197_s10 + $0xc0] sm:$0xff]  }
 0x4b0   : > { %v7203_v12 = vcombine.low %v5249_v37, %v5251_v21  ;;  %v8035_v49 = vld [vmem:[%s11197_s10 + $0x8] sm:$0xff]   ;;  %v8037_v37 = vld [vmem:[%s11197_s10 + $0x40] sm:$0xff]  }
 0x4b1   : > { %v5223_v23 = vpop.permute.xlu0 %5222  ;;  %v8039_v21 = vld [vmem:[%s11197_s10] sm:$0xff]  }
 0x4b2   : > { %v5221_v53 = vpop.permute.xlu1 %5220  ;;  %5675 = vmatmul.mubr.bf16.gmra.mxu0 %v7203_v12  ;;  %v5284_v10 = vsel %vm2607_vm15, %v11249_v56, %v5223_v23 }
 0x4b3   : > { %v5281_v36 = vsel %vm2607_vm15, %v11248_v63, %v5221_v53  ;;  %7850 = vmatprep.mubr.msk.bf16.mxu0 %vm2607_vm15, %v7196_v46  ;;  %v8041_v53 = vld [vmem:[%s11197_s10 + $0x178] sm:$0xff]  }
 0x4b4   : > { %v7194_v15 = vcombine.low %v5278_v60, %v5281_v36 }
 0x4b5   : > { %v5227_v22 = vpop.permute.xlu0 %5226 }
 0x4b6   : > { %v5225_v7 = vpop.permute.xlu1 %5224  ;;  %5716 = vmatmul.mubr.bf16.vlgmr.msra.gmra.mxu1 %v7194_v15  ;;  %v5290_v48 = vsel %vm2607_vm15, %v10496_v62, %v5227_v22  ;;  %v8010_v62 = vld [vmem:[%s11197_s10 + $0xb8] sm:$0xff]  }
 0x4b7   : > { %5723 = vmatprep.mubr.bf16.mxu1 %v7199_v57  ;;  %v5287_v14 = vsel %vm2607_vm15, %v10387_v0, %v5225_v7  ;;  %v8029_v57 = vld [vmem:[%s11197_s10 + $0x50] sm:$0xff]  }
 0x4b8   : > { %v7198_v1 = vcombine.low %v5284_v10, %v5287_v14 }
 0x4b9   : > { %v5235_v46 = vpop.permute.xlu0 %5234 }
 0x4ba   : > { %7851 = vmatmul.mubr.msk.bf16.vlgmr.msra.gmra.mxu0 %vm2607_vm15, %v7200_v20  ;;  %v5229_v27 = vpop.permute.xlu1 %5228  ;;  %v5301_v0 = vsel %vm2607_vm15, %v10540_v40, %v5235_v46  ;;  %v8008_v40 = vld [vmem:[%s11197_s10 + $0xf8] sm:$0xff]  }
 0x4bb   : > { %7854 = vmatprep.mubr.msk.bf16.mxu0 %vm2607_vm15, %v7204_v24  ;;  %v5293_v3 = vsel %vm2607_vm15, %v10523_v47, %v5229_v27  ;;  %v7207_v26 = vcombine.low %v5301_v0, %v10456_v55  ;;  %v8009_v55 = vld [vmem:[%s11197_s10 + $0x78] sm:$0xff]   ;;  %7636 = vmatprep.subr.bf16.mxu0 %v8008_v40 }
 0x4bc   : > { %v7202_v25 = vcombine.low %v5290_v48, %v5293_v3  ;;  %7596 = vmatprep.subr.bf16.mxu1 %v8009_v55  ;;  %7637 = vmatpush3.bf16.msra.mxu0 %v8010_v62 }
 0x4bd   : > { %v5233_v44 = vpop.permute.xlu0 %5232  ;;  %7638 = vmatprep.subr.bf16.mxu0 %v8012_v11 }
 0x4be   : > { %5724 = vmatmul.mubr.bf16.gmra.mxu1 %v7198_v1  ;;  %v5231_v50 = vpop.permute.xlu1 %5230  ;;  %v5299_v47 = vsel %vm2607_vm15, %v10571_v5, %v5233_v44  ;;  %v8015_v5 = vld [vmem:[%s11197_s10 + $0x30] sm:$0xff]  }
 0x4bf   : > { %5731 = vmatprep.mubr.bf16.mxu1 %v7203_v12  ;;  %v5296_v18 = vsel %vm2607_vm15, %v10550_v16, %v5231_v50  ;;  %v8011_v16 = vld [vmem:[%s11197_s10 + $0x38] sm:$0xff]  }
 0x4c0   : > { %v7206_v61 = vcombine.low %v5296_v18, %v5299_v47  ;;  %7597 = vmatpush3.bf16.msra.mxu1 %v8011_v16  ;;  %7639 = vmatpush3.bf16.msra.mxu0 %v8014_v4  ;;  %v8040_v12 = vld [vmem:[%s11197_s10 + $0x1f8] sm:$0xff]   ;;  %v10735_v47 = vld [vmem:[%s11195_s8] ss:$0 sm:$0xff] }
 0x4c1   : > { %7598 = vmatprep.subr.bf16.mxu1 %v8013_v28  ;;  %7640 = vmatprep.subr.bf16.mxu0 %v8016_v43  ;;  %v10740_v16 = vld [vmem:[%s11196_s9] ss:$0 sm:$0xff] }
 0x4c2   : > { %7855 = vmatmul.mubr.msk.bf16.gmra.mxu0 %vm2607_vm15, %v7208_v59 }
 0x4c4   : > { %7599 = vmatpush3.bf16.msra.mxu1 %v8015_v5  ;;  %7641 = vmatpush3.bf16.msra.mxu0 %v8018_v8 }
 0x4c5   : > { %7600 = vmatprep.subr.bf16.mxu1 %v8017_v38  ;;  %7642 = vmatprep.subr.bf16.mxu0 %v8020_v42 }
 0x4c6   : > { %5732 = vmatmul.mubr.bf16.gmra.mxu1 %v7202_v25 }
 0x4c7   : > { %5739 = vmatprep.mubr.bf16.mxu1 %v7207_v26 }
 0x4c8   : > { %7601 = vmatpush3.bf16.msra.mxu1 %v8019_v9  ;;  %7643 = vmatpush3.bf16.msra.mxu0 %v8022_v58 }
 0x4c9   : > { %7602 = vmatprep.subr.bf16.mxu1 %v8021_v13  ;;  %7644 = vmatprep.subr.bf16.mxu0 %v8024_v51 }
 0x4cc   : > { %7603 = vmatpush3.bf16.msra.mxu1 %v8023_v54  ;;  %7645 = vmatpush3.bf16.msra.mxu0 %v8026_v30 }
 0x4cd   : > { %7604 = vmatprep.subr.bf16.mxu1 %v8025_v33  ;;  %7646 = vmatprep.subr.bf16.mxu0 %v8028_v31 }
 0x4ce   : > { %5740 = vmatmul.mubr.bf16.gmra.mxu1 %v7206_v61 }
 0x4d0   : > { %7605 = vmatpush3.bf16.msra.mxu1 %v8027_v32  ;;  %7647 = vmatpush3.bf16.msra.mxu0 %v8030_v19 }
 0x4d1   : > { %7606 = vmatprep.subr.bf16.mxu1 %v8029_v57  ;;  %7648 = vmatprep.subr.bf16.mxu0 %v8032_v39 }
 0x4d4   : > { %7607 = vmatpush3.bf16.msra.mxu1 %v8031_v34  ;;  %7649 = vmatpush3.bf16.msra.mxu0 %v8034_v35 }
 0x4d5   : > { %7608 = vmatprep.subr.bf16.mxu1 %v8033_v6  ;;  %7650 = vmatprep.subr.bf16.mxu0 %v8036_v41 }
 0x4d8   : > { %7609 = vmatpush3.bf16.msra.mxu1 %v8035_v49  ;;  %7651 = vmatpush3.bf16.msra.mxu0 %v8038_v45 }
 0x4d9   : > { %7610 = vmatprep.subr.bf16.mxu1 %v8037_v37  ;;  %7716 = vmatprep.subr.bf16.mxu0 %v8040_v12 }
 0x4dc   : > { %7611 = vmatpush3.bf16.msra.mxu1 %v8039_v21 }
 0x4dd   : > { %7676 = vmatprep.subr.bf16.mxu1 %v8041_v53 }
 0x4e2   : > { %v7524_v60 = vpop.f32.mrf.mxu0 }
 0x4e4   : > { %v7525_v63 = vpop.f32.mrf.mxu0 }
 0x4e5   : > { %v7526_v48 = vadd.f32 %v7525_v63, %v7524_v60 }
 0x4e6   : > { %v7527_v36 = vpop.f32.mrf.mxu0 }
 0x4e8   : > { %v7528_v15 = vpop.f32.mrf.mxu0 }
 0x4e9   : > { %v7529_v40 = vadd.f32 %v7528_v15, %v7527_v36 }
 0x501   : > { %v7530_v23 = vpop.f32.mrf.mxu0 }
 0x503   : > { %v7531_v7 = vpop.f32.mrf.mxu0 }
 0x504   : > { %v7532_v8 = vadd.f32 %v7531_v7, %v7530_v23 }
 0x505   : > { %v7533_v20 = vpop.f32.mrf.mxu0 }
 0x507   : > { %v7534_v14 = vpop.f32.mrf.mxu0 }
 0x508   : > { %v7535_v39 = vadd.f32 %v7534_v14, %v7533_v20 }
 0x561   : > { %v7536_v24 = vpop.f32.mrf.mxu0 }
 0x563   : > { %v7537_v56 = vpop.f32.mrf.mxu0 }
 0x564   : > { %v7538_v15 = vadd.f32 %v7537_v56, %v7536_v24 }
 0x565   : > { %v7539_v10 = vpop.f32.mrf.mxu0 }
 0x567   : > { %v7540_v22 = vpop.f32.mrf.mxu0 }
 0x568   : > { %v7541_v14 = vadd.f32 %v7540_v22, %v7539_v10 }
 0x572   : > { %v10724_v1 = vpop.f32.mrf.mxu0 }
 0x574   : > { %v10726_v27 = vpop.f32.mrf.mxu0 }
 0x575   : > { %v7544_v22 = vadd.f32 %v10726_v27, %v10724_v1 }
 0x576   : > { %v10728_v46 = vpop.f32.mrf.mxu0  ;;  %v7564_v59 = vpop.f32.mrf.mxu1 }
 0x578   : > { %v10730_v3 = vpop.f32.mrf.mxu0  ;;  %v7565_v0 = vpop.f32.mrf.mxu1 }
 0x579   : > { %v7566_v25 = vadd.f32 %v7565_v0, %v7564_v59 }
 0x57a   : > { %v7567_v26 = vpop.f32.mrf.mxu1  ;;  %v7852_v50 = vpop.f32.mrf.mxu0 }
 0x57b   : > { %v5718_v44 = vadd.f32 %v7566_v25, %v7526_v48 }
 0x57c   : > { %v7568_v18 = vpop.f32.mrf.mxu1  ;;  %v5782_v61 = vpop.f32.mrf.mxu0 }
 0x57d   : > { %v7569_v55 = vadd.f32 %v7568_v18, %v7567_v26  ;;  %v5783_v62 = vadd.f32 %v5782_v61, %v5718_v44 }
 0x57e   : > { %v7570_v11 = vpop.f32.mrf.mxu1  ;;  %v7853_v28 = vpop.f32.mrf.mxu0 }
 0x57f   : > { %v5819_v4 = vmul.f32 %v10735_v47, %v5783_v62  ;;  %v5721_v5 = vadd.f32 %v7569_v55, %v7529_v40 }
 0x580   : > { %v7571_v43 = vpop.f32.mrf.mxu1  ;;  %v5785_v38 = vpop.f32.mrf.mxu0 }
 0x581   : > { %v5833_v9 = vadd.f32 %v10740_v16, %v5819_v4  ;;  %v7572_v42 = vadd.f32 %v7571_v43, %v7570_v11  ;;  %v5786_v13 = vadd.f32 %v5785_v38, %v5721_v5  ;;  %v7547_v5 = vadd.f32 %v10730_v3, %v10728_v46 }
 0x582   : > { %v7573_v58 = vpop.f32.mrf.mxu1  ;;  %v10745_v30 = vpop.f32.mrf.mxu0 }
 0x583   : > { %v5841_v54 = vmax.f32 %v5833_v9, 0.0  ;;  %v5726_v51 = vadd.f32 %v7572_v42, %v7532_v8  ;;  %v5820_v33 = vmul.f32 %v10735_v47, %v5786_v13 }
 0x584   : > { %v7574_v32 = vpop.f32.mrf.mxu1  ;;  %v5798_v21 = vpop.f32.mrf.mxu0 }
 0x585   : > { %v5849_v31 = vpack.c.bf16 %v5841_v54, %v5841_v54  ;;  %v5791_v57 = vadd.f32 %v7852_v50, %v5726_v51  ;;  %v5834_v19 = vadd.f32 %v10740_v16, %v5820_v33  ;;  %v7575_v34 = vadd.f32 %v7574_v32, %v7573_v58 }
 0x586   : > { %v7576_v6 = vpop.f32.mrf.mxu1  ;;  %v10751_v26 = vpop.f32.mrf.mxu0 }
 0x587   : > { %v6004_v35 = vshrl.u32 %v5849_v31, 16  ;;  %v5821_v49 = vmul.f32 %v10735_v47, %v5791_v57  ;;  %v5842_v41 = vmax.f32 %v5834_v19, 0.0  ;;  %v6007_v37 = vshll.u32 %v5849_v31, 16 }
 0x588   : > { %v5729_v45 = vadd.f32 %v7575_v34, %v7535_v39  ;;  %v7577_v12 = vpop.f32.mrf.mxu1  ;;  %v5801_v8 = vpop.f32.mrf.mxu0  ;;  %v8042_v34 = vld [vmem:[%s11197_s10 + $0x1b8] sm:$0xff]  }
 0x589   : > { %v6006_v53 = vrot.slane %v6004_v35, 7  ;;  %v5835_v60 = vadd.f32 %v10740_v16, %v5821_v49  ;;  %v5850_v63 = vpack.c.bf16 %v5842_v41, %v5842_v41  ;;  %v7578_v36 = vadd.f32 %v7577_v12, %v7576_v6 }
 0x58a   : > { %v5794_v23 = vadd.f32 %v7853_v28, %v5729_v45  ;;  %v7579_v7 = vpop.f32.mrf.mxu1 }
 0x58b   : > { %v6009_v59 = vor.u32 %v6007_v37, %v6006_v53  ;;  %v5843_v0 = vmax.f32 %v5835_v60, 0.0  ;;  %v6011_v20 = vshrl.u32 %v5850_v63, 16  ;;  %v6014_v48 = vshll.u32 %v5850_v63, 16  ;;  %v8044_v37 = vld [vmem:[%s11197_s10 + $0x1f0] sm:$0xff]  }
 0x58c   : > { %v5822_v25 = vmul.f32 %v10735_v47, %v5794_v23  ;;  %v5734_v50 = vadd.f32 %v7578_v36, %v7538_v15  ;;  %v7580_v44 = vpop.f32.mrf.mxu1 }
 0x58d   : > { %v5851_v18 = vpack.c.bf16 %v5843_v0, %v5843_v0  ;;  %v6013_v61 = vrot.slane %v6011_v20, 7  ;;  %v7581_v40 = vadd.f32 %v7580_v44, %v7579_v7  ;;  %v6067_v55 = vsel %vm8280_vm2, 0, %v6009_v59  ;;  %v8046_v20 = vld [vmem:[%s11197_s10 + $0x1b0] sm:$0xff]  }
 0x58e   : > { %v5836_v24 = vadd.f32 %v10740_v16, %v5822_v25  ;;  %v5799_v56 = vadd.f32 %v5798_v21, %v5734_v50  ;;  %v7582_v62 = vpop.f32.mrf.mxu1  ;;  %v10758_v10 = vsel %vm9606_vm5, %v6067_v55, 0  ;;  %v8048_v25 = vld [vmem:[%s11197_s10 + $0x1e8] sm:$0xff]   ;;  %v8043_v55 = vld [vmem:[%s11197_s10 + $0x138] sm:$0xff]  }
 0x58f   : > { %v6018_v11 = vshrl.u32 %v5851_v18, 16  ;;  %v6016_v28 = vor.u32 %v6014_v48, %v6013_v61  ;;  %v5737_v4 = vadd.f32 %v7581_v40, %v7541_v14  ;;  %v6139_v42 = vrot.slane %v10758_v10, 1  ;;  %v11250_v61 = vld [vmem:[#allocation5_spill] sm:$0xff] }
 0x590   : > { %v5844_v43 = vmax.f32 %v5836_v24, 0.0  ;;  %v5823_v38 = vmul.f32 %v10735_v47, %v5799_v56  ;;  %v7583_v9 = vpop.f32.mrf.mxu1  ;;  %v6021_v13 = vshll.u32 %v5851_v18, 16  ;;  %v6086_v19 = vshll.u32 %v10758_v10, 16  ;;  %v8045_v56 = vld [vmem:[%s11197_s10 + $0x170] sm:$0xff]  }
 0x591   : > { %v5802_v58 = vadd.f32 %v5801_v8, %v5737_v4  ;;  %v7584_v54 = vadd.f32 %v7583_v9, %v7582_v62  ;;  %v6068_v51 = vsel %vm8280_vm2, 0, %v6016_v28  ;;  %v6020_v1 = vrot.slane %v6018_v11, 7 }
 0x592   : > { %v5852_v27 = vpack.c.bf16 %v5844_v43, %v5844_v43  ;;  %v5837_v33 = vadd.f32 %v10740_v16, %v5823_v38  ;;  %v7585_v32 = vpop.f32.mrf.mxu1  ;;  %v10771_v46 = vsel %vm9606_vm5, %v6068_v51, 0  ;;  %v7253_v49 = vcombine.low %v10229_v52, %v6139_v42  ;;  %v8050_v43 = vld [vmem:[%s11197_s10 + $0x1a8] sm:$0xff]  }
 0x593   : > { %v5824_v3 = vmul.f32 %v10735_v47, %v5802_v58  ;;  %v5742_v31 = vadd.f32 %v7584_v54, %v7544_v22  ;;  %v7254_v57 = vcombine.low %v10758_v10, %v10771_v46  ;;  %v6084_v41 = vshrl.u32 %v10758_v10, 16 }
 0x594   : > { %v6025_v39 = vshrl.u32 %v5852_v27, 16  ;;  %v5845_v6 = vmax.f32 %v5837_v33, 0.0  ;;  %v7586_v35 = vpop.f32.mrf.mxu1  ;;  %v6088_v53 = vrot.slane %v6086_v19, 1  ;;  %v6028_v63 = vshll.u32 %v5852_v27, 16 }
 0x595   : > { %v5838_v45 = vadd.f32 %v10740_v16, %v5824_v3  ;;  %v5807_v21 = vadd.f32 %v10745_v30, %v5742_v31  ;;  %v7587_v12 = vadd.f32 %v7586_v35, %v7585_v32  ;;  %6764 = vmatprep.mubr.bf16.mxu0 %v7254_v57  ;;  %v6023_v15 = vor.u32 %v6021_v13, %v6020_v1  ;;  %v8047_v1 = vld [vmem:[%s11197_s10 + $0x130] sm:$0xff]  }
 0x596   : > { %v6027_v60 = vrot.slane %v6025_v39, 7  ;;  %v5853_v36 = vpack.c.bf16 %v5845_v6, %v5845_v6  ;;  %6765 = vmatmul.mubr.bf16.vlgmr.msra.gmra.mxu0 %v7253_v49  ;;  %v10790_v0 = vor.u32 %v6088_v53, %v6084_v41  ;;  %v7251_v24 = vcombine.low %v9615_v17, %v10758_v10  ;;  %v8054_v39 = vld [vmem:[%s11197_s10 + $0x1a0] sm:$0xff]   ;;  %v8073_v10 = vld [vmem:[%s11197_s10 + $0x230] sm:$0xff]  }
 0x597   : > { %v5846_v23 = vmax.f32 %v5838_v45, 0.0  ;;  %v5825_v7 = vmul.f32 %v10735_v47, %v5807_v21  ;;  %v5745_v59 = vadd.f32 %v7587_v12, %v7547_v5  ;;  %7717 = vmatpush3.bf16.msra.mxu0 %v8042_v34  ;;  %v6069_v48 = vsel %vm8280_vm2, 0, %v6023_v15  ;;  %v8051_v12 = vld [vmem:[%s11197_s10 + $0x128] sm:$0xff]  }
 0x598   : > { %v6032_v30 = vshrl.u32 %v5853_v36, 16  ;;  %7718 = vmatprep.subr.bf16.mxu0 %v8044_v37  ;;  %v6030_v14 = vor.u32 %v6028_v63, %v6027_v60  ;;  %v7252_v40 = vcombine.low %v11250_v61, %v10790_v0  ;;  %v6140_v22 = vrot.slane %v10771_v46, 1  ;;  %v8056_v37 = vld [vmem:[%s11197_s10 + $0x1d8] sm:$0xff]  }
 0x599   : > { %v5854_v50 = vpack.c.bf16 %v5846_v23, %v5846_v23  ;;  %v5839_v44 = vadd.f32 %v10740_v16, %v5825_v7  ;;  %v5810_v18 = vadd.f32 %v10751_v26, %v5745_v59  ;;  %v10816_v26 = vsel %vm9606_vm5, %v6069_v48, 0 }
 0x59a   : > { %v6070_v62 = vsel %vm8280_vm2, 0, %v6030_v14  ;;  %v6034_v11 = vrot.slane %v6032_v30, 7  ;;  %6699 = vmatprep.mubr.bf16.mxu1 %v7252_v40  ;;  %v6035_v38 = vshll.u32 %v5853_v36, 16  ;;  %v6141_v9 = vrot.slane %v10816_v26, 1  ;;  %v8053_v36 = vld [vmem:[%s11197_s10 + $0x160] sm:$0xff]  }
 0x59b   : > { %v6039_v28 = vshrl.u32 %v5854_v50, 16  ;;  %v5847_v4 = vmax.f32 %v5839_v44, 0.0  ;;  %v5826_v5 = vmul.f32 %v10735_v47, %v5810_v18  ;;  %7719 = vmatpush3.bf16.msra.mxu0 %v8046_v20  ;;  %6700 = vmatmul.mubr.bf16.vlgmr.msra.gmra.mxu1 %v7251_v24  ;;  %v10825_v8 = vsel %vm9606_vm5, %v6070_v62, 0  ;;  %v8052_v47 = vld [vmem:[%s11197_s10 + $0x1e0] sm:$0xff]  }
 0x59c   : > { %7720 = vmatprep.subr.bf16.mxu0 %v8048_v25  ;;  %v6093_v13 = vshll.u32 %v10771_v46, 16  ;;  %7677 = vmatpush3.bf16.msra.mxu1 %v8043_v55  ;;  %v7260_v27 = vcombine.low %v10816_v26, %v10825_v8  ;;  %v6042_v33 = vshll.u32 %v5854_v50, 16  ;;  %v10842_v32 = vcombine.low %v6140_v22, %v6141_v9  ;;  %v8055_v55 = vld [vmem:[%s11197_s10 + $0x120] sm:$0xff]  }
 0x59d   : > { %v6041_v58 = vrot.slane %v6039_v28, 7  ;;  %v5855_v54 = vpack.c.bf16 %v5847_v4, %v5847_v4  ;;  %v5840_v51 = vadd.f32 %v10740_v16, %v5826_v5  ;;  %7678 = vmatprep.subr.bf16.mxu1 %v8045_v56  ;;  %v6100_v31 = vshll.u32 %v10816_v26, 16  ;;  %v8049_v16 = vld [vmem:[%s11197_s10 + $0x168] sm:$0xff]   ;;  %v8058_v56 = vld [vmem:[%s11197_s10 + $0x198] sm:$0xff]   ;;  %v8060_v5 = vld [vmem:[%s11197_s10 + $0x1d0] sm:$0xff]  }
 0x59e   : > { %v6095_v3 = vrot.slane %v6093_v13, 1  ;;  %6772 = vmatprep.mubr.bf16.mxu0 %v7260_v27  ;;  %v6091_v34 = vshrl.u32 %v10771_v46, 16  ;;  %v6037_v6 = vor.u32 %v6035_v38, %v6034_v11  ;;  %v6098_v35 = vshrl.u32 %v10816_v26, 16  ;;  %v8057_v4 = vld [vmem:[%s11197_s10 + $0x158] sm:$0xff]  }
 0x59f   : > { %v6046_v57 = vshrl.u32 %v5855_v54, 16  ;;  %v5848_v19 = vmax.f32 %v5840_v51, 0.0  ;;  %7721 = vmatpush3.bf16.msra.mxu0 %v8050_v43  ;;  %v6102_v49 = vrot.slane %v6100_v31, 1  ;;  %v6044_v41 = vor.u32 %v6042_v33, %v6041_v58  ;;  %v8059_v27 = vld [vmem:[%s11197_s10 + $0x118] sm:$0xff]   ;;  %v8061_v31 = vld [vmem:[%s11197_s10 + $0x150] sm:$0xff]  }
 0x5a0   : > { %6773 = vmatmul.mubr.bf16.gmra.mxu0 %v10842_v32  ;;  %7722 = vmatprep.subr.bf16.mxu0 %v8052_v47  ;;  %v10857_v21 = vor.u32 %v6095_v3, %v6091_v34  ;;  %v6071_v53 = vsel %vm8280_vm2, 0, %v6037_v6  ;;  %v6049_v7 = vshll.u32 %v5855_v54, 16  ;;  %v6142_v25 = vrot.slane %v10825_v8, 1 }
 0x5a1   : > { %v5856_v45 = vpack.c.bf16 %v5848_v19, %v5848_v19  ;;  %7679 = vmatpush3.bf16.msra.mxu1 %v8047_v1  ;;  %v6048_v60 = vrot.slane %v6046_v57, 7  ;;  %v10864_v63 = vor.u32 %v6102_v49, %v6098_v35  ;;  %v6072_v15 = vsel %vm8280_vm2, 0, %v6044_v41  ;;  %v8064_v49 = vld [vmem:[%s11197_s10 + $0x1c8] sm:$0xff]  }
 0x5a2   : > { %7680 = vmatprep.subr.bf16.mxu1 %v8049_v16  ;;  %v10873_v23 = vsel %vm9606_vm5, %v6071_v53, 0  ;;  %v10877_v20 = vsel %vm9606_vm5, %v6072_v15, 0  ;;  %v6107_v50 = vshll.u32 %v10825_v8, 16  ;;  %v10890_v40 = vcombine.low %v10771_v46, %v10816_v26  ;;  %v8062_v16 = vld [vmem:[%s11197_s10 + $0x190] sm:$0xff]   ;;  %v8065_v15 = vld [vmem:[%s11197_s10 + $0x148] sm:$0xff]   ;;  %v8075_v26 = vld [vmem:[%s11197_s10 + $0x220] sm:$0xff]  }
 0x5a3   : > { %v6053_v59 = vshrl.u32 %v5856_v45, 16  ;;  %7723 = vmatpush3.bf16.msra.mxu0 %v8054_v39  ;;  %v6143_v30 = vrot.slane %v10873_v23, 1  ;;  %v10882_v14 = vcombine.low %v10857_v21, %v10864_v63  ;;  %v7266_v48 = vcombine.low %v10873_v23, %v10877_v20 }
 0x5a4   : > { %7724 = vmatprep.subr.bf16.mxu0 %v8056_v37  ;;  %v6056_v18 = vshll.u32 %v5856_v45, 16  ;;  %v6114_v24 = vshll.u32 %v10873_v23, 16  ;;  %v6105_v11 = vshrl.u32 %v10825_v8, 16  ;;  %v6109_v28 = vrot.slane %v6107_v50, 1  ;;  %v8067_v50 = vld [vmem:[%s11197_s10 + $0x108] sm:$0xff]  }
 0x5a5   : > { %v6055_v44 = vrot.slane %v6053_v59, 7  ;;  %7681 = vmatpush3.bf16.msra.mxu1 %v8051_v12  ;;  %6707 = vmatprep.mubr.bf16.mxu1 %v10882_v14  ;;  %v10904_v62 = vcombine.low %v6142_v25, %v6143_v30  ;;  %v6051_v43 = vor.u32 %v6049_v7, %v6048_v60  ;;  %v6112_v38 = vshrl.u32 %v10873_v23, 16  ;;  %v8063_v12 = vld [vmem:[%s11197_s10 + $0x110] sm:$0xff]   ;;  %v8066_v7 = vld [vmem:[%s11197_s10 + $0x188] sm:$0xff]  }
 0x5a6   : > { %7682 = vmatprep.subr.bf16.mxu1 %v8053_v36  ;;  %6708 = vmatmul.mubr.bf16.gmra.mxu1 %v10890_v40  ;;  %v6116_v13 = vrot.slane %v6114_v24, 1  ;;  %v6121_v58 = vshll.u32 %v10877_v20, 16  ;;  %v10919_v51 = vor.u32 %v6109_v28, %v6105_v11  ;;  %v6144_v35 = vrot.slane %v10877_v20, 1  ;;  %v8076_v11 = vld [vmem:[%s11197_s10 + $0x218] sm:$0xff]  }
 0x5a7   : > { %6780 = vmatprep.mubr.bf16.mxu0 %v7266_v48  ;;  %v6058_v47 = vor.u32 %v6056_v18, %v6055_v44  ;;  %v6073_v54 = vsel %vm8280_vm2, 0, %v6051_v43  ;;  %7725 = vmatpush3.bf16.msra.mxu0 %v8058_v56  ;;  %v6119_v29 = vshrl.u32 %v10877_v20, 16  ;;  %v7263_v45 = vcombine.low %v10825_v8, %v10873_v23  ;;  %v8068_v48 = vld [vmem:[%s11197_s10 + $0x1c0] sm:$0xff]   ;;  %v8072_v56 = vld [vmem:[%s11197_s10 + $0x238] sm:$0xff]  }
 0x5a8   : > { %6781 = vmatmul.mubr.bf16.gmra.mxu0 %v10904_v62  ;;  %v10921_v1 = vor.u32 %v6116_v13, %v6112_v38  ;;  %v10930_v3 = vsel %vm9606_vm5, %v6073_v54, 0  ;;  %7726 = vmatprep.subr.bf16.mxu0 %v8060_v5  ;;  %v6123_v19 = vrot.slane %v6121_v58, 1  ;;  %v8069_v44 = vld [vmem:[%s11197_s10 + $0x140] sm:$0xff]   ;;  %v7256_v24 = vcombine.low %v6139_v42, %v6140_v22  ;;  %v8074_v22 = vld [vmem:[%s11197_s10 + $0x228] sm:$0xff]  }
 0x5a9   : > { %7683 = vmatpush3.bf16.msra.mxu1 %v8055_v55  ;;  %v6074_v33 = vsel %vm8280_vm2, 0, %v6058_v47  ;;  %v6145_v2 = vrot.slane %v10930_v3, 1  ;;  %v6128_v34 = vshll.u32 %v10930_v3, 16  ;;  %v6126_v41 = vshrl.u32 %v10930_v3, 16  ;;  %v8070_v18 = vld [vmem:[%s11197_s10 + $0x180] sm:$0xff]  }
 0x5aa   : > { %7684 = vmatprep.subr.bf16.mxu1 %v8057_v4  ;;  %v10940_v57 = vsel %vm9606_vm5, %v6074_v33, 0  ;;  %v7264_v39 = vcombine.low %v10919_v51, %v10921_v1  ;;  %v10963_v60 = vor.u32 %v6123_v19, %v6119_v29  ;;  %v7269_v55 = vcombine.low %v10877_v20, %v10930_v3  ;;  %v8078_v4 = vld [vmem:[%s11197_s10 + $0x208] sm:$0xff]   ;;  %v8079_v43 = vld [vmem:[%s11197_s10 + $0x200] sm:$0xff]  }
 0x5ab   : > { %v7272_v6 = vcombine.low %v10930_v3, %v10940_v57  ;;  %v6130_v37 = vrot.slane %v6128_v34, 1  ;;  %7727 = vmatpush3.bf16.msra.mxu0 %v8062_v16  ;;  %v10961_v53 = vcombine.low %v6144_v35, %v6145_v2  ;;  %v7255_v20 = vcombine.low %v10790_v0, %v10857_v21 }
 0x5ac   : > { %6715 = vmatprep.mubr.bf16.mxu1 %v7264_v39  ;;  %7728 = vmatprep.subr.bf16.mxu0 %v8064_v49  ;;  %v6149_v42 = vshll.u32 %v10940_v57, 16  ;;  %v7262_v46 = vcombine.low %v6141_v9, %v6142_v25  ;;  %v6147_v21 = vshrl.u32 %v10940_v57, 16  ;;  %v7261_v8 = vcombine.low %v10864_v63, %v10919_v51 }
 0x5ad   : > { %7685 = vmatpush3.bf16.msra.mxu1 %v8059_v27  ;;  %v10965_v36 = vor.u32 %v6130_v37, %v6126_v41  ;;  %6788 = vmatprep.mubr.bf16.mxu0 %v7272_v6  ;;  %v7268_v25 = vcombine.low %v6143_v30, %v6144_v35  ;;  %v6154_v63 = vrot.slane %v10940_v57, 1  ;;  %v7267_v23 = vcombine.low %v10921_v1, %v10963_v60  ;;  %v8077_v30 = vld [vmem:[%s11197_s10 + $0x210] sm:$0xff]  }
 0x5ae   : > { %7686 = vmatprep.subr.bf16.mxu1 %v8061_v31  ;;  %6716 = vmatmul.mubr.bf16.gmra.mxu1 %v7263_v45  ;;  %v6151_v0 = vrot.slane %v6149_v42, 1  ;;  %v7275_v28 = vcombine.low %v10940_v57, %v9615_v17 }
 0x5af   : > { %v7270_v59 = vcombine.low %v10963_v60, %v10965_v36  ;;  %7729 = vmatpush3.bf16.msra.mxu0 %v8066_v7  ;;  %v7277_v17 = vcombine.low %v6154_v63, %v10229_v52 }
 0x5b0   : > { %6789 = vmatmul.mubr.bf16.gmra.mxu0 %v10961_v53  ;;  %7730 = vmatprep.subr.bf16.mxu0 %v8068_v48  ;;  %v6152_v9 = vor.u32 %v6151_v0, %v6147_v21 }
 0x5b1   : > { %7687 = vmatpush3.bf16.msra.mxu1 %v8063_v12  ;;  %6894 = vmatprep.mubr.bf16.mxu0 %v10882_v14  ;;  %v8071_v14 = vld [vmem:[%s11197_s10 + $0x100] sm:$0xff]  }
 0x5b2   : > { %6723 = vmatprep.mubr.bf16.mxu1 %v7270_v59  ;;  %7688 = vmatprep.subr.bf16.mxu1 %v8065_v15  ;;  %v7273_v5 = vcombine.low %v10965_v36, %v6152_v9 }
 0x5b3   : > { %7731 = vmatpush3.bf16.msra.mxu0 %v8070_v18 }
 0x5b5   : > { %7689 = vmatpush3.bf16.msra.mxu1 %v8067_v50 }
 0x5b6   : > { %7690 = vmatprep.subr.bf16.mxu1 %v8069_v44  ;;  %6724 = vmatmul.mubr.bf16.gmra.mxu1 %v7269_v55 }
 0x5b7   : > { %6829 = vmatprep.mubr.bf16.mxu1 %v7256_v24 }
 0x5b8   : > { %6895 = vmatmul.mubr.bf16.vlgmr.msra.gmra.mxu0 %v10890_v40  ;;  %v7276_v40 = vcombine.low %v6152_v9, %v11250_v61  ;;  %v7274_v61 = vcombine.low %v6145_v2, %v6154_v63 }
 0x5b9   : > { %7691 = vmatpush3.bf16.msra.mxu1 %v8071_v14  ;;  %6902 = vmatprep.mubr.bf16.mxu0 %v7264_v39 }
 0x5ba   : > { %7858 = vmatprep.subr.bf16.mxu1 %v8072_v56 }
 0x5be   : > { %6830 = vmatmul.mubr.bf16.vlgmr.msra.gmra.mxu1 %v7255_v20 }
 0x5bf   : > { %7859 = vmatpush3.bf16.msra.mxu1 %v8072_v56  ;;  %6837 = vmatprep.mubr.bf16.mxu1 %v7262_v46 }
 0x5c0   : > { %7860 = vmatprep.subr.bf16.mxu1 %v8073_v10  ;;  %6903 = vmatmul.mubr.bf16.gmra.mxu0 %v7263_v45 }
 0x5c1   : > { %6910 = vmatprep.mubr.bf16.mxu0 %v7270_v59 }
 0x5c3   : > { %7861 = vmatpush3.bf16.msra.mxu1 %v8073_v10 }
 0x5c4   : > { %7862 = vmatprep.subr.bf16.mxu1 %v8074_v22 }
 0x5c6   : > { %6838 = vmatmul.mubr.bf16.gmra.mxu1 %v7261_v8 }
 0x5c7   : > { %7863 = vmatpush3.bf16.msra.mxu1 %v8074_v22  ;;  %6845 = vmatprep.mubr.bf16.mxu1 %v7268_v25 }
 0x5c8   : > { %7864 = vmatprep.subr.bf16.mxu1 %v8075_v26  ;;  %6911 = vmatmul.mubr.bf16.gmra.mxu0 %v7269_v55 }
 0x5c9   : > { %6918 = vmatprep.mubr.bf16.mxu0 %v7276_v40 }
 0x5cb   : > { %7865 = vmatpush3.bf16.msra.mxu1 %v8075_v26 }
 0x5cc   : > { %7866 = vmatprep.subr.bf16.mxu1 %v8076_v11 }
 0x5ce   : > { %6846 = vmatmul.mubr.bf16.gmra.mxu1 %v7267_v23 }
 0x5cf   : > { %7867 = vmatpush3.bf16.msra.mxu1 %v8076_v11  ;;  %6853 = vmatprep.mubr.bf16.mxu1 %v7274_v61 }
 0x5d0   : > { %7868 = vmatprep.subr.bf16.mxu1 %v8077_v30  ;;  %6919 = vmatmul.mubr.bf16.gmra.mxu0 %v7275_v28 }
 0x5d3   : > { %7869 = vmatpush3.bf16.msra.mxu1 %v8077_v30 }
 0x5d4   : > { %7870 = vmatprep.subr.bf16.mxu1 %v8078_v4 }
 0x5d6   : > { %6854 = vmatmul.mubr.bf16.gmra.mxu1 %v7273_v5 }
 0x5d7   : > { %7871 = vmatpush3.bf16.msra.mxu1 %v8078_v4  ;;  %7874 = vmatprep.mubr.bf16.mxu1 %v10842_v32 }
 0x5d8   : > { %7872 = vmatprep.subr.bf16.mxu1 %v8079_v43 }
 0x5db   : > { %7873 = vmatpush3.bf16.msra.mxu1 %v8079_v43 }
 0x5de   : > { %7875 = vmatmul.mubr.bf16.vlgmr.msra.gmra.mxu1 %v10904_v62 }
 0x5df   : > { %7878 = vmatprep.mubr.bf16.mxu1 %v10961_v53 }
 0x5e6   : > { %7879 = vmatmul.mubr.bf16.gmra.mxu1 %v7277_v17 }
 0x656   : > { %v7652_v38 = vpop.f32.mrf.mxu0 }
 0x658   : > { %v7653_v13 = vpop.f32.mrf.mxu0 }
 0x659   : > { %v7654_v5 = vadd.f32 %v7653_v13, %v7652_v38 }
 0x65a   : > { %v11048_v47 = vpop.f32.mrf.mxu0 }
 0x65b   : > { %v7612_v58 = vpop.f32.mrf.mxu1 }
 0x65c   : > { %v11050_v54 = vpop.f32.mrf.mxu0 }
 0x65d   : > { %v7613_v51 = vpop.f32.mrf.mxu1 }
 0x65e   : > { %v7614_v30 = vadd.f32 %v7613_v51, %v7612_v58 }
 0x65f   : > { %v7615_v1 = vpop.f32.mrf.mxu1 }
 0x660   : > { %v7658_v27 = vpop.f32.mrf.mxu0 }
 0x661   : > { %v7616_v33 = vpop.f32.mrf.mxu1 }
 0x662   : > { %v7659_v32 = vpop.f32.mrf.mxu0 }
 0x663   : > { %v7660_v61 = vadd.f32 %v7659_v32, %v7658_v27 }
 0x664   : > { %v7661_v3 = vpop.f32.mrf.mxu0 }
 0x666   : > { %v7662_v31 = vpop.f32.mrf.mxu0  ;;  %v7618_v62 = vpop.f32.mrf.mxu1 }
 0x668   : > { %v11052_v16 = vpop.f32.mrf.mxu0  ;;  %v7619_v57 = vpop.f32.mrf.mxu1 }
 0x669   : > { %v7620_v11 = vadd.f32 %v7619_v57, %v7618_v62  ;;  %v7657_v62 = vadd.f32 %v11050_v54, %v11048_v47 }
 0x66a   : > { %v11054_v52 = vpop.f32.mrf.mxu0  ;;  %v7621_v2 = vpop.f32.mrf.mxu1 }
 0x66b   : > { %v6775_v43 = vadd.f32 %v7660_v61, %v7620_v11 }
 0x66c   : > { %v11056_v19 = vpop.f32.mrf.mxu0  ;;  %v7622_v34 = vpop.f32.mrf.mxu1 }
 0x66d   : > { %v7623_v17 = vadd.f32 %v7622_v34, %v7621_v2 }
 0x66e   : > { %v11058_v39 = vpop.f32.mrf.mxu0  ;;  %v7624_v6 = vpop.f32.mrf.mxu1 }
 0x66f   : > { %v7669_v34 = vadd.f32 %v11058_v39, %v11056_v19 }
 0x670   : > { %v7670_v35 = vpop.f32.mrf.mxu0  ;;  %v7625_v49 = vpop.f32.mrf.mxu1 }
 0x671   : > { %v7626_v57 = vadd.f32 %v7625_v49, %v7624_v6 }
 0x672   : > { %v7671_v29 = vpop.f32.mrf.mxu0  ;;  %v11060_v41 = vpop.f32.mrf.mxu1 }
 0x674   : > { %v11062_v37 = vpop.f32.mrf.mxu0  ;;  %v11064_v45 = vpop.f32.mrf.mxu1 }
 0x675   : > { %11251 = vst [vmem:[#allocation6_spill] sm:$0xff] %v11062_v37  ;;  %11252 = vst [vmem:[#allocation7_spill] sm:$0xff] %v11064_v45  ;;  %v7663_v37 = vadd.f32 %v7662_v31, %v7661_v3 }
 0x676   : > { %v11066_v12 = vpop.f32.mrf.mxu0  ;;  %v7630_v53 = vpop.f32.mrf.mxu1 }
 0x677   : > { %11253 = vst [vmem:[#allocation5_spill] sm:$0xff] %v11066_v12  ;;  %v6767_v12 = vadd.f32 %v7654_v5, %v7614_v30  ;;  %v6778_v51 = vadd.f32 %v7663_v37, %v7623_v17 }
 0x678   : > { %v7631_v60 = vpop.f32.mrf.mxu1  ;;  %v7732_v36 = vpop.f32.mrf.mxu0 }
 0x67a   : > { %v7633_v15 = vpop.f32.mrf.mxu1  ;;  %v7733_v7 = vpop.f32.mrf.mxu0 }
 0x67b   : > { %v7734_v47 = vadd.f32 %v7733_v7, %v7732_v36 }
 0x67c   : > { %v7634_v59 = vpop.f32.mrf.mxu1  ;;  %v11068_v48 = vpop.f32.mrf.mxu0  ;;  %v11260_v39 = vld [vmem:[#allocation7_spill] sm:$0xff]  ;;  %v11261_v36 = vld [vmem:[#allocation6_spill] sm:$0xff] }
 0x67d   : > { %11254 = vst [vmem:[#allocation8_spill] sm:$0xff] %v11068_v48 }
 0x67e   : > { %v7692_v50 = vpop.f32.mrf.mxu1  ;;  %v11070_v44 = vpop.f32.mrf.mxu0  ;;  %v11262_v7 = vld [vmem:[#allocation5_spill] sm:$0xff] }
 0x67f   : > { %11255 = vst [vmem:[#allocation9_spill] sm:$0xff] %v11070_v44 }
 0x680   : > { %v7693_v18 = vpop.f32.mrf.mxu1  ;;  %v7738_v55 = vpop.f32.mrf.mxu0 }
 0x682   : > { %v7695_v14 = vpop.f32.mrf.mxu1  ;;  %v7739_v24 = vpop.f32.mrf.mxu0 }
 0x683   : > { %v7740_v38 = vadd.f32 %v7739_v24, %v7738_v55 }
 0x684   : > { %v7696_v56 = vpop.f32.mrf.mxu1  ;;  %v7741_v20 = vpop.f32.mrf.mxu0 }
 0x685   : > { %v7697_v32 = vadd.f32 %v7696_v56, %v7695_v14  ;;  %v11263_v14 = vld [vmem:[#allocation8_spill] sm:$0xff] }
 0x686   : > { %v7698_v10 = vpop.f32.mrf.mxu1  ;;  %v7742_v42 = vpop.f32.mrf.mxu0  ;;  %v11264_v24 = vld [vmem:[#allocation9_spill] sm:$0xff] }
 0x687   : > { %v7737_v56 = vadd.f32 %v11264_v24, %v11263_v14 }
 0x688   : > { %v7699_v46 = vpop.f32.mrf.mxu1  ;;  %v11072_v22 = vpop.f32.mrf.mxu0 }
 0x689   : > { %11256 = vst [vmem:[#allocation10_spill] sm:$0xff] %v11072_v22  ;;  %v7700_v28 = vadd.f32 %v7699_v46, %v7698_v10  ;;  %v7694_v22 = vadd.f32 %v7693_v18, %v7692_v50  ;;  %v11099_v18 = vld [vmem:[%s11199_s12] ss:$0 sm:$0xff] }
 0x68a   : > { %v7701_v0 = vpop.f32.mrf.mxu1  ;;  %v11074_v21 = vpop.f32.mrf.mxu0 }
 0x68b   : > { %11257 = vst [vmem:[#allocation11_spill] sm:$0xff] %v11074_v21  ;;  %v7617_v21 = vadd.f32 %v7616_v33, %v7615_v1  ;;  %v6832_v27 = vadd.f32 %v7694_v22, %v6767_v12  ;;  %v7666_v1 = vadd.f32 %v11054_v52, %v11052_v16  ;;  %v7672_v33 = vadd.f32 %v7671_v29, %v7670_v35 }
 0x68c   : > { %v7702_v8 = vpop.f32.mrf.mxu1  ;;  %v11076_v9 = vpop.f32.mrf.mxu0  ;;  %v7635_v12 = vadd.f32 %v7634_v59, %v7633_v15  ;;  %v7743_v35 = vadd.f32 %v7742_v42, %v7741_v20  ;;  %v7675_v15 = vadd.f32 %v11262_v7, %v11261_v36 }
 0x68d   : > { %11258 = vst [vmem:[#allocation12_spill] sm:$0xff] %v11076_v9  ;;  %v6840_v9 = vadd.f32 %v7700_v28, %v6775_v43  ;;  %v7703_v45 = vadd.f32 %v7702_v8, %v7701_v0  ;;  %v6770_v2 = vadd.f32 %v7657_v62, %v7617_v21  ;;  %v6783_v49 = vadd.f32 %v7666_v1, %v7626_v57 }
 0x68e   : > { %v7704_v26 = vpop.f32.mrf.mxu1  ;;  %v11078_v63 = vpop.f32.mrf.mxu0  ;;  %v6897_v19 = vadd.f32 %v7734_v47, %v6832_v27  ;;  %v6794_v42 = vadd.f32 %v7675_v15, %v7635_v12 }
 0x68f   : > { %11259 = vst [vmem:[#allocation13_spill] sm:$0xff] %v11078_v63  ;;  %v7632_v63 = vadd.f32 %v7631_v60, %v7630_v53  ;;  %v6843_v54 = vadd.f32 %v7703_v45, %v6778_v51  ;;  %v6905_v6 = vadd.f32 %v7740_v38, %v6840_v9  ;;  %v11090_v60 = vld [vmem:[%s11198_s11] ss:$0 sm:$0xff]  ;;  %v6835_v52 = vadd.f32 %v7697_v32, %v6770_v2 }
 0x690   : > { %v7705_v25 = vpop.f32.mrf.mxu1  ;;  %v7750_v44 = vpop.f32.mrf.mxu0  ;;  %v7629_v45 = vadd.f32 %v11260_v39, %v11060_v41  ;;  %v11265_v30 = vld [vmem:[#allocation10_spill] sm:$0xff] }
 0x691   : > { %v6791_v37 = vadd.f32 %v7672_v33, %v7632_v63  ;;  %v7706_v53 = vadd.f32 %v7705_v25, %v7704_v26  ;;  %v6908_v41 = vadd.f32 %v7743_v35, %v6843_v54  ;;  %v6900_v11 = vadd.f32 %v7737_v56, %v6835_v52 }
 0x692   : > { %v7707_v40 = vpop.f32.mrf.mxu1  ;;  %v7751_v13 = vpop.f32.mrf.mxu0  ;;  %v6786_v63 = vadd.f32 %v7669_v34, %v7629_v45  ;;  %v11266_v61 = vld [vmem:[#allocation11_spill] sm:$0xff] }
 0x693   : > { %v6848_v46 = vadd.f32 %v7706_v53, %v6783_v49  ;;  %v7752_v0 = vadd.f32 %v7751_v13, %v7750_v44  ;;  %v7746_v28 = vadd.f32 %v11266_v61, %v11265_v30 }
 0x694   : > { %v7708_v23 = vpop.f32.mrf.mxu1  ;;  %v7753_v29 = vpop.f32.mrf.mxu0  ;;  %v11267_v2 = vld [vmem:[#allocation12_spill] sm:$0xff] }
 0x695   : > { %v7709_v22 = vadd.f32 %v7708_v23, %v7707_v40  ;;  %v6913_v51 = vadd.f32 %v7746_v28, %v6848_v46 }
 0x696   : > { %v7710_v4 = vpop.f32.mrf.mxu1  ;;  %v7754_v8 = vpop.f32.mrf.mxu0  ;;  %v11268_v1 = vld [vmem:[#allocation13_spill] sm:$0xff] }
 0x697   : > { %v6851_v23 = vadd.f32 %v7709_v22, %v6786_v63  ;;  %v7755_v57 = vadd.f32 %v7754_v8, %v7753_v29  ;;  %v7749_v33 = vadd.f32 %v11268_v1, %v11267_v2 }
 0x698   : > { %v7711_v48 = vpop.f32.mrf.mxu1 }
 0x699   : > { %v7712_v3 = vadd.f32 %v7711_v48, %v7710_v4 }
 0x69a   : > { %v7713_v58 = vpop.f32.mrf.mxu1 }
 0x69b   : > { %v6856_v59 = vadd.f32 %v7712_v3, %v6791_v37  ;;  %v6916_v37 = vadd.f32 %v7749_v33, %v6851_v23 }
 0x69c   : > { %v7714_v31 = vpop.f32.mrf.mxu1 }
 0x69d   : > { %v7715_v50 = vadd.f32 %v7714_v31, %v7713_v58  ;;  %v6921_v43 = vadd.f32 %v7752_v0, %v6856_v59 }
 0x69e   : > { %v7876_v16 = vpop.f32.mrf.mxu1 }
 0x69f   : > { %v6970_v48 = vadd.f32 %v7876_v16, %v6905_v6  ;;  %v6859_v4 = vadd.f32 %v7715_v50, %v6794_v42 }
 0x6a0   : > { %v6961_v55 = vpop.f32.mrf.mxu1 }
 0x6a1   : > { %v7000_v20 = vmul.f32 %v11090_v60, %v6970_v48  ;;  %v6962_v10 = vadd.f32 %v6961_v55, %v6897_v19  ;;  %v6924_v31 = vadd.f32 %v7755_v57, %v6859_v4 }
 0x6a2   : > { %v7877_v21 = vpop.f32.mrf.mxu1 }
 0x6a3   : > { %v7014_v26 = vadd.f32 %v11099_v18, %v7000_v20  ;;  %v6998_v9 = vmul.f32 %v11090_v60, %v6962_v10  ;;  %v6973_v25 = vadd.f32 %v7877_v21, %v6908_v41 }
 0x6a4   : > { %v6964_v5 = vpop.f32.mrf.mxu1 }
 0x6a5   : > { %v7022_v17 = vmax.f32 %v7014_v26, 0.0  ;;  %v7012_v62 = vadd.f32 %v11099_v18, %v6998_v9  ;;  %v7001_v44 = vmul.f32 %v11090_v60, %v6973_v25  ;;  %v6965_v40 = vadd.f32 %v6964_v5, %v6900_v11 }
 0x6a6   : > { %v7880_v58 = vpop.f32.mrf.mxu1 }
 0x6a7   : > { %7030 = vst [vmem:[%s11112_s16 + $0x10] sm:$0xff] %v7022_v17  ;;  %v7020_v27 = vmax.f32 %v7012_v62, 0.0  ;;  %v7015_v32 = vadd.f32 %v11099_v18, %v7001_v44  ;;  %v6999_v38 = vmul.f32 %v11090_v60, %v6965_v40  ;;  %v6986_v13 = vadd.f32 %v7880_v58, %v6921_v43 }
 0x6a8   : > { %v6977_v3 = vpop.f32.mrf.mxu1 }
 0x6a9   : > { %7028 = vst [vmem:[%s11112_s16] sm:$0xff] %v7020_v27  ;;  %v7023_v34 = vmax.f32 %v7015_v32, 0.0  ;;  %v7013_v47 = vadd.f32 %v11099_v18, %v6999_v38  ;;  %v7004_v54 = vmul.f32 %v11090_v60, %v6986_v13  ;;  %v6978_v6 = vadd.f32 %v6977_v3, %v6913_v51 }
 0x6aa   : > { %v7881_v49 = vpop.f32.mrf.mxu1 }
 0x6ab   : > { %7031 = vst [vmem:[%s11112_s16 + $0x18] sm:$0xff] %v7023_v34  ;;  %v7021_v12 = vmax.f32 %v7013_v47, 0.0  ;;  %v7018_v53 = vadd.f32 %v11099_v18, %v7004_v54  ;;  %v7002_v16 = vmul.f32 %v11090_v60, %v6978_v6  ;;  %v6989_v52 = vadd.f32 %v7881_v49, %v6924_v31 }
 0x6ac   : > { %v6980_v35 = vpop.f32.mrf.mxu1 }
 0x6ad   : > { %7029 = vst [vmem:[%s11112_s16 + $0x8] sm:$0xff] %v7021_v12  ;;  %v7026_v29 = vmax.f32 %v7018_v53, 0.0  ;;  %v7016_v48 = vadd.f32 %v11099_v18, %v7002_v16  ;;  %v7005_v19 = vmul.f32 %v11090_v60, %v6989_v52  ;;  %v6981_v39 = vadd.f32 %v6980_v35, %v6916_v37 }
 0x6af   : > { %7034 = vst [vmem:[%s11112_s16 + $0x30] sm:$0xff] %v7026_v29  ;;  %v7024_v45 = vmax.f32 %v7016_v48, 0.0  ;;  %v7019_v36 = vadd.f32 %v11099_v18, %v7005_v19  ;;  %v7003_v7 = vmul.f32 %v11090_v60, %v6981_v39 }
 0x6b1   : > { %7032 = vst [vmem:[%s11112_s16 + $0x20] sm:$0xff] %v7024_v45  ;;  %v7027_v15 = vmax.f32 %v7019_v36, 0.0  ;;  %v7017_v59 = vadd.f32 %v11099_v18, %v7003_v7 }
 0x6b3   : > { %7035 = vst [vmem:[%s11112_s16 + $0x38] sm:$0xff] %v7027_v15  ;;  %v7025_v50 = vmax.f32 %v7017_v59, 0.0 }
 0x6b5   : > { %7033 = vst [vmem:[%s11112_s16 + $0x28] sm:$0xff] %v7025_v50 }
 0x6b6   : > { %8099 = shalt.err (!%p8096_p3)
}
 0x6b7   : > { %s8100_s1 = scalar_lea.hbm %s11138_s21, 1024  ;;  %s8104_s2 = scalar_lea.hbm %s11200_s13, 2048 }
 0x6b8   : > { %p8101_p4 = scmp.ne.s32.totalorder %s11138_s21, %s8100_s1  ;;  %p8105_p9 = scmp.lt.s32.totalorder %s11138_s21, %s11200_s13 }
 0x6b9   : > { %p8106_p10 = scmp.lt.s32.totalorder %s8104_s2, %s8100_s1 }
 0x6ba   : > { %p8102_p7 = pnand %p8101_p4, %p8270_p5 }
 0x6bb   : > { %p8107_p11 = por %p8106_p10, %p8105_p9 }
 0x6bc   : > { %p8103_p8 = pneg %p8102_p7 }
 0x6be   : > { %p8108_p12 = pnand %p8107_p11, %p8103_p8 }
 0x6c0   : > { %8111 = shalt.err (!%p8108_p12)
}
 0x6c1   : > { %s8161_s23 = smov 128  }
 0x6c2   : > { %7883 = dma.vmem_to_hbm [thread:$0]  (%p8270_p5), %s11141_s15, 1024, %s11138_s21, %s11146_s29, %s8161_s23, %s8161_s23, %s11236_s0  }
 0x6c3 PF: > { %p7889_p13 = scmp.ge.s32.totalorder %s8146_s28, 2  ;;  %s7065_s22 = sand.u32 1, %s8134_s25  }
 0x6c4   : > { %s7066_s3 = scalar_lea.sflag [#allocation3], %s7065_s22 }
 0x6c5   : > { %p7886_p0 = pnand %p7889_p13, %p8274_p6 }
 0x6c7   : > { %p7887_p1 = pneg %p7886_p0 }
 0x6c9   : > { %8129 = dma.done.wait (%p7887_p1), %s7066_s3, 1024  }
 0x6ca   : > { %8131 = vsyncadd (%p7887_p1), %s7066_s3, 4294966272  ;;  %p23_p2 = scmp.ge.s32.totalorder %s8257_s14, 4   ;;  %s11269_s25 = smov %s8138_s26 }
 0x6cb   : > { %s11270_s26 = smov %s8142_s27  ;;  %s11271_s27 = smov %s8268_s17 }
 0x6cc   : > { %s11272_s28 = smov %s8257_s14  ;;  %25 = sbr.rel (!%p23_p2) target bundleno = 8 (0x8), region = 107 }
 0x6d1   :  { %7071 = vsyncpa [#allocation3], 1 }
 0x6d2   :  { %7073 = vsyncpa [#allocation3 + $0x1], 1 }

</bundles_post_ra>
